<compile_context>
chip_gen: v6e
topology: v6e:2x2x1
jax: 0.10.0
libtpu: 0.0.40
codegen_flags: <defaults>
</compile_context>

<pallas_src>
import functools
import math

import jax
import jax.numpy as jnp
from jax.experimental import pallas as pl
from jax.experimental.pallas import tpu as pltpu

_MASK_VAL = -1e9          # additive mask value (matches the PyTorch-side convention)
_NEG_INIT = -1e30         # online-softmax running-max init (finite: avoids inf - inf)


def _gelu(x):
    # matches the module's custom tanh-gelu
    return 0.5 * x * (1.0 + jnp.tanh(math.sqrt(2.0 / math.pi) * (x + 0.044715 * x ** 3)))


def _layernorm(x, g, b, eps=1e-5):
    mu = jnp.mean(x, axis=-1, keepdims=True)
    var = jnp.mean((x - mu) ** 2, axis=-1, keepdims=True)
    return (x - mu) * jax.lax.rsqrt(var + eps) * g + b


def decoder_layer_kernel(
    num_heads, q_tile, kt_self, kt_cross, ffn_tile, causal,
    # inputs
    hs_full_ref, hs_tile_ref, enc_ref, self_pad_ref, cross_pad_ref,
    s_q_w, s_q_b, s_kv_w, s_kv_b, s_o_w, s_o_b, ln1_g, ln1_b,
    c_q_w, c_q_b, c_kv_w, c_kv_b, c_o_w, c_o_b, ln2_g, ln2_b,
    fc1_w, fc1_b, fc2_w, fc2_b, lnf_g, lnf_b,
    # outputs
    out_ref, self_k_ref, self_v_ref, cross_k_ref, cross_v_ref,
    # scratch (persists across the query-tile grid axis)
    k_self_sc, v_self_sc, k_cross_sc, v_cross_sc,
):
    f32, bf16 = jnp.float32, jnp.bfloat16
    T, E = hs_full_ref.shape[1], hs_full_ref.shape[2]
    S = enc_ref.shape[1]
    H = num_heads
    D = E // H
    tq = q_tile
    qt = pl.program_id(1)

    # ---- per-batch K/V projections: computed once, cached head-split in VMEM ------
    @pl.when(qt == 0)
    def _project_kv():
        hs_full = hs_full_ref[0].astype(bf16)                            # (T, E)
        kv = jnp.dot(hs_full, s_kv_w[...], preferred_element_type=f32) + s_kv_b[...]
        k = kv[:, :E].astype(bf16)
        v = kv[:, E:].astype(bf16)
        self_k_ref[0] = k                    # present_key_value, flat lane-dense bf16
        self_v_ref[0] = v
        for h in range(H):                   # head split once per batch, not per tile
            k_self_sc[h] = k[:, h * D:(h + 1) * D]
            v_self_sc[h] = v[:, h * D:(h + 1) * D]

        enc = enc_ref[0].astype(bf16)                                    # (S, E)
        kv = jnp.dot(enc, c_kv_w[...], preferred_element_type=f32) + c_kv_b[...]
        k = kv[:, :E].astype(bf16)
        v = kv[:, E:].astype(bf16)
        cross_k_ref[0] = k
        cross_v_ref[0] = v
        for h in range(H):
            k_cross_sc[h] = k[:, h * D:(h + 1) * D]
            v_cross_sc[h] = v[:, h * D:(h + 1) * D]

    row0 = qt * tq                              # global row index of this query tile
    x = hs_tile_ref[0]                          # (tq, E) f32 residual / Q input
    self_pad = self_pad_ref[0, 0]               # (1, T) additive key-padding
    cross_pad = cross_pad_ref[0, 0]             # (1, S)

    def split_heads(y_bf):                      # (tq, E) bf16 -> (H, tq, D)
        return jnp.concatenate(
            [y_bf[:, h * D:(h + 1) * D].reshape(1, tq, D) for h in range(H)], axis=0)

    def mha(q2d, k_sc, v_sc, n_keys, tk, pad_row, use_causal):
        # q2d (tq, E) f32; k_sc/v_sc (H, n_keys, D) bf16 scratch.
        # Flash-style online softmax over key tiles -> live VMEM bounded by H*tq*tk.
        qh = split_heads(q2d.astype(bf16))                               # (H, tq, D)
        m = jnp.full((H, tq, 1), _NEG_INIT, f32)
        l = jnp.zeros((H, tq, 1), f32)
        acc = jnp.zeros((H, tq, D), f32)
        for j in range(n_keys // tk):
            kb = k_sc[:, j * tk:(j + 1) * tk, :]                         # (H, tk, D)
            vb = v_sc[:, j * tk:(j + 1) * tk, :]
            s = jnp.einsum('hqd,hkd->hqk', qh, kb,
                           preferred_element_type=f32)                   # (H, tq, tk)
            s = s + pad_row[:, j * tk:(j + 1) * tk].reshape(1, 1, tk)
            if use_causal:
                rows = row0 + jax.lax.broadcasted_iota(jnp.int32, (tq, tk), 0)
                cols = j * tk + jax.lax.broadcasted_iota(jnp.int32, (tq, tk), 1)
                s = s + jnp.where(cols <= rows, 0.0, _MASK_VAL).reshape(1, tq, tk)
            m_new = jnp.maximum(m, jnp.max(s, axis=-1, keepdims=True))
            alpha = jnp.exp(m - m_new)
            p = jnp.exp(s - m_new)
            l = alpha * l + jnp.sum(p, axis=-1, keepdims=True)
            acc = alpha * acc + jnp.einsum('hqk,hkd->hqd', p.astype(bf16), vb,
                                           preferred_element_type=f32)
            m = m_new
        # EUP reciprocal (approx) frees VALU slots; floor guards fully-masked rows
        # (near-uniform row instead of PyTorch's NaN) - documented deviation.
        ctx = acc * pl.reciprocal(jnp.maximum(l, 1e-30), approx=True)    # (H, tq, D)
        return jnp.concatenate([ctx[h] for h in range(H)], axis=-1)      # (tq, E) f32

    # ---------------- self-attention (1/sqrt(D) folded into Wq/bq) -----------------
    q = jnp.dot(x.astype(bf16), s_q_w[...], preferred_element_type=f32) + s_q_b[...]
    ctx = mha(q, k_self_sc, v_self_sc, T, kt_self, self_pad, causal)
    attn = jnp.dot(ctx.astype(bf16), s_o_w[...], preferred_element_type=f32) + s_o_b[...]
    h1 = _layernorm(x + attn, ln1_g[...], ln1_b[...])

    # ---------------- cross-attention ----------------------------------------------
    q = jnp.dot(h1.astype(bf16), c_q_w[...], preferred_element_type=f32) + c_q_b[...]
    ctx = mha(q, k_cross_sc, v_cross_sc, S, kt_cross, cross_pad, False)
    attn = jnp.dot(ctx.astype(bf16), c_o_w[...], preferred_element_type=f32) + c_o_b[...]
    h2 = _layernorm(h1 + attn, ln2_g[...], ln2_b[...])

    # ---------------- feed-forward, tiled over the FFN hidden dim ------------------
    FFN = fc1_w.shape[1]
    x_bf = h2.astype(bf16)
    ff = jnp.zeros((tq, E), f32)
    for j in range(FFN // ffn_tile):
        w1 = fc1_w[:, j * ffn_tile:(j + 1) * ffn_tile]                   # (E, tf) bf16
        b1 = fc1_b[:, j * ffn_tile:(j + 1) * ffn_tile]                   # (1, tf) f32
        hblk = _gelu(jnp.dot(x_bf, w1, preferred_element_type=f32) + b1)
        w2 = fc2_w[j * ffn_tile:(j + 1) * ffn_tile, :]                   # (tf, E) bf16
        ff = ff + jnp.dot(hblk.astype(bf16), w2, preferred_element_type=f32)
    ff = ff + fc2_b[...]
    out_ref[0] = _layernorm(h2 + ff, lnf_g[...], lnf_b[...]).astype(out_ref.dtype)


def _pick_tile(n, target):
    """Largest divisor of n that is <= target."""
    t = max(1, min(n, target))
    while n % t:
        t -= 1
    return t


def decoder_layer(hs, enc_hs, self_key_padding, cross_key_padding, params, num_heads,
                  *, causal=True, q_tile=None, key_tile=None, ffn_tile=None):
    B, T, E = hs.shape
    S = enc_hs.shape[1]
    assert E % num_heads == 0
    D = E // num_heads
    scaling = D ** -0.5
    f32, bf16 = jnp.float32, jnp.bfloat16

    (sq_w, sq_b, sk_w, sk_b, sv_w, sv_b, so_w, so_b,
     ln1_g, ln1_b,
     cq_w, cq_b, ck_w, ck_b, cv_w, cv_b, co_w, co_b,
     ln2_g, ln2_b,
     fc1_w, fc1_b, fc2_w, fc2_b,
     lnf_g, lnf_b) = params
    FFN = fc1_w.shape[1]

    tq = _pick_tile(T, q_tile or 256)
    if tq % 8 != 0 and tq != T:          # keep the (8, 128) sublane rule happy
        tq = T
    tk_s = _pick_tile(T, key_tile or 512)
    tk_c = _pick_tile(S, key_tile or 512)
    tf = _pick_tile(FFN, ffn_tile or 512)

    # 1/sqrt(head_dim) folded into the Q projection; K|V fused into one (E, 2E) weight.
    # Matmul weights stored bf16 (halves resident-weight VMEM, MXU-native); biases and
    # LayerNorm params stay f32.
    fused = [
        (sq_w * scaling).astype(bf16), (sq_b * scaling).astype(f32),
        jnp.concatenate([sk_w, sv_w], axis=1).astype(bf16),
        jnp.concatenate([sk_b, sv_b], axis=1).astype(f32),
        so_w.astype(bf16), so_b.astype(f32),
        ln1_g.astype(f32), ln1_b.astype(f32),
        (cq_w * scaling).astype(bf16), (cq_b * scaling).astype(f32),
        jnp.concatenate([ck_w, cv_w], axis=1).astype(bf16),
        jnp.concatenate([ck_b, cv_b], axis=1).astype(f32),
        co_w.astype(bf16), co_b.astype(f32),
        ln2_g.astype(f32), ln2_b.astype(f32),
        fc1_w.astype(bf16), fc1_b.astype(f32),
        fc2_w.astype(bf16), fc2_b.astype(f32),
        lnf_g.astype(f32), lnf_b.astype(f32),
    ]

    kernel = functools.partial(
        decoder_layer_kernel, num_heads, tq, tk_s, tk_c, tf, bool(causal))

    def resident(p):
        # Full-array block + constant index map -> stays resident in VMEM across grid.
        # TODO(synk): pipeline_mode=pl.Buffered(1) would drop the redundant second
        #             weight buffer; left at default for portability.
        return pl.BlockSpec(p.shape, lambda b, q, nd=p.ndim: (0,) * nd)

    in_specs = [
        pl.BlockSpec((1, T, E), lambda b, q: (b, 0, 0)),        # full hidden (K/V proj)
        pl.BlockSpec((1, tq, E), lambda b, q: (b, q, 0)),       # per-q-tile hidden
        pl.BlockSpec((1, S, E), lambda b, q: (b, 0, 0)),        # encoder hidden
        pl.BlockSpec((1, 1, 1, T), lambda b, q: (b, 0, 0, 0)),  # self key-padding mask
        pl.BlockSpec((1, 1, 1, S), lambda b, q: (b, 0, 0, 0)),  # cross key-padding mask
    ] + [resident(p) for p in fused]

    out_specs = (
        pl.BlockSpec((1, tq, E), lambda b, q: (b, q, 0)),       # last_hidden_states
        pl.BlockSpec((1, T, E), lambda b, q: (b, 0, 0)),        # self K (flat bf16)
        pl.BlockSpec((1, T, E), lambda b, q: (b, 0, 0)),        # self V
        pl.BlockSpec((1, S, E), lambda b, q: (b, 0, 0)),        # cross K
        pl.BlockSpec((1, S, E), lambda b, q: (b, 0, 0)),        # cross V
    )
    out_shapes = (
        jax.ShapeDtypeStruct((B, T, E), f32),
        jax.ShapeDtypeStruct((B, T, E), bf16),
        jax.ShapeDtypeStruct((B, T, E), bf16),
        jax.ShapeDtypeStruct((B, S, E), bf16),
        jax.ShapeDtypeStruct((B, S, E), bf16),
    )
    scratch_shapes = [
        pltpu.VMEM((num_heads, T, D), bf16),    # self K, head-split, per-batch cache
        pltpu.VMEM((num_heads, T, D), bf16),    # self V
        pltpu.VMEM((num_heads, S, D), bf16),    # cross K
        pltpu.VMEM((num_heads, S, D), bf16),    # cross V
    ]

    # VMEM budget: footprint + headroom, capped at ~85% of this chip's physical VMEM
    # (~54 MiB on v7x, ~108 MiB on v5e/v6e) so the compiler keeps internal scratch room.
    try:
        phys_vmem = int(pltpu.get_tpu_info().vmem_capacity_bytes)
    except Exception:
        phys_vmem = 64 << 20
    ceiling = int(phys_vmem * 0.85)
    weight_bytes = sum(int(p.size) * p.dtype.itemsize for p in fused)
    block_bytes = (4 * (T * E + tq * E + S * E + T + S)       # input blocks
                   + 4 * tq * E + 2 * 2 * (T + S) * E)        # output blocks
    scratch_bytes = 2 * 2 * (T + S) * E                       # bf16 head-split K/V
    live_bytes = 4 * (num_heads * tq * (max(tk_s, tk_c) + D) * 2 + tq * max(E, tf) * 6)
    need = 2 * weight_bytes + 2 * block_bytes + scratch_bytes + live_bytes + (8 << 20)
    vmem_limit = max(32 << 20, min(ceiling, need))

    flops = (2 * B * (6 * T + 2 * S) * E * E                  # q/k/v/out projections
             + 4 * B * T * FFN * E                            # fc1 + fc2
             + 4 * B * T * (T + S) * E)                       # scores + context
    transcendentals = B * num_heads * T * (T + S) + B * T * FFN + 6 * B * T
    bytes_accessed = ((2 * int(hs.size) + int(enc_hs.size)
                       + int(self_key_padding.size) + int(cross_key_padding.size)
                       + B * T * E) * 4
                      + weight_bytes + 2 * 2 * B * (T + S) * E)

    out, sk, sv, ck, cv = pl.pallas_call(
        kernel,
        out_shape=out_shapes,
        grid=(B, T // tq),
        in_specs=in_specs,
        out_specs=out_specs,
        scratch_shapes=scratch_shapes,
        compiler_params=pltpu.CompilerParams(
            dimension_semantics=("parallel", "arbitrary"),
            vmem_limit_bytes=int(vmem_limit),
        ),
        cost_estimate=pl.CostEstimate(
            flops=int(flops),
            transcendentals=int(transcendentals),
            bytes_accessed=int(bytes_accessed),
        ),
    )(hs, hs, enc_hs, self_key_padding, cross_key_padding, *fused)

    # present_key_value in the PyTorch layout (B, H, seq, head_dim), bf16 cache dtype.
    # TODO(synk): fuse this relayout into the KV-cache consumer / next layer instead of
    #             paying an extra HBM pass here.
    def to_heads(t):
        L = t.shape[1]
        return t.reshape(B, L, num_heads, D).transpose(0, 2, 1, 3)

    present_key_value = (to_heads(sk), to_heads(sv), to_heads(ck), to_heads(cv))
    return out, present_key_value


def init_params(key, E, FFN, init_std=0.02):
    ks = jax.random.split(key, 10)

    def w(k, shape):
        return init_std * jax.random.normal(k, shape, jnp.float32)

    zeros = lambda n: jnp.zeros((1, n), jnp.float32)
    ones = lambda n: jnp.ones((1, n), jnp.float32)

    params = [
        w(ks[0], (E, E)), zeros(E),       # self_attn q_proj  ([in, out] layout)
        w(ks[1], (E, E)), zeros(E),       # self_attn k_proj
        w(ks[2], (E, E)), zeros(E),       # self_attn v_proj
        w(ks[3], (E, E)), zeros(E),       # self_attn out_proj
        ones(E), zeros(E),                # self_attn_layer_norm
        w(ks[4], (E, E)), zeros(E),       # cross_attn q_proj
        w(ks[5], (E, E)), zeros(E),       # cross_attn k_proj
        w(ks[6], (E, E)), zeros(E),       # cross_attn v_proj
        w(ks[7], (E, E)), zeros(E),       # cross_attn out_proj
        ones(E), zeros(E),                # cross_attn_layer_norm
        w(ks[8], (E, FFN)), zeros(FFN),   # fc1
        w(ks[9], (FFN, E)), zeros(E),     # fc2
        ones(E), zeros(E),                # final_layer_norm
    ]
    return params


if __name__ == "__main__":
    B, T, S, E, H, FFN = 2, 16, 16, 32, 8, 64

    key = jax.random.PRNGKey(0)
    k_hs, k_enc, k_par = jax.random.split(key, 3)

    hs = jax.random.normal(k_hs, (B, T, E), jnp.float32)
    enc_hs = jax.random.normal(k_enc, (B, S, E), jnp.float32)

    # Causal structure is generated in-kernel; pass zero additive key-padding masks
    # (equivalent to the original causal (B,1,T,T) mask + zero cross mask).
    self_pad = jnp.zeros((B, 1, 1, T), jnp.float32)
    cross_pad = jnp.zeros((B, 1, 1, S), jnp.float32)

    params = init_params(k_par, E, FFN, init_std=0.02)

    # Small tiles so the q-tile / key-tile / FFN-tile code paths are all exercised.
    out, present_kv = decoder_layer(
        hs, enc_hs, self_pad, cross_pad, params, num_heads=H,
        causal=True, q_tile=8, key_tile=8, ffn_tile=32)
    jax.block_until_ready(out)
    jax.block_until_ready(present_kv)
    # TODO(synk): dropout layers (p=0.1) are training-mode only; eval-mode identity here.
    print("KERNEL_OK")
</pallas_src>

<mosaic_0001>
module attributes {stable_mosaic.version = 11 : i64} {
  func.func @decoder_layer_kernel(%arg0: i32, %arg1: i32, %arg2: memref<1x16x32xf32, #tpu.memory_space<vmem>>, %arg3: memref<1x8x32xf32, #tpu.memory_space<vmem>>, %arg4: memref<1x16x32xf32, #tpu.memory_space<vmem>>, %arg5: memref<1x1x1x16xf32, #tpu.memory_space<vmem>>, %arg6: memref<1x1x1x16xf32, #tpu.memory_space<vmem>>, %arg7: memref<32x32xbf16, #tpu.memory_space<vmem>>, %arg8: memref<1x32xf32, #tpu.memory_space<vmem>>, %arg9: memref<32x64xbf16, #tpu.memory_space<vmem>>, %arg10: memref<1x64xf32, #tpu.memory_space<vmem>>, %arg11: memref<32x32xbf16, #tpu.memory_space<vmem>>, %arg12: memref<1x32xf32, #tpu.memory_space<vmem>>, %arg13: memref<1x32xf32, #tpu.memory_space<vmem>>, %arg14: memref<1x32xf32, #tpu.memory_space<vmem>>, %arg15: memref<32x32xbf16, #tpu.memory_space<vmem>>, %arg16: memref<1x32xf32, #tpu.memory_space<vmem>>, %arg17: memref<32x64xbf16, #tpu.memory_space<vmem>>, %arg18: memref<1x64xf32, #tpu.memory_space<vmem>>, %arg19: memref<32x32xbf16, #tpu.memory_space<vmem>>, %arg20: memref<1x32xf32, #tpu.memory_space<vmem>>, %arg21: memref<1x32xf32, #tpu.memory_space<vmem>>, %arg22: memref<1x32xf32, #tpu.memory_space<vmem>>, %arg23: memref<32x64xbf16, #tpu.memory_space<vmem>>, %arg24: memref<1x64xf32, #tpu.memory_space<vmem>>, %arg25: memref<64x32xbf16, #tpu.memory_space<vmem>>, %arg26: memref<1x32xf32, #tpu.memory_space<vmem>>, %arg27: memref<1x32xf32, #tpu.memory_space<vmem>>, %arg28: memref<1x32xf32, #tpu.memory_space<vmem>>, %arg29: memref<1x8x32xf32, #tpu.memory_space<vmem>>, %arg30: memref<1x16x32xbf16, #tpu.memory_space<vmem>>, %arg31: memref<1x16x32xbf16, #tpu.memory_space<vmem>>, %arg32: memref<1x16x32xbf16, #tpu.memory_space<vmem>>, %arg33: memref<1x16x32xbf16, #tpu.memory_space<vmem>>, %arg34: memref<8x16x4xbf16, #tpu.memory_space<vmem>>, %arg35: memref<8x16x4xbf16, #tpu.memory_space<vmem>>, %arg36: memref<8x16x4xbf16, #tpu.memory_space<vmem>>, %arg37: memref<8x16x4xbf16, #tpu.memory_space<vmem>>) attributes {dimension_semantics = [#tpu.dimension_semantics<parallel>, #tpu.dimension_semantics<arbitrary>], iteration_bounds = array<i64: 2, 2>, scalar_prefetch = 0 : i64, scratch_operands = 4 : i64, tpu.core_type = #tpu.core_type<tc>, window_params = [{transform_indices = @transform_0, window_bounds = array<i64: 1, 16, 32>}, {transform_indices = @transform_1, window_bounds = array<i64: 1, 8, 32>}, {transform_indices = @transform_2, window_bounds = array<i64: 1, 16, 32>}, {transform_indices = @transform_3, window_bounds = array<i64: 1, 1, 1, 16>}, {transform_indices = @transform_4, window_bounds = array<i64: 1, 1, 1, 16>}, {pipeline_mode = #tpu.pipeline_mode<synchronous>, transform_indices = @transform_5, window_bounds = array<i64: 32, 32>}, {pipeline_mode = #tpu.pipeline_mode<synchronous>, transform_indices = @transform_6, window_bounds = array<i64: 1, 32>}, {pipeline_mode = #tpu.pipeline_mode<synchronous>, transform_indices = @transform_7, window_bounds = array<i64: 32, 64>}, {pipeline_mode = #tpu.pipeline_mode<synchronous>, transform_indices = @transform_8, window_bounds = array<i64: 1, 64>}, {pipeline_mode = #tpu.pipeline_mode<synchronous>, transform_indices = @transform_9, window_bounds = array<i64: 32, 32>}, {pipeline_mode = #tpu.pipeline_mode<synchronous>, transform_indices = @transform_10, window_bounds = array<i64: 1, 32>}, {pipeline_mode = #tpu.pipeline_mode<synchronous>, transform_indices = @transform_11, window_bounds = array<i64: 1, 32>}, {pipeline_mode = #tpu.pipeline_mode<synchronous>, transform_indices = @transform_12, window_bounds = array<i64: 1, 32>}, {pipeline_mode = #tpu.pipeline_mode<synchronous>, transform_indices = @transform_13, window_bounds = array<i64: 32, 32>}, {pipeline_mode = #tpu.pipeline_mode<synchronous>, transform_indices = @transform_14, window_bounds = array<i64: 1, 32>}, {pipeline_mode = #tpu.pipeline_mode<synchronous>, transform_indices = @transform_15, window_bounds = array<i64: 32, 64>}, {pipeline_mode = #tpu.pipeline_mode<synchronous>, transform_indices = @transform_16, window_bounds = array<i64: 1, 64>}, {pipeline_mode = #tpu.pipeline_mode<synchronous>, transform_indices = @transform_17, window_bounds = array<i64: 32, 32>}, {pipeline_mode = #tpu.pipeline_mode<synchronous>, transform_indices = @transform_18, window_bounds = array<i64: 1, 32>}, {pipeline_mode = #tpu.pipeline_mode<synchronous>, transform_indices = @transform_19, window_bounds = array<i64: 1, 32>}, {pipeline_mode = #tpu.pipeline_mode<synchronous>, transform_indices = @transform_20, window_bounds = array<i64: 1, 32>}, {pipeline_mode = #tpu.pipeline_mode<synchronous>, transform_indices = @transform_21, window_bounds = array<i64: 32, 64>}, {pipeline_mode = #tpu.pipeline_mode<synchronous>, transform_indices = @transform_22, window_bounds = array<i64: 1, 64>}, {pipeline_mode = #tpu.pipeline_mode<synchronous>, transform_indices = @transform_23, window_bounds = array<i64: 64, 32>}, {pipeline_mode = #tpu.pipeline_mode<synchronous>, transform_indices = @transform_24, window_bounds = array<i64: 1, 32>}, {pipeline_mode = #tpu.pipeline_mode<synchronous>, transform_indices = @transform_25, window_bounds = array<i64: 1, 32>}, {pipeline_mode = #tpu.pipeline_mode<synchronous>, transform_indices = @transform_26, window_bounds = array<i64: 1, 32>}, {transform_indices = @transform_27, window_bounds = array<i64: 1, 8, 32>}, {transform_indices = @transform_28, window_bounds = array<i64: 1, 16, 32>}, {transform_indices = @transform_29, window_bounds = array<i64: 1, 16, 32>}, {transform_indices = @transform_30, window_bounds = array<i64: 1, 16, 32>}, {transform_indices = @transform_31, window_bounds = array<i64: 1, 16, 32>}]} {
    %c0_i32 = arith.constant 0 : i32
    %0 = arith.cmpi eq, %arg1, %c0_i32 : i32
    %1 = arith.extui %0 : i1 to i32
    %c0_i32_0 = arith.constant 0 : i32
    %2 = arith.cmpi ne, %1, %c0_i32_0 : i32
    scf.if %2 {
      %c0_139 = arith.constant 0 : index
      %c0_140 = arith.constant 0 : index
      %c0_141 = arith.constant 0 : index
      %369 = vector.load %arg2[%c0_139, %c0_140, %c0_141] : memref<1x16x32xf32, #tpu.memory_space<vmem>>, vector<1x16x32xf32>
      %370 = vector.shape_cast %369 : vector<1x16x32xf32> to vector<16x32xf32>
      %371 = arith.truncf %370 : vector<16x32xf32> to vector<16x32xbf16>
      %c0_142 = arith.constant 0 : index
      %c0_143 = arith.constant 0 : index
      %372 = vector.load %arg9[%c0_142, %c0_143] : memref<32x64xbf16, #tpu.memory_space<vmem>>, vector<32x64xbf16>
      %cst_144 = arith.constant dense<0.000000e+00> : vector<16x64xf32>
      %373 = tpu.matmul %371, %372, %cst_144 {dimension_numbers = #tpu.dot_dimension_numbers<[1], [0], [0], [1], [0, 0, 1, 1], [], []>} : vector<16x32xbf16>, vector<32x64xbf16>, vector<16x64xf32> -> vector<16x64xf32>
      %c0_145 = arith.constant 0 : index
      %c0_146 = arith.constant 0 : index
      %374 = vector.load %arg10[%c0_145, %c0_146] : memref<1x64xf32, #tpu.memory_space<vmem>>, vector<1x64xf32>
      %375 = vector.broadcast %374 : vector<1x64xf32> to vector<16x64xf32>
      %376 = arith.addf %373, %375 : vector<16x64xf32>
      %377 = vector.extract_strided_slice %376 {offsets = [0, 0], sizes = [16, 32], strides = [1, 1]} : vector<16x64xf32> to vector<16x32xf32>
      %378 = arith.truncf %377 : vector<16x32xf32> to vector<16x32xbf16>
      %379 = vector.extract_strided_slice %376 {offsets = [0, 32], sizes = [16, 32], strides = [1, 1]} : vector<16x64xf32> to vector<16x32xf32>
      %380 = arith.truncf %379 : vector<16x32xf32> to vector<16x32xbf16>
      %c0_147 = arith.constant 0 : index
      %c0_148 = arith.constant 0 : index
      %c0_149 = arith.constant 0 : index
      %381 = vector.load %arg30[%c0_147, %c0_148, %c0_149] : memref<1x16x32xbf16, #tpu.memory_space<vmem>>, vector<1x16x32xbf16>
      %382 = vector.shape_cast %381 : vector<1x16x32xbf16> to vector<16x32xbf16>
      %383 = vector.shape_cast %378 : vector<16x32xbf16> to vector<1x16x32xbf16>
      tpu.vector_store %arg30[%c0_147, %c0_148, %c0_149], %383 {strides = array<i32>} : memref<1x16x32xbf16, #tpu.memory_space<vmem>>, vector<1x16x32xbf16>,
      %c0_150 = arith.constant 0 : index
      %c0_151 = arith.constant 0 : index
      %c0_152 = arith.constant 0 : index
      %384 = vector.load %arg31[%c0_150, %c0_151, %c0_152] : memref<1x16x32xbf16, #tpu.memory_space<vmem>>, vector<1x16x32xbf16>
      %385 = vector.shape_cast %384 : vector<1x16x32xbf16> to vector<16x32xbf16>
      %386 = vector.shape_cast %380 : vector<16x32xbf16> to vector<1x16x32xbf16>
      tpu.vector_store %arg31[%c0_150, %c0_151, %c0_152], %386 {strides = array<i32>} : memref<1x16x32xbf16, #tpu.memory_space<vmem>>, vector<1x16x32xbf16>,
      %387 = vector.extract_strided_slice %378 {offsets = [0, 0], sizes = [16, 4], strides = [1, 1]} : vector<16x32xbf16> to vector<16x4xbf16>
      %c0_153 = arith.constant 0 : index
      %c0_154 = arith.constant 0 : index
      %c0_155 = arith.constant 0 : index
      %388 = vector.load %arg34[%c0_153, %c0_154, %c0_155] : memref<8x16x4xbf16, #tpu.memory_space<vmem>>, vector<1x16x4xbf16>
      %389 = vector.shape_cast %388 : vector<1x16x4xbf16> to vector<16x4xbf16>
      %390 = vector.shape_cast %387 : vector<16x4xbf16> to vector<1x16x4xbf16>
      tpu.vector_store %arg34[%c0_153, %c0_154, %c0_155], %390 {strides = array<i32>} : memref<8x16x4xbf16, #tpu.memory_space<vmem>>, vector<1x16x4xbf16>,
      %391 = vector.extract_strided_slice %380 {offsets = [0, 0], sizes = [16, 4], strides = [1, 1]} : vector<16x32xbf16> to vector<16x4xbf16>
      %c0_156 = arith.constant 0 : index
      %c0_157 = arith.constant 0 : index
      %c0_158 = arith.constant 0 : index
      %392 = vector.load %arg35[%c0_156, %c0_157, %c0_158] : memref<8x16x4xbf16, #tpu.memory_space<vmem>>, vector<1x16x4xbf16>
      %393 = vector.shape_cast %392 : vector<1x16x4xbf16> to vector<16x4xbf16>
      %394 = vector.shape_cast %391 : vector<16x4xbf16> to vector<1x16x4xbf16>
      tpu.vector_store %arg35[%c0_156, %c0_157, %c0_158], %394 {strides = array<i32>} : memref<8x16x4xbf16, #tpu.memory_space<vmem>>, vector<1x16x4xbf16>,
      %395 = vector.extract_strided_slice %378 {offsets = [0, 4], sizes = [16, 4], strides = [1, 1]} : vector<16x32xbf16> to vector<16x4xbf16>
      %c1 = arith.constant 1 : index
      %c0_159 = arith.constant 0 : index
      %c0_160 = arith.constant 0 : index
      %396 = vector.load %arg34[%c1, %c0_159, %c0_160] : memref<8x16x4xbf16, #tpu.memory_space<vmem>>, vector<1x16x4xbf16>
      %397 = vector.shape_cast %396 : vector<1x16x4xbf16> to vector<16x4xbf16>
      %398 = vector.shape_cast %395 : vector<16x4xbf16> to vector<1x16x4xbf16>
      tpu.vector_store %arg34[%c1, %c0_159, %c0_160], %398 {strides = array<i32>} : memref<8x16x4xbf16, #tpu.memory_space<vmem>>, vector<1x16x4xbf16>,
      %399 = vector.extract_strided_slice %380 {offsets = [0, 4], sizes = [16, 4], strides = [1, 1]} : vector<16x32xbf16> to vector<16x4xbf16>
      %c1_161 = arith.constant 1 : index
      %c0_162 = arith.constant 0 : index
      %c0_163 = arith.constant 0 : index
      %400 = vector.load %arg35[%c1_161, %c0_162, %c0_163] : memref<8x16x4xbf16, #tpu.memory_space<vmem>>, vector<1x16x4xbf16>
      %401 = vector.shape_cast %400 : vector<1x16x4xbf16> to vector<16x4xbf16>
      %402 = vector.shape_cast %399 : vector<16x4xbf16> to vector<1x16x4xbf16>
      tpu.vector_store %arg35[%c1_161, %c0_162, %c0_163], %402 {strides = array<i32>} : memref<8x16x4xbf16, #tpu.memory_space<vmem>>, vector<1x16x4xbf16>,
      %403 = vector.extract_strided_slice %378 {offsets = [0, 8], sizes = [16, 4], strides = [1, 1]} : vector<16x32xbf16> to vector<16x4xbf16>
      %c2 = arith.constant 2 : index
      %c0_164 = arith.constant 0 : index
      %c0_165 = arith.constant 0 : index
      %404 = vector.load %arg34[%c2, %c0_164, %c0_165] : memref<8x16x4xbf16, #tpu.memory_space<vmem>>, vector<1x16x4xbf16>
      %405 = vector.shape_cast %404 : vector<1x16x4xbf16> to vector<16x4xbf16>
      %406 = vector.shape_cast %403 : vector<16x4xbf16> to vector<1x16x4xbf16>
      tpu.vector_store %arg34[%c2, %c0_164, %c0_165], %406 {strides = array<i32>} : memref<8x16x4xbf16, #tpu.memory_space<vmem>>, vector<1x16x4xbf16>,
      %407 = vector.extract_strided_slice %380 {offsets = [0, 8], sizes = [16, 4], strides = [1, 1]} : vector<16x32xbf16> to vector<16x4xbf16>
      %c2_166 = arith.constant 2 : index
      %c0_167 = arith.constant 0 : index
      %c0_168 = arith.constant 0 : index
      %408 = vector.load %arg35[%c2_166, %c0_167, %c0_168] : memref<8x16x4xbf16, #tpu.memory_space<vmem>>, vector<1x16x4xbf16>
      %409 = vector.shape_cast %408 : vector<1x16x4xbf16> to vector<16x4xbf16>
      %410 = vector.shape_cast %407 : vector<16x4xbf16> to vector<1x16x4xbf16>
      tpu.vector_store %arg35[%c2_166, %c0_167, %c0_168], %410 {strides = array<i32>} : memref<8x16x4xbf16, #tpu.memory_space<vmem>>, vector<1x16x4xbf16>,
      %411 = vector.extract_strided_slice %378 {offsets = [0, 12], sizes = [16, 4], strides = [1, 1]} : vector<16x32xbf16> to vector<16x4xbf16>
      %c3 = arith.constant 3 : index
      %c0_169 = arith.constant 0 : index
      %c0_170 = arith.constant 0 : index
      %412 = vector.load %arg34[%c3, %c0_169, %c0_170] : memref<8x16x4xbf16, #tpu.memory_space<vmem>>, vector<1x16x4xbf16>
      %413 = vector.shape_cast %412 : vector<1x16x4xbf16> to vector<16x4xbf16>
      %414 = vector.shape_cast %411 : vector<16x4xbf16> to vector<1x16x4xbf16>
      tpu.vector_store %arg34[%c3, %c0_169, %c0_170], %414 {strides = array<i32>} : memref<8x16x4xbf16, #tpu.memory_space<vmem>>, vector<1x16x4xbf16>,
      %415 = vector.extract_strided_slice %380 {offsets = [0, 12], sizes = [16, 4], strides = [1, 1]} : vector<16x32xbf16> to vector<16x4xbf16>
      %c3_171 = arith.constant 3 : index
      %c0_172 = arith.constant 0 : index
      %c0_173 = arith.constant 0 : index
      %416 = vector.load %arg35[%c3_171, %c0_172, %c0_173] : memref<8x16x4xbf16, #tpu.memory_space<vmem>>, vector<1x16x4xbf16>
      %417 = vector.shape_cast %416 : vector<1x16x4xbf16> to vector<16x4xbf16>
      %418 = vector.shape_cast %415 : vector<16x4xbf16> to vector<1x16x4xbf16>
      tpu.vector_store %arg35[%c3_171, %c0_172, %c0_173], %418 {strides = array<i32>} : memref<8x16x4xbf16, #tpu.memory_space<vmem>>, vector<1x16x4xbf16>,
      %419 = vector.extract_strided_slice %378 {offsets = [0, 16], sizes = [16, 4], strides = [1, 1]} : vector<16x32xbf16> to vector<16x4xbf16>
      %c4 = arith.constant 4 : index
      %c0_174 = arith.constant 0 : index
      %c0_175 = arith.constant 0 : index
      %420 = vector.load %arg34[%c4, %c0_174, %c0_175] : memref<8x16x4xbf16, #tpu.memory_space<vmem>>, vector<1x16x4xbf16>
      %421 = vector.shape_cast %420 : vector<1x16x4xbf16> to vector<16x4xbf16>
      %422 = vector.shape_cast %419 : vector<16x4xbf16> to vector<1x16x4xbf16>
      tpu.vector_store %arg34[%c4, %c0_174, %c0_175], %422 {strides = array<i32>} : memref<8x16x4xbf16, #tpu.memory_space<vmem>>, vector<1x16x4xbf16>,
      %423 = vector.extract_strided_slice %380 {offsets = [0, 16], sizes = [16, 4], strides = [1, 1]} : vector<16x32xbf16> to vector<16x4xbf16>
      %c4_176 = arith.constant 4 : index
      %c0_177 = arith.constant 0 : index
      %c0_178 = arith.constant 0 : index
      %424 = vector.load %arg35[%c4_176, %c0_177, %c0_178] : memref<8x16x4xbf16, #tpu.memory_space<vmem>>, vector<1x16x4xbf16>
      %425 = vector.shape_cast %424 : vector<1x16x4xbf16> to vector<16x4xbf16>
      %426 = vector.shape_cast %423 : vector<16x4xbf16> to vector<1x16x4xbf16>
      tpu.vector_store %arg35[%c4_176, %c0_177, %c0_178], %426 {strides = array<i32>} : memref<8x16x4xbf16, #tpu.memory_space<vmem>>, vector<1x16x4xbf16>,
      %427 = vector.extract_strided_slice %378 {offsets = [0, 20], sizes = [16, 4], strides = [1, 1]} : vector<16x32xbf16> to vector<16x4xbf16>
      %c5 = arith.constant 5 : index
      %c0_179 = arith.constant 0 : index
      %c0_180 = arith.constant 0 : index
      %428 = vector.load %arg34[%c5, %c0_179, %c0_180] : memref<8x16x4xbf16, #tpu.memory_space<vmem>>, vector<1x16x4xbf16>
      %429 = vector.shape_cast %428 : vector<1x16x4xbf16> to vector<16x4xbf16>
      %430 = vector.shape_cast %427 : vector<16x4xbf16> to vector<1x16x4xbf16>
      tpu.vector_store %arg34[%c5, %c0_179, %c0_180], %430 {strides = array<i32>} : memref<8x16x4xbf16, #tpu.memory_space<vmem>>, vector<1x16x4xbf16>,
      %431 = vector.extract_strided_slice %380 {offsets = [0, 20], sizes = [16, 4], strides = [1, 1]} : vector<16x32xbf16> to vector<16x4xbf16>
      %c5_181 = arith.constant 5 : index
      %c0_182 = arith.constant 0 : index
      %c0_183 = arith.constant 0 : index
      %432 = vector.load %arg35[%c5_181, %c0_182, %c0_183] : memref<8x16x4xbf16, #tpu.memory_space<vmem>>, vector<1x16x4xbf16>
      %433 = vector.shape_cast %432 : vector<1x16x4xbf16> to vector<16x4xbf16>
      %434 = vector.shape_cast %431 : vector<16x4xbf16> to vector<1x16x4xbf16>
      tpu.vector_store %arg35[%c5_181, %c0_182, %c0_183], %434 {strides = array<i32>} : memref<8x16x4xbf16, #tpu.memory_space<vmem>>, vector<1x16x4xbf16>,
      %435 = vector.extract_strided_slice %378 {offsets = [0, 24], sizes = [16, 4], strides = [1, 1]} : vector<16x32xbf16> to vector<16x4xbf16>
      %c6 = arith.constant 6 : index
      %c0_184 = arith.constant 0 : index
      %c0_185 = arith.constant 0 : index
      %436 = vector.load %arg34[%c6, %c0_184, %c0_185] : memref<8x16x4xbf16, #tpu.memory_space<vmem>>, vector<1x16x4xbf16>
      %437 = vector.shape_cast %436 : vector<1x16x4xbf16> to vector<16x4xbf16>
      %438 = vector.shape_cast %435 : vector<16x4xbf16> to vector<1x16x4xbf16>
      tpu.vector_store %arg34[%c6, %c0_184, %c0_185], %438 {strides = array<i32>} : memref<8x16x4xbf16, #tpu.memory_space<vmem>>, vector<1x16x4xbf16>,
      %439 = vector.extract_strided_slice %380 {offsets = [0, 24], sizes = [16, 4], strides = [1, 1]} : vector<16x32xbf16> to vector<16x4xbf16>
      %c6_186 = arith.constant 6 : index
      %c0_187 = arith.constant 0 : index
      %c0_188 = arith.constant 0 : index
      %440 = vector.load %arg35[%c6_186, %c0_187, %c0_188] : memref<8x16x4xbf16, #tpu.memory_space<vmem>>, vector<1x16x4xbf16>
      %441 = vector.shape_cast %440 : vector<1x16x4xbf16> to vector<16x4xbf16>
      %442 = vector.shape_cast %439 : vector<16x4xbf16> to vector<1x16x4xbf16>
      tpu.vector_store %arg35[%c6_186, %c0_187, %c0_188], %442 {strides = array<i32>} : memref<8x16x4xbf16, #tpu.memory_space<vmem>>, vector<1x16x4xbf16>,
      %443 = vector.extract_strided_slice %378 {offsets = [0, 28], sizes = [16, 4], strides = [1, 1]} : vector<16x32xbf16> to vector<16x4xbf16>
      %c7 = arith.constant 7 : index
      %c0_189 = arith.constant 0 : index
      %c0_190 = arith.constant 0 : index
      %444 = vector.load %arg34[%c7, %c0_189, %c0_190] : memref<8x16x4xbf16, #tpu.memory_space<vmem>>, vector<1x16x4xbf16>
      %445 = vector.shape_cast %444 : vector<1x16x4xbf16> to vector<16x4xbf16>
      %446 = vector.shape_cast %443 : vector<16x4xbf16> to vector<1x16x4xbf16>
      tpu.vector_store %arg34[%c7, %c0_189, %c0_190], %446 {strides = array<i32>} : memref<8x16x4xbf16, #tpu.memory_space<vmem>>, vector<1x16x4xbf16>,
      %447 = vector.extract_strided_slice %380 {offsets = [0, 28], sizes = [16, 4], strides = [1, 1]} : vector<16x32xbf16> to vector<16x4xbf16>
      %c7_191 = arith.constant 7 : index
      %c0_192 = arith.constant 0 : index
      %c0_193 = arith.constant 0 : index
      %448 = vector.load %arg35[%c7_191, %c0_192, %c0_193] : memref<8x16x4xbf16, #tpu.memory_space<vmem>>, vector<1x16x4xbf16>
      %449 = vector.shape_cast %448 : vector<1x16x4xbf16> to vector<16x4xbf16>
      %450 = vector.shape_cast %447 : vector<16x4xbf16> to vector<1x16x4xbf16>
      tpu.vector_store %arg35[%c7_191, %c0_192, %c0_193], %450 {strides = array<i32>} : memref<8x16x4xbf16, #tpu.memory_space<vmem>>, vector<1x16x4xbf16>,
      %c0_194 = arith.constant 0 : index
      %c0_195 = arith.constant 0 : index
      %c0_196 = arith.constant 0 : index
      %451 = vector.load %arg4[%c0_194, %c0_195, %c0_196] : memref<1x16x32xf32, #tpu.memory_space<vmem>>, vector<1x16x32xf32>
      %452 = vector.shape_cast %451 : vector<1x16x32xf32> to vector<16x32xf32>
      %453 = arith.truncf %452 : vector<16x32xf32> to vector<16x32xbf16>
      %c0_197 = arith.constant 0 : index
      %c0_198 = arith.constant 0 : index
      %454 = vector.load %arg17[%c0_197, %c0_198] : memref<32x64xbf16, #tpu.memory_space<vmem>>, vector<32x64xbf16>
      %cst_199 = arith.constant dense<0.000000e+00> : vector<16x64xf32>
      %455 = tpu.matmul %453, %454, %cst_199 {dimension_numbers = #tpu.dot_dimension_numbers<[1], [0], [0], [1], [0, 0, 1, 1], [], []>} : vector<16x32xbf16>, vector<32x64xbf16>, vector<16x64xf32> -> vector<16x64xf32>
      %c0_200 = arith.constant 0 : index
      %c0_201 = arith.constant 0 : index
      %456 = vector.load %arg18[%c0_200, %c0_201] : memref<1x64xf32, #tpu.memory_space<vmem>>, vector<1x64xf32>
      %457 = vector.broadcast %456 : vector<1x64xf32> to vector<16x64xf32>
      %458 = arith.addf %455, %457 : vector<16x64xf32>
      %459 = vector.extract_strided_slice %458 {offsets = [0, 0], sizes = [16, 32], strides = [1, 1]} : vector<16x64xf32> to vector<16x32xf32>
      %460 = arith.truncf %459 : vector<16x32xf32> to vector<16x32xbf16>
      %461 = vector.extract_strided_slice %458 {offsets = [0, 32], sizes = [16, 32], strides = [1, 1]} : vector<16x64xf32> to vector<16x32xf32>
      %462 = arith.truncf %461 : vector<16x32xf32> to vector<16x32xbf16>
      %c0_202 = arith.constant 0 : index
      %c0_203 = arith.constant 0 : index
      %c0_204 = arith.constant 0 : index
      %463 = vector.load %arg32[%c0_202, %c0_203, %c0_204] : memref<1x16x32xbf16, #tpu.memory_space<vmem>>, vector<1x16x32xbf16>
      %464 = vector.shape_cast %463 : vector<1x16x32xbf16> to vector<16x32xbf16>
      %465 = vector.shape_cast %460 : vector<16x32xbf16> to vector<1x16x32xbf16>
      tpu.vector_store %arg32[%c0_202, %c0_203, %c0_204], %465 {strides = array<i32>} : memref<1x16x32xbf16, #tpu.memory_space<vmem>>, vector<1x16x32xbf16>,
      %c0_205 = arith.constant 0 : index
      %c0_206 = arith.constant 0 : index
      %c0_207 = arith.constant 0 : index
      %466 = vector.load %arg33[%c0_205, %c0_206, %c0_207] : memref<1x16x32xbf16, #tpu.memory_space<vmem>>, vector<1x16x32xbf16>
      %467 = vector.shape_cast %466 : vector<1x16x32xbf16> to vector<16x32xbf16>
      %468 = vector.shape_cast %462 : vector<16x32xbf16> to vector<1x16x32xbf16>
      tpu.vector_store %arg33[%c0_205, %c0_206, %c0_207], %468 {strides = array<i32>} : memref<1x16x32xbf16, #tpu.memory_space<vmem>>, vector<1x16x32xbf16>,
      %469 = vector.extract_strided_slice %460 {offsets = [0, 0], sizes = [16, 4], strides = [1, 1]} : vector<16x32xbf16> to vector<16x4xbf16>
      %c0_208 = arith.constant 0 : index
      %c0_209 = arith.constant 0 : index
      %c0_210 = arith.constant 0 : index
      %470 = vector.load %arg36[%c0_208, %c0_209, %c0_210] : memref<8x16x4xbf16, #tpu.memory_space<vmem>>, vector<1x16x4xbf16>
      %471 = vector.shape_cast %470 : vector<1x16x4xbf16> to vector<16x4xbf16>
      %472 = vector.shape_cast %469 : vector<16x4xbf16> to vector<1x16x4xbf16>
      tpu.vector_store %arg36[%c0_208, %c0_209, %c0_210], %472 {strides = array<i32>} : memref<8x16x4xbf16, #tpu.memory_space<vmem>>, vector<1x16x4xbf16>,
      %473 = vector.extract_strided_slice %462 {offsets = [0, 0], sizes = [16, 4], strides = [1, 1]} : vector<16x32xbf16> to vector<16x4xbf16>
      %c0_211 = arith.constant 0 : index
      %c0_212 = arith.constant 0 : index
      %c0_213 = arith.constant 0 : index
      %474 = vector.load %arg37[%c0_211, %c0_212, %c0_213] : memref<8x16x4xbf16, #tpu.memory_space<vmem>>, vector<1x16x4xbf16>
      %475 = vector.shape_cast %474 : vector<1x16x4xbf16> to vector<16x4xbf16>
      %476 = vector.shape_cast %473 : vector<16x4xbf16> to vector<1x16x4xbf16>
      tpu.vector_store %arg37[%c0_211, %c0_212, %c0_213], %476 {strides = array<i32>} : memref<8x16x4xbf16, #tpu.memory_space<vmem>>, vector<1x16x4xbf16>,
      %477 = vector.extract_strided_slice %460 {offsets = [0, 4], sizes = [16, 4], strides = [1, 1]} : vector<16x32xbf16> to vector<16x4xbf16>
      %c1_214 = arith.constant 1 : index
      %c0_215 = arith.constant 0 : index
      %c0_216 = arith.constant 0 : index
      %478 = vector.load %arg36[%c1_214, %c0_215, %c0_216] : memref<8x16x4xbf16, #tpu.memory_space<vmem>>, vector<1x16x4xbf16>
      %479 = vector.shape_cast %478 : vector<1x16x4xbf16> to vector<16x4xbf16>
      %480 = vector.shape_cast %477 : vector<16x4xbf16> to vector<1x16x4xbf16>
      tpu.vector_store %arg36[%c1_214, %c0_215, %c0_216], %480 {strides = array<i32>} : memref<8x16x4xbf16, #tpu.memory_space<vmem>>, vector<1x16x4xbf16>,
      %481 = vector.extract_strided_slice %462 {offsets = [0, 4], sizes = [16, 4], strides = [1, 1]} : vector<16x32xbf16> to vector<16x4xbf16>
      %c1_217 = arith.constant 1 : index
      %c0_218 = arith.constant 0 : index
      %c0_219 = arith.constant 0 : index
      %482 = vector.load %arg37[%c1_217, %c0_218, %c0_219] : memref<8x16x4xbf16, #tpu.memory_space<vmem>>, vector<1x16x4xbf16>
      %483 = vector.shape_cast %482 : vector<1x16x4xbf16> to vector<16x4xbf16>
      %484 = vector.shape_cast %481 : vector<16x4xbf16> to vector<1x16x4xbf16>
      tpu.vector_store %arg37[%c1_217, %c0_218, %c0_219], %484 {strides = array<i32>} : memref<8x16x4xbf16, #tpu.memory_space<vmem>>, vector<1x16x4xbf16>,
      %485 = vector.extract_strided_slice %460 {offsets = [0, 8], sizes = [16, 4], strides = [1, 1]} : vector<16x32xbf16> to vector<16x4xbf16>
      %c2_220 = arith.constant 2 : index
      %c0_221 = arith.constant 0 : index
      %c0_222 = arith.constant 0 : index
      %486 = vector.load %arg36[%c2_220, %c0_221, %c0_222] : memref<8x16x4xbf16, #tpu.memory_space<vmem>>, vector<1x16x4xbf16>
      %487 = vector.shape_cast %486 : vector<1x16x4xbf16> to vector<16x4xbf16>
      %488 = vector.shape_cast %485 : vector<16x4xbf16> to vector<1x16x4xbf16>
      tpu.vector_store %arg36[%c2_220, %c0_221, %c0_222], %488 {strides = array<i32>} : memref<8x16x4xbf16, #tpu.memory_space<vmem>>, vector<1x16x4xbf16>,
      %489 = vector.extract_strided_slice %462 {offsets = [0, 8], sizes = [16, 4], strides = [1, 1]} : vector<16x32xbf16> to vector<16x4xbf16>
      %c2_223 = arith.constant 2 : index
      %c0_224 = arith.constant 0 : index
      %c0_225 = arith.constant 0 : index
      %490 = vector.load %arg37[%c2_223, %c0_224, %c0_225] : memref<8x16x4xbf16, #tpu.memory_space<vmem>>, vector<1x16x4xbf16>
      %491 = vector.shape_cast %490 : vector<1x16x4xbf16> to vector<16x4xbf16>
      %492 = vector.shape_cast %489 : vector<16x4xbf16> to vector<1x16x4xbf16>
      tpu.vector_store %arg37[%c2_223, %c0_224, %c0_225], %492 {strides = array<i32>} : memref<8x16x4xbf16, #tpu.memory_space<vmem>>, vector<1x16x4xbf16>,
      %493 = vector.extract_strided_slice %460 {offsets = [0, 12], sizes = [16, 4], strides = [1, 1]} : vector<16x32xbf16> to vector<16x4xbf16>
      %c3_226 = arith.constant 3 : index
      %c0_227 = arith.constant 0 : index
      %c0_228 = arith.constant 0 : index
      %494 = vector.load %arg36[%c3_226, %c0_227, %c0_228] : memref<8x16x4xbf16, #tpu.memory_space<vmem>>, vector<1x16x4xbf16>
      %495 = vector.shape_cast %494 : vector<1x16x4xbf16> to vector<16x4xbf16>
      %496 = vector.shape_cast %493 : vector<16x4xbf16> to vector<1x16x4xbf16>
      tpu.vector_store %arg36[%c3_226, %c0_227, %c0_228], %496 {strides = array<i32>} : memref<8x16x4xbf16, #tpu.memory_space<vmem>>, vector<1x16x4xbf16>,
      %497 = vector.extract_strided_slice %462 {offsets = [0, 12], sizes = [16, 4], strides = [1, 1]} : vector<16x32xbf16> to vector<16x4xbf16>
      %c3_229 = arith.constant 3 : index
      %c0_230 = arith.constant 0 : index
      %c0_231 = arith.constant 0 : index
      %498 = vector.load %arg37[%c3_229, %c0_230, %c0_231] : memref<8x16x4xbf16, #tpu.memory_space<vmem>>, vector<1x16x4xbf16>
      %499 = vector.shape_cast %498 : vector<1x16x4xbf16> to vector<16x4xbf16>
      %500 = vector.shape_cast %497 : vector<16x4xbf16> to vector<1x16x4xbf16>
      tpu.vector_store %arg37[%c3_229, %c0_230, %c0_231], %500 {strides = array<i32>} : memref<8x16x4xbf16, #tpu.memory_space<vmem>>, vector<1x16x4xbf16>,
      %501 = vector.extract_strided_slice %460 {offsets = [0, 16], sizes = [16, 4], strides = [1, 1]} : vector<16x32xbf16> to vector<16x4xbf16>
      %c4_232 = arith.constant 4 : index
      %c0_233 = arith.constant 0 : index
      %c0_234 = arith.constant 0 : index
      %502 = vector.load %arg36[%c4_232, %c0_233, %c0_234] : memref<8x16x4xbf16, #tpu.memory_space<vmem>>, vector<1x16x4xbf16>
      %503 = vector.shape_cast %502 : vector<1x16x4xbf16> to vector<16x4xbf16>
      %504 = vector.shape_cast %501 : vector<16x4xbf16> to vector<1x16x4xbf16>
      tpu.vector_store %arg36[%c4_232, %c0_233, %c0_234], %504 {strides = array<i32>} : memref<8x16x4xbf16, #tpu.memory_space<vmem>>, vector<1x16x4xbf16>,
      %505 = vector.extract_strided_slice %462 {offsets = [0, 16], sizes = [16, 4], strides = [1, 1]} : vector<16x32xbf16> to vector<16x4xbf16>
      %c4_235 = arith.constant 4 : index
      %c0_236 = arith.constant 0 : index
      %c0_237 = arith.constant 0 : index
      %506 = vector.load %arg37[%c4_235, %c0_236, %c0_237] : memref<8x16x4xbf16, #tpu.memory_space<vmem>>, vector<1x16x4xbf16>
      %507 = vector.shape_cast %506 : vector<1x16x4xbf16> to vector<16x4xbf16>
      %508 = vector.shape_cast %505 : vector<16x4xbf16> to vector<1x16x4xbf16>
      tpu.vector_store %arg37[%c4_235, %c0_236, %c0_237], %508 {strides = array<i32>} : memref<8x16x4xbf16, #tpu.memory_space<vmem>>, vector<1x16x4xbf16>,
      %509 = vector.extract_strided_slice %460 {offsets = [0, 20], sizes = [16, 4], strides = [1, 1]} : vector<16x32xbf16> to vector<16x4xbf16>
      %c5_238 = arith.constant 5 : index
      %c0_239 = arith.constant 0 : index
      %c0_240 = arith.constant 0 : index
      %510 = vector.load %arg36[%c5_238, %c0_239, %c0_240] : memref<8x16x4xbf16, #tpu.memory_space<vmem>>, vector<1x16x4xbf16>
      %511 = vector.shape_cast %510 : vector<1x16x4xbf16> to vector<16x4xbf16>
      %512 = vector.shape_cast %509 : vector<16x4xbf16> to vector<1x16x4xbf16>
      tpu.vector_store %arg36[%c5_238, %c0_239, %c0_240], %512 {strides = array<i32>} : memref<8x16x4xbf16, #tpu.memory_space<vmem>>, vector<1x16x4xbf16>,
      %513 = vector.extract_strided_slice %462 {offsets = [0, 20], sizes = [16, 4], strides = [1, 1]} : vector<16x32xbf16> to vector<16x4xbf16>
      %c5_241 = arith.constant 5 : index
      %c0_242 = arith.constant 0 : index
      %c0_243 = arith.constant 0 : index
      %514 = vector.load %arg37[%c5_241, %c0_242, %c0_243] : memref<8x16x4xbf16, #tpu.memory_space<vmem>>, vector<1x16x4xbf16>
      %515 = vector.shape_cast %514 : vector<1x16x4xbf16> to vector<16x4xbf16>
      %516 = vector.shape_cast %513 : vector<16x4xbf16> to vector<1x16x4xbf16>
      tpu.vector_store %arg37[%c5_241, %c0_242, %c0_243], %516 {strides = array<i32>} : memref<8x16x4xbf16, #tpu.memory_space<vmem>>, vector<1x16x4xbf16>,
      %517 = vector.extract_strided_slice %460 {offsets = [0, 24], sizes = [16, 4], strides = [1, 1]} : vector<16x32xbf16> to vector<16x4xbf16>
      %c6_244 = arith.constant 6 : index
      %c0_245 = arith.constant 0 : index
      %c0_246 = arith.constant 0 : index
      %518 = vector.load %arg36[%c6_244, %c0_245, %c0_246] : memref<8x16x4xbf16, #tpu.memory_space<vmem>>, vector<1x16x4xbf16>
      %519 = vector.shape_cast %518 : vector<1x16x4xbf16> to vector<16x4xbf16>
      %520 = vector.shape_cast %517 : vector<16x4xbf16> to vector<1x16x4xbf16>
      tpu.vector_store %arg36[%c6_244, %c0_245, %c0_246], %520 {strides = array<i32>} : memref<8x16x4xbf16, #tpu.memory_space<vmem>>, vector<1x16x4xbf16>,
      %521 = vector.extract_strided_slice %462 {offsets = [0, 24], sizes = [16, 4], strides = [1, 1]} : vector<16x32xbf16> to vector<16x4xbf16>
      %c6_247 = arith.constant 6 : index
      %c0_248 = arith.constant 0 : index
      %c0_249 = arith.constant 0 : index
      %522 = vector.load %arg37[%c6_247, %c0_248, %c0_249] : memref<8x16x4xbf16, #tpu.memory_space<vmem>>, vector<1x16x4xbf16>
      %523 = vector.shape_cast %522 : vector<1x16x4xbf16> to vector<16x4xbf16>
      %524 = vector.shape_cast %521 : vector<16x4xbf16> to vector<1x16x4xbf16>
      tpu.vector_store %arg37[%c6_247, %c0_248, %c0_249], %524 {strides = array<i32>} : memref<8x16x4xbf16, #tpu.memory_space<vmem>>, vector<1x16x4xbf16>,
      %525 = vector.extract_strided_slice %460 {offsets = [0, 28], sizes = [16, 4], strides = [1, 1]} : vector<16x32xbf16> to vector<16x4xbf16>
      %c7_250 = arith.constant 7 : index
      %c0_251 = arith.constant 0 : index
      %c0_252 = arith.constant 0 : index
      %526 = vector.load %arg36[%c7_250, %c0_251, %c0_252] : memref<8x16x4xbf16, #tpu.memory_space<vmem>>, vector<1x16x4xbf16>
      %527 = vector.shape_cast %526 : vector<1x16x4xbf16> to vector<16x4xbf16>
      %528 = vector.shape_cast %525 : vector<16x4xbf16> to vector<1x16x4xbf16>
      tpu.vector_store %arg36[%c7_250, %c0_251, %c0_252], %528 {strides = array<i32>} : memref<8x16x4xbf16, #tpu.memory_space<vmem>>, vector<1x16x4xbf16>,
      %529 = vector.extract_strided_slice %462 {offsets = [0, 28], sizes = [16, 4], strides = [1, 1]} : vector<16x32xbf16> to vector<16x4xbf16>
      %c7_253 = arith.constant 7 : index
      %c0_254 = arith.constant 0 : index
      %c0_255 = arith.constant 0 : index
      %530 = vector.load %arg37[%c7_253, %c0_254, %c0_255] : memref<8x16x4xbf16, #tpu.memory_space<vmem>>, vector<1x16x4xbf16>
      %531 = vector.shape_cast %530 : vector<1x16x4xbf16> to vector<16x4xbf16>
      %532 = vector.shape_cast %529 : vector<16x4xbf16> to vector<1x16x4xbf16>
      tpu.vector_store %arg37[%c7_253, %c0_254, %c0_255], %532 {strides = array<i32>} : memref<8x16x4xbf16, #tpu.memory_space<vmem>>, vector<1x16x4xbf16>,
    } else {
    }
    %c8_i32 = arith.constant 8 : i32
    %3 = arith.muli %arg1, %c8_i32 : i32
    %c0 = arith.constant 0 : index
    %c0_1 = arith.constant 0 : index
    %c0_2 = arith.constant 0 : index
    %4 = vector.load %arg3[%c0, %c0_1, %c0_2] : memref<1x8x32xf32, #tpu.memory_space<vmem>>, vector<1x8x32xf32>
    %5 = vector.shape_cast %4 : vector<1x8x32xf32> to vector<8x32xf32>
    %c0_3 = arith.constant 0 : index
    %c0_4 = arith.constant 0 : index
    %c0_5 = arith.constant 0 : index
    %c0_6 = arith.constant 0 : index
    %6 = vector.load %arg5[%c0_3, %c0_4, %c0_5, %c0_6] : memref<1x1x1x16xf32, #tpu.memory_space<vmem>>, vector<1x1x1x16xf32>
    %7 = vector.shape_cast %6 : vector<1x1x1x16xf32> to vector<1x16xf32>
    %c0_7 = arith.constant 0 : index
    %c0_8 = arith.constant 0 : index
    %c0_9 = arith.constant 0 : index
    %c0_10 = arith.constant 0 : index
    %8 = vector.load %arg6[%c0_7, %c0_8, %c0_9, %c0_10] : memref<1x1x1x16xf32, #tpu.memory_space<vmem>>, vector<1x1x1x16xf32>
    %9 = vector.shape_cast %8 : vector<1x1x1x16xf32> to vector<1x16xf32>
    %10 = arith.truncf %5 : vector<8x32xf32> to vector<8x32xbf16>
    %c0_11 = arith.constant 0 : index
    %c0_12 = arith.constant 0 : index
    %11 = vector.load %arg7[%c0_11, %c0_12] : memref<32x32xbf16, #tpu.memory_space<vmem>>, vector<32x32xbf16>
    %cst = arith.constant dense<0.000000e+00> : vector<8x32xf32>
    %12 = tpu.matmul %10, %11, %cst {dimension_numbers = #tpu.dot_dimension_numbers<[1], [0], [0], [1], [0, 0, 1, 1], [], []>} : vector<8x32xbf16>, vector<32x32xbf16>, vector<8x32xf32> -> vector<8x32xf32>
    %c0_13 = arith.constant 0 : index
    %c0_14 = arith.constant 0 : index
    %13 = vector.load %arg8[%c0_13, %c0_14] : memref<1x32xf32, #tpu.memory_space<vmem>>, vector<1x32xf32>
    %14 = vector.broadcast %13 : vector<1x32xf32> to vector<8x32xf32>
    %15 = arith.addf %12, %14 : vector<8x32xf32>
    %16 = arith.truncf %15 : vector<8x32xf32> to vector<8x32xbf16>
    %17 = vector.extract_strided_slice %16 {offsets = [0, 0], sizes = [8, 4], strides = [1, 1]} : vector<8x32xbf16> to vector<8x4xbf16>
    %18 = vector.shape_cast %17 : vector<8x4xbf16> to vector<1x8x4xbf16>
    %19 = vector.extract_strided_slice %16 {offsets = [0, 4], sizes = [8, 4], strides = [1, 1]} : vector<8x32xbf16> to vector<8x4xbf16>
    %20 = vector.shape_cast %19 : vector<8x4xbf16> to vector<1x8x4xbf16>
    %21 = vector.extract_strided_slice %16 {offsets = [0, 8], sizes = [8, 4], strides = [1, 1]} : vector<8x32xbf16> to vector<8x4xbf16>
    %22 = vector.shape_cast %21 : vector<8x4xbf16> to vector<1x8x4xbf16>
    %23 = vector.extract_strided_slice %16 {offsets = [0, 12], sizes = [8, 4], strides = [1, 1]} : vector<8x32xbf16> to vector<8x4xbf16>
    %24 = vector.shape_cast %23 : vector<8x4xbf16> to vector<1x8x4xbf16>
    %25 = vector.extract_strided_slice %16 {offsets = [0, 16], sizes = [8, 4], strides = [1, 1]} : vector<8x32xbf16> to vector<8x4xbf16>
    %26 = vector.shape_cast %25 : vector<8x4xbf16> to vector<1x8x4xbf16>
    %27 = vector.extract_strided_slice %16 {offsets = [0, 20], sizes = [8, 4], strides = [1, 1]} : vector<8x32xbf16> to vector<8x4xbf16>
    %28 = vector.shape_cast %27 : vector<8x4xbf16> to vector<1x8x4xbf16>
    %29 = vector.extract_strided_slice %16 {offsets = [0, 24], sizes = [8, 4], strides = [1, 1]} : vector<8x32xbf16> to vector<8x4xbf16>
    %30 = vector.shape_cast %29 : vector<8x4xbf16> to vector<1x8x4xbf16>
    %31 = vector.extract_strided_slice %16 {offsets = [0, 28], sizes = [8, 4], strides = [1, 1]} : vector<8x32xbf16> to vector<8x4xbf16>
    %32 = vector.shape_cast %31 : vector<8x4xbf16> to vector<1x8x4xbf16>
    %33 = tpu.concatenate %18, %20, %22, %24, %26, %28, %30, %32 in 0 : vector<1x8x4xbf16>, vector<1x8x4xbf16>, vector<1x8x4xbf16>, vector<1x8x4xbf16>, vector<1x8x4xbf16>, vector<1x8x4xbf16>, vector<1x8x4xbf16>, vector<1x8x4xbf16> -> vector<8x8x4xbf16>
    %cst_15 = arith.constant -1.000000e+30 : f32
    %34 = vector.broadcast %cst_15 : f32 to vector<8x8x1xf32>
    %cst_16 = arith.constant 0.000000e+00 : f32
    %35 = vector.broadcast %cst_16 : f32 to vector<8x8x1xf32>
    %cst_17 = arith.constant 0.000000e+00 : f32
    %36 = vector.broadcast %cst_17 : f32 to vector<8x8x4xf32>
    %c0_18 = arith.constant 0 : index
    %c0_19 = arith.constant 0 : index
    %c0_20 = arith.constant 0 : index
    %37 = vector.load %arg34[%c0_18, %c0_19, %c0_20] : memref<8x16x4xbf16, #tpu.memory_space<vmem>>, vector<8x8x4xbf16>
    %c0_21 = arith.constant 0 : index
    %c0_22 = arith.constant 0 : index
    %c0_23 = arith.constant 0 : index
    %38 = vector.load %arg35[%c0_21, %c0_22, %c0_23] : memref<8x16x4xbf16, #tpu.memory_space<vmem>>, vector<8x8x4xbf16>
    "tpu.trace_start"() <{level = 10 : i32, message = "hqd,hkd->hqk"}> : () -> ()
    %cst_24 = arith.constant dense<0.000000e+00> : vector<8x8x8xf32>
    %39 = tpu.matmul %33, %37, %cst_24 {dimension_numbers = #tpu.dot_dimension_numbers<[2], [2], [1], [1], [0, 0, 0, 1, 1, 1], [0], [0]>} : vector<8x8x4xbf16>, vector<8x8x4xbf16>, vector<8x8x8xf32> -> vector<8x8x8xf32>
    "tpu.trace_stop"() : () -> ()
    %40 = vector.extract_strided_slice %7 {offsets = [0, 0], sizes = [1, 8], strides = [1, 1]} : vector<1x16xf32> to vector<1x8xf32>
    %41 = vector.shape_cast %40 : vector<1x8xf32> to vector<1x1x8xf32>
    %42 = vector.broadcast %41 : vector<1x1x8xf32> to vector<8x8x8xf32>
    %43 = arith.addf %39, %42 : vector<8x8x8xf32>
    %44 = tpu.iota {dimensions = array<i32: 0>} : vector<8x8xi32>
    %45 = vector.broadcast %3 : i32 to vector<8x8xi32>
    %46 = arith.addi %45, %44 : vector<8x8xi32>
    %47 = tpu.iota {dimensions = array<i32: 1>} : vector<8x8xi32>
    %c0_i32_25 = arith.constant 0 : i32
    %48 = vector.broadcast %c0_i32_25 : i32 to vector<8x8xi32>
    %49 = arith.addi %48, %47 : vector<8x8xi32>
    %50 = arith.cmpi sle, %49, %46 : vector<8x8xi32>
    %cst_26 = arith.constant 0.000000e+00 : f32
    %cst_27 = arith.constant -1.000000e+09 : f32
    %51 = vector.broadcast %cst_26 : f32 to vector<8x8xf32>
    %52 = vector.broadcast %cst_27 : f32 to vector<8x8xf32>
    %53 = arith.select %50, %51, %52 : vector<8x8xi1>, vector<8x8xf32>
    %54 = vector.shape_cast %53 : vector<8x8xf32> to vector<1x8x8xf32>
    %55 = vector.broadcast %54 : vector<1x8x8xf32> to vector<8x8x8xf32>
    %56 = arith.addf %43, %55 : vector<8x8x8xf32>
    %cst_28 = arith.constant dense<0xFF800000> : vector<8x8xf32>
    %57 = vector.multi_reduction <maximumf>, %56, %cst_28 [2] : vector<8x8x8xf32> to vector<8x8xf32>
    %58 = vector.shape_cast %57 : vector<8x8xf32> to vector<8x8x1xf32>
    %59 = arith.maximumf %34, %58 : vector<8x8x1xf32>
    %60 = arith.subf %34, %59 : vector<8x8x1xf32>
    %61 = math.exp %60 : vector<8x8x1xf32>
    %62 = vector.broadcast %59 : vector<8x8x1xf32> to vector<8x8x8xf32>
    %63 = arith.subf %56, %62 : vector<8x8x8xf32>
    %64 = math.exp %63 : vector<8x8x8xf32>
    %65 = arith.mulf %61, %35 : vector<8x8x1xf32>
    %cst_29 = arith.constant dense<0.000000e+00> : vector<8x8xf32>
    %66 = vector.multi_reduction <add>, %64, %cst_29 [2] : vector<8x8x8xf32> to vector<8x8xf32>
    %67 = vector.shape_cast %66 : vector<8x8xf32> to vector<8x8x1xf32>
    %68 = arith.addf %65, %67 : vector<8x8x1xf32>
    %69 = vector.broadcast %61 : vector<8x8x1xf32> to vector<8x8x4xf32>
    %70 = arith.mulf %69, %36 : vector<8x8x4xf32>
    %71 = arith.truncf %64 : vector<8x8x8xf32> to vector<8x8x8xbf16>
    "tpu.trace_start"() <{level = 10 : i32, message = "hqk,hkd->hqd"}> : () -> ()
    %cst_30 = arith.constant dense<0.000000e+00> : vector<8x8x4xf32>
    %72 = tpu.matmul %71, %38, %cst_30 {dimension_numbers = #tpu.dot_dimension_numbers<[2], [1], [1], [2], [0, 0, 0, 1, 1, 2], [0], [0]>} : vector<8x8x8xbf16>, vector<8x8x4xbf16>, vector<8x8x4xf32> -> vector<8x8x4xf32>
    "tpu.trace_stop"() : () -> ()
    %73 = arith.addf %70, %72 : vector<8x8x4xf32>
    %c0_31 = arith.constant 0 : index
    %c8 = arith.constant 8 : index
    %c0_32 = arith.constant 0 : index
    %74 = vector.load %arg34[%c0_31, %c8, %c0_32] : memref<8x16x4xbf16, #tpu.memory_space<vmem>>, vector<8x8x4xbf16>
    %c0_33 = arith.constant 0 : index
    %c8_34 = arith.constant 8 : index
    %c0_35 = arith.constant 0 : index
    %75 = vector.load %arg35[%c0_33, %c8_34, %c0_35] : memref<8x16x4xbf16, #tpu.memory_space<vmem>>, vector<8x8x4xbf16>
    "tpu.trace_start"() <{level = 10 : i32, message = "hqd,hkd->hqk"}> : () -> ()
    %cst_36 = arith.constant dense<0.000000e+00> : vector<8x8x8xf32>
    %76 = tpu.matmul %33, %74, %cst_36 {dimension_numbers = #tpu.dot_dimension_numbers<[2], [2], [1], [1], [0, 0, 0, 1, 1, 1], [0], [0]>} : vector<8x8x4xbf16>, vector<8x8x4xbf16>, vector<8x8x8xf32> -> vector<8x8x8xf32>
    "tpu.trace_stop"() : () -> ()
    %77 = vector.extract_strided_slice %7 {offsets = [0, 8], sizes = [1, 8], strides = [1, 1]} : vector<1x16xf32> to vector<1x8xf32>
    %78 = vector.shape_cast %77 : vector<1x8xf32> to vector<1x1x8xf32>
    %79 = vector.broadcast %78 : vector<1x1x8xf32> to vector<8x8x8xf32>
    %80 = arith.addf %76, %79 : vector<8x8x8xf32>
    %81 = tpu.iota {dimensions = array<i32: 0>} : vector<8x8xi32>
    %82 = vector.broadcast %3 : i32 to vector<8x8xi32>
    %83 = arith.addi %82, %81 : vector<8x8xi32>
    %84 = tpu.iota {dimensions = array<i32: 1>} : vector<8x8xi32>
    %c8_i32_37 = arith.constant 8 : i32
    %85 = vector.broadcast %c8_i32_37 : i32 to vector<8x8xi32>
    %86 = arith.addi %85, %84 : vector<8x8xi32>
    %87 = arith.cmpi sle, %86, %83 : vector<8x8xi32>
    %cst_38 = arith.constant 0.000000e+00 : f32
    %cst_39 = arith.constant -1.000000e+09 : f32
    %88 = vector.broadcast %cst_38 : f32 to vector<8x8xf32>
    %89 = vector.broadcast %cst_39 : f32 to vector<8x8xf32>
    %90 = arith.select %87, %88, %89 : vector<8x8xi1>, vector<8x8xf32>
    %91 = vector.shape_cast %90 : vector<8x8xf32> to vector<1x8x8xf32>
    %92 = vector.broadcast %91 : vector<1x8x8xf32> to vector<8x8x8xf32>
    %93 = arith.addf %80, %92 : vector<8x8x8xf32>
    %cst_40 = arith.constant dense<0xFF800000> : vector<8x8xf32>
    %94 = vector.multi_reduction <maximumf>, %93, %cst_40 [2] : vector<8x8x8xf32> to vector<8x8xf32>
    %95 = vector.shape_cast %94 : vector<8x8xf32> to vector<8x8x1xf32>
    %96 = arith.maximumf %59, %95 : vector<8x8x1xf32>
    %97 = arith.subf %59, %96 : vector<8x8x1xf32>
    %98 = math.exp %97 : vector<8x8x1xf32>
    %99 = vector.broadcast %96 : vector<8x8x1xf32> to vector<8x8x8xf32>
    %100 = arith.subf %93, %99 : vector<8x8x8xf32>
    %101 = math.exp %100 : vector<8x8x8xf32>
    %102 = arith.mulf %98, %68 : vector<8x8x1xf32>
    %cst_41 = arith.constant dense<0.000000e+00> : vector<8x8xf32>
    %103 = vector.multi_reduction <add>, %101, %cst_41 [2] : vector<8x8x8xf32> to vector<8x8xf32>
    %104 = vector.shape_cast %103 : vector<8x8xf32> to vector<8x8x1xf32>
    %105 = arith.addf %102, %104 : vector<8x8x1xf32>
    %106 = vector.broadcast %98 : vector<8x8x1xf32> to vector<8x8x4xf32>
    %107 = arith.mulf %106, %73 : vector<8x8x4xf32>
    %108 = arith.truncf %101 : vector<8x8x8xf32> to vector<8x8x8xbf16>
    "tpu.trace_start"() <{level = 10 : i32, message = "hqk,hkd->hqd"}> : () -> ()
    %cst_42 = arith.constant dense<0.000000e+00> : vector<8x8x4xf32>
    %109 = tpu.matmul %108, %75, %cst_42 {dimension_numbers = #tpu.dot_dimension_numbers<[2], [1], [1], [2], [0, 0, 0, 1, 1, 2], [0], [0]>} : vector<8x8x8xbf16>, vector<8x8x4xbf16>, vector<8x8x4xf32> -> vector<8x8x4xf32>
    "tpu.trace_stop"() : () -> ()
    %110 = arith.addf %107, %109 : vector<8x8x4xf32>
    %cst_43 = arith.constant 1.000000e-30 : f32
    %111 = vector.broadcast %cst_43 : f32 to vector<8x8x1xf32>
    %112 = arith.maximumf %105, %111 : vector<8x8x1xf32>
    %113 = tpu.reciprocal %112 {approx = true} : vector<8x8x1xf32> -> vector<8x8x1xf32>
    %114 = vector.broadcast %113 : vector<8x8x1xf32> to vector<8x8x4xf32>
    %115 = arith.mulf %110, %114 : vector<8x8x4xf32>
    %116 = vector.extract_strided_slice %115 {offsets = [0, 0, 0], sizes = [1, 8, 4], strides = [1, 1, 1]} : vector<8x8x4xf32> to vector<1x8x4xf32>
    %117 = vector.shape_cast %116 : vector<1x8x4xf32> to vector<8x4xf32>
    %118 = vector.extract_strided_slice %115 {offsets = [1, 0, 0], sizes = [1, 8, 4], strides = [1, 1, 1]} : vector<8x8x4xf32> to vector<1x8x4xf32>
    %119 = vector.shape_cast %118 : vector<1x8x4xf32> to vector<8x4xf32>
    %120 = vector.extract_strided_slice %115 {offsets = [2, 0, 0], sizes = [1, 8, 4], strides = [1, 1, 1]} : vector<8x8x4xf32> to vector<1x8x4xf32>
    %121 = vector.shape_cast %120 : vector<1x8x4xf32> to vector<8x4xf32>
    %122 = vector.extract_strided_slice %115 {offsets = [3, 0, 0], sizes = [1, 8, 4], strides = [1, 1, 1]} : vector<8x8x4xf32> to vector<1x8x4xf32>
    %123 = vector.shape_cast %122 : vector<1x8x4xf32> to vector<8x4xf32>
    %124 = vector.extract_strided_slice %115 {offsets = [4, 0, 0], sizes = [1, 8, 4], strides = [1, 1, 1]} : vector<8x8x4xf32> to vector<1x8x4xf32>
    %125 = vector.shape_cast %124 : vector<1x8x4xf32> to vector<8x4xf32>
    %126 = vector.extract_strided_slice %115 {offsets = [5, 0, 0], sizes = [1, 8, 4], strides = [1, 1, 1]} : vector<8x8x4xf32> to vector<1x8x4xf32>
    %127 = vector.shape_cast %126 : vector<1x8x4xf32> to vector<8x4xf32>
    %128 = vector.extract_strided_slice %115 {offsets = [6, 0, 0], sizes = [1, 8, 4], strides = [1, 1, 1]} : vector<8x8x4xf32> to vector<1x8x4xf32>
    %129 = vector.shape_cast %128 : vector<1x8x4xf32> to vector<8x4xf32>
    %130 = vector.extract_strided_slice %115 {offsets = [7, 0, 0], sizes = [1, 8, 4], strides = [1, 1, 1]} : vector<8x8x4xf32> to vector<1x8x4xf32>
    %131 = vector.shape_cast %130 : vector<1x8x4xf32> to vector<8x4xf32>
    %132 = tpu.concatenate %117, %119, %121, %123, %125, %127, %129, %131 in 1 : vector<8x4xf32>, vector<8x4xf32>, vector<8x4xf32>, vector<8x4xf32>, vector<8x4xf32>, vector<8x4xf32>, vector<8x4xf32>, vector<8x4xf32> -> vector<8x32xf32>
    %133 = arith.truncf %132 : vector<8x32xf32> to vector<8x32xbf16>
    %c0_44 = arith.constant 0 : index
    %c0_45 = arith.constant 0 : index
    %134 = vector.load %arg11[%c0_44, %c0_45] : memref<32x32xbf16, #tpu.memory_space<vmem>>, vector<32x32xbf16>
    %cst_46 = arith.constant dense<0.000000e+00> : vector<8x32xf32>
    %135 = tpu.matmul %133, %134, %cst_46 {dimension_numbers = #tpu.dot_dimension_numbers<[1], [0], [0], [1], [0, 0, 1, 1], [], []>} : vector<8x32xbf16>, vector<32x32xbf16>, vector<8x32xf32> -> vector<8x32xf32>
    %c0_47 = arith.constant 0 : index
    %c0_48 = arith.constant 0 : index
    %136 = vector.load %arg12[%c0_47, %c0_48] : memref<1x32xf32, #tpu.memory_space<vmem>>, vector<1x32xf32>
    %137 = vector.broadcast %136 : vector<1x32xf32> to vector<8x32xf32>
    %138 = arith.addf %135, %137 : vector<8x32xf32>
    %139 = arith.addf %5, %138 : vector<8x32xf32>
    %c0_49 = arith.constant 0 : index
    %c0_50 = arith.constant 0 : index
    %140 = vector.load %arg13[%c0_49, %c0_50] : memref<1x32xf32, #tpu.memory_space<vmem>>, vector<1x32xf32>
    %c0_51 = arith.constant 0 : index
    %c0_52 = arith.constant 0 : index
    %141 = vector.load %arg14[%c0_51, %c0_52] : memref<1x32xf32, #tpu.memory_space<vmem>>, vector<1x32xf32>
    %cst_53 = arith.constant dense<0.000000e+00> : vector<8xf32>
    %142 = vector.multi_reduction <add>, %139, %cst_53 [1] : vector<8x32xf32> to vector<8xf32>
    %143 = vector.shape_cast %142 : vector<8xf32> to vector<8x1xf32>
    %cst_54 = arith.constant 3.200000e+01 : f32
    %144 = vector.broadcast %cst_54 : f32 to vector<8x1xf32>
    %145 = arith.divf %143, %144 : vector<8x1xf32>
    %146 = vector.broadcast %145 : vector<8x1xf32> to vector<8x32xf32>
    %147 = arith.subf %139, %146 : vector<8x32xf32>
    %148 = arith.mulf %147, %147 : vector<8x32xf32>
    %cst_55 = arith.constant dense<0.000000e+00> : vector<8xf32>
    %149 = vector.multi_reduction <add>, %148, %cst_55 [1] : vector<8x32xf32> to vector<8xf32>
    %150 = vector.shape_cast %149 : vector<8xf32> to vector<8x1xf32>
    %cst_56 = arith.constant 3.200000e+01 : f32
    %151 = vector.broadcast %cst_56 : f32 to vector<8x1xf32>
    %152 = arith.divf %150, %151 : vector<8x1xf32>
    %153 = vector.broadcast %145 : vector<8x1xf32> to vector<8x32xf32>
    %154 = arith.subf %139, %153 : vector<8x32xf32>
    %cst_57 = arith.constant 9.99999974E-6 : f32
    %155 = vector.broadcast %cst_57 : f32 to vector<8x1xf32>
    %156 = arith.addf %152, %155 : vector<8x1xf32>
    %157 = math.rsqrt %156 : vector<8x1xf32>
    %158 = vector.broadcast %157 : vector<8x1xf32> to vector<8x32xf32>
    %159 = arith.mulf %154, %158 : vector<8x32xf32>
    %160 = vector.broadcast %140 : vector<1x32xf32> to vector<8x32xf32>
    %161 = arith.mulf %159, %160 : vector<8x32xf32>
    %162 = vector.broadcast %141 : vector<1x32xf32> to vector<8x32xf32>
    %163 = arith.addf %161, %162 : vector<8x32xf32>
    %164 = arith.truncf %163 : vector<8x32xf32> to vector<8x32xbf16>
    %c0_58 = arith.constant 0 : index
    %c0_59 = arith.constant 0 : index
    %165 = vector.load %arg15[%c0_58, %c0_59] : memref<32x32xbf16, #tpu.memory_space<vmem>>, vector<32x32xbf16>
    %cst_60 = arith.constant dense<0.000000e+00> : vector<8x32xf32>
    %166 = tpu.matmul %164, %165, %cst_60 {dimension_numbers = #tpu.dot_dimension_numbers<[1], [0], [0], [1], [0, 0, 1, 1], [], []>} : vector<8x32xbf16>, vector<32x32xbf16>, vector<8x32xf32> -> vector<8x32xf32>
    %c0_61 = arith.constant 0 : index
    %c0_62 = arith.constant 0 : index
    %167 = vector.load %arg16[%c0_61, %c0_62] : memref<1x32xf32, #tpu.memory_space<vmem>>, vector<1x32xf32>
    %168 = vector.broadcast %167 : vector<1x32xf32> to vector<8x32xf32>
    %169 = arith.addf %166, %168 : vector<8x32xf32>
    %170 = arith.truncf %169 : vector<8x32xf32> to vector<8x32xbf16>
    %171 = vector.extract_strided_slice %170 {offsets = [0, 0], sizes = [8, 4], strides = [1, 1]} : vector<8x32xbf16> to vector<8x4xbf16>
    %172 = vector.shape_cast %171 : vector<8x4xbf16> to vector<1x8x4xbf16>
    %173 = vector.extract_strided_slice %170 {offsets = [0, 4], sizes = [8, 4], strides = [1, 1]} : vector<8x32xbf16> to vector<8x4xbf16>
    %174 = vector.shape_cast %173 : vector<8x4xbf16> to vector<1x8x4xbf16>
    %175 = vector.extract_strided_slice %170 {offsets = [0, 8], sizes = [8, 4], strides = [1, 1]} : vector<8x32xbf16> to vector<8x4xbf16>
    %176 = vector.shape_cast %175 : vector<8x4xbf16> to vector<1x8x4xbf16>
    %177 = vector.extract_strided_slice %170 {offsets = [0, 12], sizes = [8, 4], strides = [1, 1]} : vector<8x32xbf16> to vector<8x4xbf16>
    %178 = vector.shape_cast %177 : vector<8x4xbf16> to vector<1x8x4xbf16>
    %179 = vector.extract_strided_slice %170 {offsets = [0, 16], sizes = [8, 4], strides = [1, 1]} : vector<8x32xbf16> to vector<8x4xbf16>
    %180 = vector.shape_cast %179 : vector<8x4xbf16> to vector<1x8x4xbf16>
    %181 = vector.extract_strided_slice %170 {offsets = [0, 20], sizes = [8, 4], strides = [1, 1]} : vector<8x32xbf16> to vector<8x4xbf16>
    %182 = vector.shape_cast %181 : vector<8x4xbf16> to vector<1x8x4xbf16>
    %183 = vector.extract_strided_slice %170 {offsets = [0, 24], sizes = [8, 4], strides = [1, 1]} : vector<8x32xbf16> to vector<8x4xbf16>
    %184 = vector.shape_cast %183 : vector<8x4xbf16> to vector<1x8x4xbf16>
    %185 = vector.extract_strided_slice %170 {offsets = [0, 28], sizes = [8, 4], strides = [1, 1]} : vector<8x32xbf16> to vector<8x4xbf16>
    %186 = vector.shape_cast %185 : vector<8x4xbf16> to vector<1x8x4xbf16>
    %187 = tpu.concatenate %172, %174, %176, %178, %180, %182, %184, %186 in 0 : vector<1x8x4xbf16>, vector<1x8x4xbf16>, vector<1x8x4xbf16>, vector<1x8x4xbf16>, vector<1x8x4xbf16>, vector<1x8x4xbf16>, vector<1x8x4xbf16>, vector<1x8x4xbf16> -> vector<8x8x4xbf16>
    %cst_63 = arith.constant -1.000000e+30 : f32
    %188 = vector.broadcast %cst_63 : f32 to vector<8x8x1xf32>
    %cst_64 = arith.constant 0.000000e+00 : f32
    %189 = vector.broadcast %cst_64 : f32 to vector<8x8x1xf32>
    %cst_65 = arith.constant 0.000000e+00 : f32
    %190 = vector.broadcast %cst_65 : f32 to vector<8x8x4xf32>
    %c0_66 = arith.constant 0 : index
    %c0_67 = arith.constant 0 : index
    %c0_68 = arith.constant 0 : index
    %191 = vector.load %arg36[%c0_66, %c0_67, %c0_68] : memref<8x16x4xbf16, #tpu.memory_space<vmem>>, vector<8x8x4xbf16>
    %c0_69 = arith.constant 0 : index
    %c0_70 = arith.constant 0 : index
    %c0_71 = arith.constant 0 : index
    %192 = vector.load %arg37[%c0_69, %c0_70, %c0_71] : memref<8x16x4xbf16, #tpu.memory_space<vmem>>, vector<8x8x4xbf16>
    "tpu.trace_start"() <{level = 10 : i32, message = "hqd,hkd->hqk"}> : () -> ()
    %cst_72 = arith.constant dense<0.000000e+00> : vector<8x8x8xf32>
    %193 = tpu.matmul %187, %191, %cst_72 {dimension_numbers = #tpu.dot_dimension_numbers<[2], [2], [1], [1], [0, 0, 0, 1, 1, 1], [0], [0]>} : vector<8x8x4xbf16>, vector<8x8x4xbf16>, vector<8x8x8xf32> -> vector<8x8x8xf32>
    "tpu.trace_stop"() : () -> ()
    %194 = vector.extract_strided_slice %9 {offsets = [0, 0], sizes = [1, 8], strides = [1, 1]} : vector<1x16xf32> to vector<1x8xf32>
    %195 = vector.shape_cast %194 : vector<1x8xf32> to vector<1x1x8xf32>
    %196 = vector.broadcast %195 : vector<1x1x8xf32> to vector<8x8x8xf32>
    %197 = arith.addf %193, %196 : vector<8x8x8xf32>
    %cst_73 = arith.constant dense<0xFF800000> : vector<8x8xf32>
    %198 = vector.multi_reduction <maximumf>, %197, %cst_73 [2] : vector<8x8x8xf32> to vector<8x8xf32>
    %199 = vector.shape_cast %198 : vector<8x8xf32> to vector<8x8x1xf32>
    %200 = arith.maximumf %188, %199 : vector<8x8x1xf32>
    %201 = arith.subf %188, %200 : vector<8x8x1xf32>
    %202 = math.exp %201 : vector<8x8x1xf32>
    %203 = vector.broadcast %200 : vector<8x8x1xf32> to vector<8x8x8xf32>
    %204 = arith.subf %197, %203 : vector<8x8x8xf32>
    %205 = math.exp %204 : vector<8x8x8xf32>
    %206 = arith.mulf %202, %189 : vector<8x8x1xf32>
    %cst_74 = arith.constant dense<0.000000e+00> : vector<8x8xf32>
    %207 = vector.multi_reduction <add>, %205, %cst_74 [2] : vector<8x8x8xf32> to vector<8x8xf32>
    %208 = vector.shape_cast %207 : vector<8x8xf32> to vector<8x8x1xf32>
    %209 = arith.addf %206, %208 : vector<8x8x1xf32>
    %210 = vector.broadcast %202 : vector<8x8x1xf32> to vector<8x8x4xf32>
    %211 = arith.mulf %210, %190 : vector<8x8x4xf32>
    %212 = arith.truncf %205 : vector<8x8x8xf32> to vector<8x8x8xbf16>
    "tpu.trace_start"() <{level = 10 : i32, message = "hqk,hkd->hqd"}> : () -> ()
    %cst_75 = arith.constant dense<0.000000e+00> : vector<8x8x4xf32>
    %213 = tpu.matmul %212, %192, %cst_75 {dimension_numbers = #tpu.dot_dimension_numbers<[2], [1], [1], [2], [0, 0, 0, 1, 1, 2], [0], [0]>} : vector<8x8x8xbf16>, vector<8x8x4xbf16>, vector<8x8x4xf32> -> vector<8x8x4xf32>
    "tpu.trace_stop"() : () -> ()
    %214 = arith.addf %211, %213 : vector<8x8x4xf32>
    %c0_76 = arith.constant 0 : index
    %c8_77 = arith.constant 8 : index
    %c0_78 = arith.constant 0 : index
    %215 = vector.load %arg36[%c0_76, %c8_77, %c0_78] : memref<8x16x4xbf16, #tpu.memory_space<vmem>>, vector<8x8x4xbf16>
    %c0_79 = arith.constant 0 : index
    %c8_80 = arith.constant 8 : index
    %c0_81 = arith.constant 0 : index
    %216 = vector.load %arg37[%c0_79, %c8_80, %c0_81] : memref<8x16x4xbf16, #tpu.memory_space<vmem>>, vector<8x8x4xbf16>
    "tpu.trace_start"() <{level = 10 : i32, message = "hqd,hkd->hqk"}> : () -> ()
    %cst_82 = arith.constant dense<0.000000e+00> : vector<8x8x8xf32>
    %217 = tpu.matmul %187, %215, %cst_82 {dimension_numbers = #tpu.dot_dimension_numbers<[2], [2], [1], [1], [0, 0, 0, 1, 1, 1], [0], [0]>} : vector<8x8x4xbf16>, vector<8x8x4xbf16>, vector<8x8x8xf32> -> vector<8x8x8xf32>
    "tpu.trace_stop"() : () -> ()
    %218 = vector.extract_strided_slice %9 {offsets = [0, 8], sizes = [1, 8], strides = [1, 1]} : vector<1x16xf32> to vector<1x8xf32>
    %219 = vector.shape_cast %218 : vector<1x8xf32> to vector<1x1x8xf32>
    %220 = vector.broadcast %219 : vector<1x1x8xf32> to vector<8x8x8xf32>
    %221 = arith.addf %217, %220 : vector<8x8x8xf32>
    %cst_83 = arith.constant dense<0xFF800000> : vector<8x8xf32>
    %222 = vector.multi_reduction <maximumf>, %221, %cst_83 [2] : vector<8x8x8xf32> to vector<8x8xf32>
    %223 = vector.shape_cast %222 : vector<8x8xf32> to vector<8x8x1xf32>
    %224 = arith.maximumf %200, %223 : vector<8x8x1xf32>
    %225 = arith.subf %200, %224 : vector<8x8x1xf32>
    %226 = math.exp %225 : vector<8x8x1xf32>
    %227 = vector.broadcast %224 : vector<8x8x1xf32> to vector<8x8x8xf32>
    %228 = arith.subf %221, %227 : vector<8x8x8xf32>
    %229 = math.exp %228 : vector<8x8x8xf32>
    %230 = arith.mulf %226, %209 : vector<8x8x1xf32>
    %cst_84 = arith.constant dense<0.000000e+00> : vector<8x8xf32>
    %231 = vector.multi_reduction <add>, %229, %cst_84 [2] : vector<8x8x8xf32> to vector<8x8xf32>
    %232 = vector.shape_cast %231 : vector<8x8xf32> to vector<8x8x1xf32>
    %233 = arith.addf %230, %232 : vector<8x8x1xf32>
    %234 = vector.broadcast %226 : vector<8x8x1xf32> to vector<8x8x4xf32>
    %235 = arith.mulf %234, %214 : vector<8x8x4xf32>
    %236 = arith.truncf %229 : vector<8x8x8xf32> to vector<8x8x8xbf16>
    "tpu.trace_start"() <{level = 10 : i32, message = "hqk,hkd->hqd"}> : () -> ()
    %cst_85 = arith.constant dense<0.000000e+00> : vector<8x8x4xf32>
    %237 = tpu.matmul %236, %216, %cst_85 {dimension_numbers = #tpu.dot_dimension_numbers<[2], [1], [1], [2], [0, 0, 0, 1, 1, 2], [0], [0]>} : vector<8x8x8xbf16>, vector<8x8x4xbf16>, vector<8x8x4xf32> -> vector<8x8x4xf32>
    "tpu.trace_stop"() : () -> ()
    %238 = arith.addf %235, %237 : vector<8x8x4xf32>
    %cst_86 = arith.constant 1.000000e-30 : f32
    %239 = vector.broadcast %cst_86 : f32 to vector<8x8x1xf32>
    %240 = arith.maximumf %233, %239 : vector<8x8x1xf32>
    %241 = tpu.reciprocal %240 {approx = true} : vector<8x8x1xf32> -> vector<8x8x1xf32>
    %242 = vector.broadcast %241 : vector<8x8x1xf32> to vector<8x8x4xf32>
    %243 = arith.mulf %238, %242 : vector<8x8x4xf32>
    %244 = vector.extract_strided_slice %243 {offsets = [0, 0, 0], sizes = [1, 8, 4], strides = [1, 1, 1]} : vector<8x8x4xf32> to vector<1x8x4xf32>
    %245 = vector.shape_cast %244 : vector<1x8x4xf32> to vector<8x4xf32>
    %246 = vector.extract_strided_slice %243 {offsets = [1, 0, 0], sizes = [1, 8, 4], strides = [1, 1, 1]} : vector<8x8x4xf32> to vector<1x8x4xf32>
    %247 = vector.shape_cast %246 : vector<1x8x4xf32> to vector<8x4xf32>
    %248 = vector.extract_strided_slice %243 {offsets = [2, 0, 0], sizes = [1, 8, 4], strides = [1, 1, 1]} : vector<8x8x4xf32> to vector<1x8x4xf32>
    %249 = vector.shape_cast %248 : vector<1x8x4xf32> to vector<8x4xf32>
    %250 = vector.extract_strided_slice %243 {offsets = [3, 0, 0], sizes = [1, 8, 4], strides = [1, 1, 1]} : vector<8x8x4xf32> to vector<1x8x4xf32>
    %251 = vector.shape_cast %250 : vector<1x8x4xf32> to vector<8x4xf32>
    %252 = vector.extract_strided_slice %243 {offsets = [4, 0, 0], sizes = [1, 8, 4], strides = [1, 1, 1]} : vector<8x8x4xf32> to vector<1x8x4xf32>
    %253 = vector.shape_cast %252 : vector<1x8x4xf32> to vector<8x4xf32>
    %254 = vector.extract_strided_slice %243 {offsets = [5, 0, 0], sizes = [1, 8, 4], strides = [1, 1, 1]} : vector<8x8x4xf32> to vector<1x8x4xf32>
    %255 = vector.shape_cast %254 : vector<1x8x4xf32> to vector<8x4xf32>
    %256 = vector.extract_strided_slice %243 {offsets = [6, 0, 0], sizes = [1, 8, 4], strides = [1, 1, 1]} : vector<8x8x4xf32> to vector<1x8x4xf32>
    %257 = vector.shape_cast %256 : vector<1x8x4xf32> to vector<8x4xf32>
    %258 = vector.extract_strided_slice %243 {offsets = [7, 0, 0], sizes = [1, 8, 4], strides = [1, 1, 1]} : vector<8x8x4xf32> to vector<1x8x4xf32>
    %259 = vector.shape_cast %258 : vector<1x8x4xf32> to vector<8x4xf32>
    %260 = tpu.concatenate %245, %247, %249, %251, %253, %255, %257, %259 in 1 : vector<8x4xf32>, vector<8x4xf32>, vector<8x4xf32>, vector<8x4xf32>, vector<8x4xf32>, vector<8x4xf32>, vector<8x4xf32>, vector<8x4xf32> -> vector<8x32xf32>
    %261 = arith.truncf %260 : vector<8x32xf32> to vector<8x32xbf16>
    %c0_87 = arith.constant 0 : index
    %c0_88 = arith.constant 0 : index
    %262 = vector.load %arg19[%c0_87, %c0_88] : memref<32x32xbf16, #tpu.memory_space<vmem>>, vector<32x32xbf16>
    %cst_89 = arith.constant dense<0.000000e+00> : vector<8x32xf32>
    %263 = tpu.matmul %261, %262, %cst_89 {dimension_numbers = #tpu.dot_dimension_numbers<[1], [0], [0], [1], [0, 0, 1, 1], [], []>} : vector<8x32xbf16>, vector<32x32xbf16>, vector<8x32xf32> -> vector<8x32xf32>
    %c0_90 = arith.constant 0 : index
    %c0_91 = arith.constant 0 : index
    %264 = vector.load %arg20[%c0_90, %c0_91] : memref<1x32xf32, #tpu.memory_space<vmem>>, vector<1x32xf32>
    %265 = vector.broadcast %264 : vector<1x32xf32> to vector<8x32xf32>
    %266 = arith.addf %263, %265 : vector<8x32xf32>
    %267 = arith.addf %163, %266 : vector<8x32xf32>
    %c0_92 = arith.constant 0 : index
    %c0_93 = arith.constant 0 : index
    %268 = vector.load %arg21[%c0_92, %c0_93] : memref<1x32xf32, #tpu.memory_space<vmem>>, vector<1x32xf32>
    %c0_94 = arith.constant 0 : index
    %c0_95 = arith.constant 0 : index
    %269 = vector.load %arg22[%c0_94, %c0_95] : memref<1x32xf32, #tpu.memory_space<vmem>>, vector<1x32xf32>
    %cst_96 = arith.constant dense<0.000000e+00> : vector<8xf32>
    %270 = vector.multi_reduction <add>, %267, %cst_96 [1] : vector<8x32xf32> to vector<8xf32>
    %271 = vector.shape_cast %270 : vector<8xf32> to vector<8x1xf32>
    %cst_97 = arith.constant 3.200000e+01 : f32
    %272 = vector.broadcast %cst_97 : f32 to vector<8x1xf32>
    %273 = arith.divf %271, %272 : vector<8x1xf32>
    %274 = vector.broadcast %273 : vector<8x1xf32> to vector<8x32xf32>
    %275 = arith.subf %267, %274 : vector<8x32xf32>
    %276 = arith.mulf %275, %275 : vector<8x32xf32>
    %cst_98 = arith.constant dense<0.000000e+00> : vector<8xf32>
    %277 = vector.multi_reduction <add>, %276, %cst_98 [1] : vector<8x32xf32> to vector<8xf32>
    %278 = vector.shape_cast %277 : vector<8xf32> to vector<8x1xf32>
    %cst_99 = arith.constant 3.200000e+01 : f32
    %279 = vector.broadcast %cst_99 : f32 to vector<8x1xf32>
    %280 = arith.divf %278, %279 : vector<8x1xf32>
    %281 = vector.broadcast %273 : vector<8x1xf32> to vector<8x32xf32>
    %282 = arith.subf %267, %281 : vector<8x32xf32>
    %cst_100 = arith.constant 9.99999974E-6 : f32
    %283 = vector.broadcast %cst_100 : f32 to vector<8x1xf32>
    %284 = arith.addf %280, %283 : vector<8x1xf32>
    %285 = math.rsqrt %284 : vector<8x1xf32>
    %286 = vector.broadcast %285 : vector<8x1xf32> to vector<8x32xf32>
    %287 = arith.mulf %282, %286 : vector<8x32xf32>
    %288 = vector.broadcast %268 : vector<1x32xf32> to vector<8x32xf32>
    %289 = arith.mulf %287, %288 : vector<8x32xf32>
    %290 = vector.broadcast %269 : vector<1x32xf32> to vector<8x32xf32>
    %291 = arith.addf %289, %290 : vector<8x32xf32>
    %292 = arith.truncf %291 : vector<8x32xf32> to vector<8x32xbf16>
    %cst_101 = arith.constant 0.000000e+00 : f32
    %293 = vector.broadcast %cst_101 : f32 to vector<8x32xf32>
    %c0_102 = arith.constant 0 : index
    %c0_103 = arith.constant 0 : index
    %294 = vector.load %arg23[%c0_102, %c0_103] : memref<32x64xbf16, #tpu.memory_space<vmem>>, vector<32x32xbf16>
    %c0_104 = arith.constant 0 : index
    %c0_105 = arith.constant 0 : index
    %295 = vector.load %arg24[%c0_104, %c0_105] : memref<1x64xf32, #tpu.memory_space<vmem>>, vector<1x32xf32>
    %cst_106 = arith.constant dense<0.000000e+00> : vector<8x32xf32>
    %296 = tpu.matmul %292, %294, %cst_106 {dimension_numbers = #tpu.dot_dimension_numbers<[1], [0], [0], [1], [0, 0, 1, 1], [], []>} : vector<8x32xbf16>, vector<32x32xbf16>, vector<8x32xf32> -> vector<8x32xf32>
    %297 = vector.broadcast %295 : vector<1x32xf32> to vector<8x32xf32>
    %298 = arith.addf %296, %297 : vector<8x32xf32>
    %cst_107 = arith.constant 5.000000e-01 : f32
    %299 = vector.broadcast %cst_107 : f32 to vector<8x32xf32>
    %300 = arith.mulf %299, %298 : vector<8x32xf32>
    %301 = arith.mulf %298, %298 : vector<8x32xf32>
    %302 = arith.mulf %298, %301 : vector<8x32xf32>
    %cst_108 = arith.constant 4.471500e-02 : f32
    %303 = vector.broadcast %cst_108 : f32 to vector<8x32xf32>
    %304 = arith.mulf %303, %302 : vector<8x32xf32>
    %305 = arith.addf %298, %304 : vector<8x32xf32>
    %cst_109 = arith.constant 0.797884583 : f32
    %306 = vector.broadcast %cst_109 : f32 to vector<8x32xf32>
    %307 = arith.mulf %306, %305 : vector<8x32xf32>
    %308 = math.tanh %307 : vector<8x32xf32>
    %cst_110 = arith.constant 1.000000e+00 : f32
    %309 = vector.broadcast %cst_110 : f32 to vector<8x32xf32>
    %310 = arith.addf %309, %308 : vector<8x32xf32>
    %311 = arith.mulf %300, %310 : vector<8x32xf32>
    %c0_111 = arith.constant 0 : index
    %c0_112 = arith.constant 0 : index
    %312 = vector.load %arg25[%c0_111, %c0_112] : memref<64x32xbf16, #tpu.memory_space<vmem>>, vector<32x32xbf16>
    %313 = arith.truncf %311 : vector<8x32xf32> to vector<8x32xbf16>
    %cst_113 = arith.constant dense<0.000000e+00> : vector<8x32xf32>
    %314 = tpu.matmul %313, %312, %cst_113 {dimension_numbers = #tpu.dot_dimension_numbers<[1], [0], [0], [1], [0, 0, 1, 1], [], []>} : vector<8x32xbf16>, vector<32x32xbf16>, vector<8x32xf32> -> vector<8x32xf32>
    %315 = arith.addf %293, %314 : vector<8x32xf32>
    %c0_114 = arith.constant 0 : index
    %c32 = arith.constant 32 : index
    %316 = vector.load %arg23[%c0_114, %c32] : memref<32x64xbf16, #tpu.memory_space<vmem>>, vector<32x32xbf16>
    %c0_115 = arith.constant 0 : index
    %c32_116 = arith.constant 32 : index
    %317 = vector.load %arg24[%c0_115, %c32_116] : memref<1x64xf32, #tpu.memory_space<vmem>>, vector<1x32xf32>
    %cst_117 = arith.constant dense<0.000000e+00> : vector<8x32xf32>
    %318 = tpu.matmul %292, %316, %cst_117 {dimension_numbers = #tpu.dot_dimension_numbers<[1], [0], [0], [1], [0, 0, 1, 1], [], []>} : vector<8x32xbf16>, vector<32x32xbf16>, vector<8x32xf32> -> vector<8x32xf32>
    %319 = vector.broadcast %317 : vector<1x32xf32> to vector<8x32xf32>
    %320 = arith.addf %318, %319 : vector<8x32xf32>
    %cst_118 = arith.constant 5.000000e-01 : f32
    %321 = vector.broadcast %cst_118 : f32 to vector<8x32xf32>
    %322 = arith.mulf %321, %320 : vector<8x32xf32>
    %323 = arith.mulf %320, %320 : vector<8x32xf32>
    %324 = arith.mulf %320, %323 : vector<8x32xf32>
    %cst_119 = arith.constant 4.471500e-02 : f32
    %325 = vector.broadcast %cst_119 : f32 to vector<8x32xf32>
    %326 = arith.mulf %325, %324 : vector<8x32xf32>
    %327 = arith.addf %320, %326 : vector<8x32xf32>
    %cst_120 = arith.constant 0.797884583 : f32
    %328 = vector.broadcast %cst_120 : f32 to vector<8x32xf32>
    %329 = arith.mulf %328, %327 : vector<8x32xf32>
    %330 = math.tanh %329 : vector<8x32xf32>
    %cst_121 = arith.constant 1.000000e+00 : f32
    %331 = vector.broadcast %cst_121 : f32 to vector<8x32xf32>
    %332 = arith.addf %331, %330 : vector<8x32xf32>
    %333 = arith.mulf %322, %332 : vector<8x32xf32>
    %c32_122 = arith.constant 32 : index
    %c0_123 = arith.constant 0 : index
    %334 = vector.load %arg25[%c32_122, %c0_123] : memref<64x32xbf16, #tpu.memory_space<vmem>>, vector<32x32xbf16>
    %335 = arith.truncf %333 : vector<8x32xf32> to vector<8x32xbf16>
    %cst_124 = arith.constant dense<0.000000e+00> : vector<8x32xf32>
    %336 = tpu.matmul %335, %334, %cst_124 {dimension_numbers = #tpu.dot_dimension_numbers<[1], [0], [0], [1], [0, 0, 1, 1], [], []>} : vector<8x32xbf16>, vector<32x32xbf16>, vector<8x32xf32> -> vector<8x32xf32>
    %337 = arith.addf %315, %336 : vector<8x32xf32>
    %c0_125 = arith.constant 0 : index
    %c0_126 = arith.constant 0 : index
    %338 = vector.load %arg26[%c0_125, %c0_126] : memref<1x32xf32, #tpu.memory_space<vmem>>, vector<1x32xf32>
    %339 = vector.broadcast %338 : vector<1x32xf32> to vector<8x32xf32>
    %340 = arith.addf %337, %339 : vector<8x32xf32>
    %341 = arith.addf %291, %340 : vector<8x32xf32>
    %c0_127 = arith.constant 0 : index
    %c0_128 = arith.constant 0 : index
    %342 = vector.load %arg27[%c0_127, %c0_128] : memref<1x32xf32, #tpu.memory_space<vmem>>, vector<1x32xf32>
    %c0_129 = arith.constant 0 : index
    %c0_130 = arith.constant 0 : index
    %343 = vector.load %arg28[%c0_129, %c0_130] : memref<1x32xf32, #tpu.memory_space<vmem>>, vector<1x32xf32>
    %cst_131 = arith.constant dense<0.000000e+00> : vector<8xf32>
    %344 = vector.multi_reduction <add>, %341, %cst_131 [1] : vector<8x32xf32> to vector<8xf32>
    %345 = vector.shape_cast %344 : vector<8xf32> to vector<8x1xf32>
    %cst_132 = arith.constant 3.200000e+01 : f32
    %346 = vector.broadcast %cst_132 : f32 to vector<8x1xf32>
    %347 = arith.divf %345, %346 : vector<8x1xf32>
    %348 = vector.broadcast %347 : vector<8x1xf32> to vector<8x32xf32>
    %349 = arith.subf %341, %348 : vector<8x32xf32>
    %350 = arith.mulf %349, %349 : vector<8x32xf32>
    %cst_133 = arith.constant dense<0.000000e+00> : vector<8xf32>
    %351 = vector.multi_reduction <add>, %350, %cst_133 [1] : vector<8x32xf32> to vector<8xf32>
    %352 = vector.shape_cast %351 : vector<8xf32> to vector<8x1xf32>
    %cst_134 = arith.constant 3.200000e+01 : f32
    %353 = vector.broadcast %cst_134 : f32 to vector<8x1xf32>
    %354 = arith.divf %352, %353 : vector<8x1xf32>
    %355 = vector.broadcast %347 : vector<8x1xf32> to vector<8x32xf32>
    %356 = arith.subf %341, %355 : vector<8x32xf32>
    %cst_135 = arith.constant 9.99999974E-6 : f32
    %357 = vector.broadcast %cst_135 : f32 to vector<8x1xf32>
    %358 = arith.addf %354, %357 : vector<8x1xf32>
    %359 = math.rsqrt %358 : vector<8x1xf32>
    %360 = vector.broadcast %359 : vector<8x1xf32> to vector<8x32xf32>
    %361 = arith.mulf %356, %360 : vector<8x32xf32>
    %362 = vector.broadcast %342 : vector<1x32xf32> to vector<8x32xf32>
    %363 = arith.mulf %361, %362 : vector<8x32xf32>
    %364 = vector.broadcast %343 : vector<1x32xf32> to vector<8x32xf32>
    %365 = arith.addf %363, %364 : vector<8x32xf32>
    %c0_136 = arith.constant 0 : index
    %c0_137 = arith.constant 0 : index
    %c0_138 = arith.constant 0 : index
    %366 = vector.load %arg29[%c0_136, %c0_137, %c0_138] : memref<1x8x32xf32, #tpu.memory_space<vmem>>, vector<1x8x32xf32>
    %367 = vector.shape_cast %366 : vector<1x8x32xf32> to vector<8x32xf32>
    %368 = vector.shape_cast %365 : vector<8x32xf32> to vector<1x8x32xf32>
    tpu.vector_store %arg29[%c0_136, %c0_137, %c0_138], %368 {strides = array<i32>} : memref<1x8x32xf32, #tpu.memory_space<vmem>>, vector<1x8x32xf32>,
    return
  }
  func.func @transform_0(%arg0: i32, %arg1: i32) -> (i32, i32, i32) {
    %c0_i32 = arith.constant 0 : i32
    %c0_i32_0 = arith.constant 0 : i32
    %c0_i32_1 = arith.constant 0 : i32
    return %arg0, %c0_i32, %c0_i32_0 : i32, i32, i32
  }
  func.func @transform_1(%arg0: i32, %arg1: i32) -> (i32, i32, i32) {
    %c0_i32 = arith.constant 0 : i32
    %c0_i32_0 = arith.constant 0 : i32
    return %arg0, %arg1, %c0_i32 : i32, i32, i32
  }
  func.func @transform_2(%arg0: i32, %arg1: i32) -> (i32, i32, i32) {
    %c0_i32 = arith.constant 0 : i32
    %c0_i32_0 = arith.constant 0 : i32
    %c0_i32_1 = arith.constant 0 : i32
    return %arg0, %c0_i32, %c0_i32_0 : i32, i32, i32
  }
  func.func @transform_3(%arg0: i32, %arg1: i32) -> (i32, i32, i32, i32) {
    %c0_i32 = arith.constant 0 : i32
    %c0_i32_0 = arith.constant 0 : i32
    %c0_i32_1 = arith.constant 0 : i32
    %c0_i32_2 = arith.constant 0 : i32
    return %arg0, %c0_i32, %c0_i32_0, %c0_i32_1 : i32, i32, i32, i32
  }
  func.func @transform_4(%arg0: i32, %arg1: i32) -> (i32, i32, i32, i32) {
    %c0_i32 = arith.constant 0 : i32
    %c0_i32_0 = arith.constant 0 : i32
    %c0_i32_1 = arith.constant 0 : i32
    %c0_i32_2 = arith.constant 0 : i32
    return %arg0, %c0_i32, %c0_i32_0, %c0_i32_1 : i32, i32, i32, i32
  }
  func.func @transform_5(%arg0: i32, %arg1: i32) -> (i32, i32) {
    %c0_i32 = arith.constant 0 : i32
    %c0_i32_0 = arith.constant 0 : i32
    %c0_i32_1 = arith.constant 0 : i32
    return %c0_i32, %c0_i32_0 : i32, i32
  }
  func.func @transform_6(%arg0: i32, %arg1: i32) -> (i32, i32) {
    %c0_i32 = arith.constant 0 : i32
    %c0_i32_0 = arith.constant 0 : i32
    %c0_i32_1 = arith.constant 0 : i32
    return %c0_i32, %c0_i32_0 : i32, i32
  }
  func.func @transform_7(%arg0: i32, %arg1: i32) -> (i32, i32) {
    %c0_i32 = arith.constant 0 : i32
    %c0_i32_0 = arith.constant 0 : i32
    %c0_i32_1 = arith.constant 0 : i32
    return %c0_i32, %c0_i32_0 : i32, i32
  }
  func.func @transform_8(%arg0: i32, %arg1: i32) -> (i32, i32) {
    %c0_i32 = arith.constant 0 : i32
    %c0_i32_0 = arith.constant 0 : i32
    %c0_i32_1 = arith.constant 0 : i32
    return %c0_i32, %c0_i32_0 : i32, i32
  }
  func.func @transform_9(%arg0: i32, %arg1: i32) -> (i32, i32) {
    %c0_i32 = arith.constant 0 : i32
    %c0_i32_0 = arith.constant 0 : i32
    %c0_i32_1 = arith.constant 0 : i32
    return %c0_i32, %c0_i32_0 : i32, i32
  }
  func.func @transform_10(%arg0: i32, %arg1: i32) -> (i32, i32) {
    %c0_i32 = arith.constant 0 : i32
    %c0_i32_0 = arith.constant 0 : i32
    %c0_i32_1 = arith.constant 0 : i32
    return %c0_i32, %c0_i32_0 : i32, i32
  }
  func.func @transform_11(%arg0: i32, %arg1: i32) -> (i32, i32) {
    %c0_i32 = arith.constant 0 : i32
    %c0_i32_0 = arith.constant 0 : i32
    %c0_i32_1 = arith.constant 0 : i32
    return %c0_i32, %c0_i32_0 : i32, i32
  }
  func.func @transform_12(%arg0: i32, %arg1: i32) -> (i32, i32) {
    %c0_i32 = arith.constant 0 : i32
    %c0_i32_0 = arith.constant 0 : i32
    %c0_i32_1 = arith.constant 0 : i32
    return %c0_i32, %c0_i32_0 : i32, i32
  }
  func.func @transform_13(%arg0: i32, %arg1: i32) -> (i32, i32) {
    %c0_i32 = arith.constant 0 : i32
    %c0_i32_0 = arith.constant 0 : i32
    %c0_i32_1 = arith.constant 0 : i32
    return %c0_i32, %c0_i32_0 : i32, i32
  }
  func.func @transform_14(%arg0: i32, %arg1: i32) -> (i32, i32) {
    %c0_i32 = arith.constant 0 : i32
    %c0_i32_0 = arith.constant 0 : i32
    %c0_i32_1 = arith.constant 0 : i32
    return %c0_i32, %c0_i32_0 : i32, i32
  }
  func.func @transform_15(%arg0: i32, %arg1: i32) -> (i32, i32) {
    %c0_i32 = arith.constant 0 : i32
    %c0_i32_0 = arith.constant 0 : i32
    %c0_i32_1 = arith.constant 0 : i32
    return %c0_i32, %c0_i32_0 : i32, i32
  }
  func.func @transform_16(%arg0: i32, %arg1: i32) -> (i32, i32) {
    %c0_i32 = arith.constant 0 : i32
    %c0_i32_0 = arith.constant 0 : i32
    %c0_i32_1 = arith.constant 0 : i32
    return %c0_i32, %c0_i32_0 : i32, i32
  }
  func.func @transform_17(%arg0: i32, %arg1: i32) -> (i32, i32) {
    %c0_i32 = arith.constant 0 : i32
    %c0_i32_0 = arith.constant 0 : i32
    %c0_i32_1 = arith.constant 0 : i32
    return %c0_i32, %c0_i32_0 : i32, i32
  }
  func.func @transform_18(%arg0: i32, %arg1: i32) -> (i32, i32) {
    %c0_i32 = arith.constant 0 : i32
    %c0_i32_0 = arith.constant 0 : i32
    %c0_i32_1 = arith.constant 0 : i32
    return %c0_i32, %c0_i32_0 : i32, i32
  }
  func.func @transform_19(%arg0: i32, %arg1: i32) -> (i32, i32) {
    %c0_i32 = arith.constant 0 : i32
    %c0_i32_0 = arith.constant 0 : i32
    %c0_i32_1 = arith.constant 0 : i32
    return %c0_i32, %c0_i32_0 : i32, i32
  }
  func.func @transform_20(%arg0: i32, %arg1: i32) -> (i32, i32) {
    %c0_i32 = arith.constant 0 : i32
    %c0_i32_0 = arith.constant 0 : i32
    %c0_i32_1 = arith.constant 0 : i32
    return %c0_i32, %c0_i32_0 : i32, i32
  }
  func.func @transform_21(%arg0: i32, %arg1: i32) -> (i32, i32) {
    %c0_i32 = arith.constant 0 : i32
    %c0_i32_0 = arith.constant 0 : i32
    %c0_i32_1 = arith.constant 0 : i32
    return %c0_i32, %c0_i32_0 : i32, i32
  }
  func.func @transform_22(%arg0: i32, %arg1: i32) -> (i32, i32) {
    %c0_i32 = arith.constant 0 : i32
    %c0_i32_0 = arith.constant 0 : i32
    %c0_i32_1 = arith.constant 0 : i32
    return %c0_i32, %c0_i32_0 : i32, i32
  }
  func.func @transform_23(%arg0: i32, %arg1: i32) -> (i32, i32) {
    %c0_i32 = arith.constant 0 : i32
    %c0_i32_0 = arith.constant 0 : i32
    %c0_i32_1 = arith.constant 0 : i32
    return %c0_i32, %c0_i32_0 : i32, i32
  }
  func.func @transform_24(%arg0: i32, %arg1: i32) -> (i32, i32) {
    %c0_i32 = arith.constant 0 : i32
    %c0_i32_0 = arith.constant 0 : i32
    %c0_i32_1 = arith.constant 0 : i32
    return %c0_i32, %c0_i32_0 : i32, i32
  }
  func.func @transform_25(%arg0: i32, %arg1: i32) -> (i32, i32) {
    %c0_i32 = arith.constant 0 : i32
    %c0_i32_0 = arith.constant 0 : i32
    %c0_i32_1 = arith.constant 0 : i32
    return %c0_i32, %c0_i32_0 : i32, i32
  }
  func.func @transform_26(%arg0: i32, %arg1: i32) -> (i32, i32) {
    %c0_i32 = arith.constant 0 : i32
    %c0_i32_0 = arith.constant 0 : i32
    %c0_i32_1 = arith.constant 0 : i32
    return %c0_i32, %c0_i32_0 : i32, i32
  }
  func.func @transform_27(%arg0: i32, %arg1: i32) -> (i32, i32, i32) {
    %c0_i32 = arith.constant 0 : i32
    %c0_i32_0 = arith.constant 0 : i32
    return %arg0, %arg1, %c0_i32 : i32, i32, i32
  }
  func.func @transform_28(%arg0: i32, %arg1: i32) -> (i32, i32, i32) {
    %c0_i32 = arith.constant 0 : i32
    %c0_i32_0 = arith.constant 0 : i32
    %c0_i32_1 = arith.constant 0 : i32
    return %arg0, %c0_i32, %c0_i32_0 : i32, i32, i32
  }
  func.func @transform_29(%arg0: i32, %arg1: i32) -> (i32, i32, i32) {
    %c0_i32 = arith.constant 0 : i32
    %c0_i32_0 = arith.constant 0 : i32
    %c0_i32_1 = arith.constant 0 : i32
    return %arg0, %c0_i32, %c0_i32_0 : i32, i32, i32
  }
  func.func @transform_30(%arg0: i32, %arg1: i32) -> (i32, i32, i32) {
    %c0_i32 = arith.constant 0 : i32
    %c0_i32_0 = arith.constant 0 : i32
    %c0_i32_1 = arith.constant 0 : i32
    return %arg0, %c0_i32, %c0_i32_0 : i32, i32, i32
  }
  func.func @transform_31(%arg0: i32, %arg1: i32) -> (i32, i32, i32) {
    %c0_i32 = arith.constant 0 : i32
    %c0_i32_0 = arith.constant 0 : i32
    %c0_i32_1 = arith.constant 0 : i32
    return %arg0, %c0_i32, %c0_i32_0 : i32, i32, i32
  }
}

</mosaic_0001>

<bundles_post_ra>
// kernel: tpu_custom_call.1
= control target key start
LH: loop header
LB: loop body
LE: loop exit
PB: predicated region body
PF: predicated region fallthrough
CT: control target
= control target key end

     0   :  { %s8710_s6 = smov 1   ;;  %s8711_s10 = smov 2   ;;  %s10958_s0 = inlined_call_operand.smem [shape: u32[32], index: -1, kind: input, shape index: {}] }
   0x1   :  { %s8811_s5 = sld [smem:[%s10958_s0]]   ;;  %s8712_s14 = smov 3  }
   0x2   :  { %s8816_s9 = sld [smem:[%s10958_s0 + %s8710_s6]]   ;;  %s8713_s18 = smov 4  }
   0x3   :  { %s8821_s13 = sld [smem:[%s10958_s0 + %s8711_s10]]   ;;  %s8714_s22 = smov 5  }
   0x4   :  { %s8826_s17 = sld [smem:[%s10958_s0 + %s8712_s14]]   ;;  %s8715_s26 = smov 6  }
   0x5   :  { %s8831_s21 = sld [smem:[%s10958_s0 + %s8713_s18]]   ;;  %s8716_s30 = smov 7  }
   0x6   :  { %s8836_s25 = sld [smem:[%s10958_s0 + %s8714_s22]]   ;;  %s8717_s4 = smov 8  }
   0x7   :  { %11044 = sst [smem:[#allocation53_spill]] %s8811_s5  ;;  %s8718_s10 = smov 9  }
   0x8   :  { %11045 = sst [smem:[#allocation54_spill]] %s8816_s9  ;;  %s8719_s15 = smov 10  }
   0x9   :  { %11046 = sst [smem:[#allocation55_spill]] %s8821_s13  ;;  %s8720_s20 = smov 11  }
   0xa   :  { %11047 = sst [smem:[#allocation56_spill]] %s8826_s17  ;;  %s8722_s1 = smov 13  }
   0xb   :  { %11048 = sst [smem:[#allocation57_spill]] %s8831_s21  ;;  %s8723_s7 = smov 14  }
   0xc   :  { %11049 = sst [smem:[#allocation58_spill]] %s8836_s25  ;;  %s8725_s22 = smov 16  }
   0xd   :  { %s8841_s29 = sld [smem:[%s10958_s0 + %s8715_s26]]   ;;  %s8721_s26 = smov 12  }
   0xe   :  { %s8846_s3 = sld [smem:[%s10958_s0 + %s8716_s30]]   ;;  %s8726_s28 = smov 17  }
   0xf   :  { %s8851_s8 = sld [smem:[%s10958_s0 + %s8717_s4]]  }
  0x10   :  { %s8856_s14 = sld [smem:[%s10958_s0 + %s8718_s10]]  }
  0x11   :  { %s8861_s19 = sld [smem:[%s10958_s0 + %s8719_s15]]   ;;  %s8724_s15 = smov 15  }
  0x12   :  { %s8866_s24 = sld [smem:[%s10958_s0 + %s8720_s20]]  }
  0x13   :  { %11050 = sst [smem:[#allocation59_spill]] %s8841_s29 }
  0x14   :  { %11051 = sst [smem:[#allocation60_spill]] %s8846_s3 }
  0x15   :  { %11052 = sst [smem:[#allocation61_spill]] %s8851_s8 }
  0x16   :  { %11053 = sst [smem:[#allocation62_spill]] %s8856_s14 }
  0x17   :  { %11054 = sst [smem:[#allocation63_spill]] %s8861_s19 }
  0x18   :  { %11055 = sst [smem:[#allocation64_spill]] %s8866_s24 }
  0x19   :  { %s8871_s30 = sld [smem:[%s10958_s0 + %s8721_s26]]  }
  0x1a   :  { %s8876_s6 = sld [smem:[%s10958_s0 + %s8722_s1]]  }
  0x1b   :  { %s8881_s12 = sld [smem:[%s10958_s0 + %s8723_s7]]   ;;  %s8727_s7 = smov 18  }
  0x1c   :  { %s8886_s20 = sld [smem:[%s10958_s0 + %s8724_s15]]   ;;  %s8728_s15 = smov 19  }
  0x1d   :  { %s8891_s27 = sld [smem:[%s10958_s0 + %s8725_s22]]   ;;  %s8729_s22 = smov 20  }
  0x1e   :  { %s8896_s4 = sld [smem:[%s10958_s0 + %s8726_s28]]   ;;  %s8730_s28 = smov 21  }
  0x1f   :  { %11056 = sst [smem:[#allocation65_spill]] %s8871_s30 }
  0x20   :  { %11057 = sst [smem:[#allocation66_spill]] %s8876_s6 }
  0x21   :  { %11058 = sst [smem:[#allocation67_spill]] %s8881_s12 }
  0x22   :  { %11059 = sst [smem:[#allocation68_spill]] %s8886_s20 }
  0x23   :  { %11060 = sst [smem:[#allocation69_spill]] %s8891_s27 }
  0x24   :  { %11061 = sst [smem:[#allocation70_spill]] %s8896_s4 }
  0x25   :  { %s8901_s14 = sld [smem:[%s10958_s0 + %s8727_s7]]   ;;  %s8731_s7 = smov 22  }
  0x26   :  { %s8906_s25 = sld [smem:[%s10958_s0 + %s8728_s15]]   ;;  %s8732_s15 = smov 23  }
  0x27   :  { %s8911_s5 = sld [smem:[%s10958_s0 + %s8729_s22]]   ;;  %s8733_s22 = smov 24  }
  0x28   :  { %s8916_s21 = sld [smem:[%s10958_s0 + %s8730_s28]]   ;;  %s8734_s28 = smov 25  }
  0x29   :  { %s8921_s17 = sld [smem:[%s10958_s0 + %s8731_s7]]   ;;  %s8735_s7 = smov 26  }
  0x2a   :  { %s8936_s9 = sld [smem:[%s10958_s0 + %s8734_s28]]   ;;  %s8738_s28 = smov 29  }
  0x2b   :  { %11062 = sst [smem:[#allocation71_spill]] %s8901_s14 }
  0x2c   :  { %11063 = sst [smem:[#allocation72_spill]] %s8906_s25 }
  0x2d   :  { %11064 = sst [smem:[#allocation73_spill]] %s8911_s5 }
  0x2e   :  { %11065 = sst [smem:[#allocation74_spill]] %s8916_s21 }
  0x2f   :  { %11066 = sst [smem:[#allocation75_spill]] %s8921_s17 }
  0x30   :  { %s8926_s25 = sld [smem:[%s10958_s0 + %s8732_s15]]   ;;  %s8736_s15 = smov 27  }
  0x31   :  { %s8931_s5 = sld [smem:[%s10958_s0 + %s8733_s22]]   ;;  %s8737_s22 = smov 28  }
  0x32   :  { %11069 = sst [smem:[#allocation78_spill]] %s8936_s9 }
  0x33   :  { %s8941_s17 = sld [smem:[%s10958_s0 + %s8735_s7]]   ;;  %s8739_s7 = smov 30  }
  0x34   :  { %s8956_s9 = sld [smem:[%s10958_s0 + %s8738_s28]]  }
  0x36   :  { %11067 = sst [smem:[#allocation76_spill]] %s8926_s25 }
  0x37   :  { %11068 = sst [smem:[#allocation77_spill]] %s8931_s5 }
  0x38   :  { %s8946_s25 = sld [smem:[%s10958_s0 + %s8736_s15]]   ;;  %s8740_s15 = smov 31  }
  0x39   :  { %11070 = sst [smem:[#allocation79_spill]] %s8941_s17 }
  0x3a   :  { %s8951_s5 = sld [smem:[%s10958_s0 + %s8737_s22]]  }
  0x3b   :  { %11073 = sst [smem:[#allocation82_spill]] %s8956_s9 }
  0x3c   :  { %s8961_s17 = sld [smem:[%s10958_s0 + %s8739_s7]]  }
  0x3e   :  { %11071 = sst [smem:[#allocation80_spill]] %s8946_s25 }
  0x3f   :  { %s8966_s25 = sld [smem:[%s10958_s0 + %s8740_s15]]  }
  0x40   :  { %11072 = sst [smem:[#allocation81_spill]] %s8951_s5 }
  0x42   :  { %11074 = sst [smem:[#allocation83_spill]] %s8961_s17 }
  0x45   :  { %11075 = sst [smem:[#allocation84_spill]] %s8966_s25 }
  0x46   :  { %69 = vsyncpa [#allocation7], 0 }
  0x47   :  { %71 = vsyncpa [#allocation7 + $0x1], 0 }
  0x48   :  { %72 = vsyncpa [#allocation10], 0 }
  0x49   :  { %74 = vsyncpa [#allocation10 + $0x1], 0 }
  0x4a   :  { %75 = vsyncpa [#allocation13], 0 }
  0x4b   :  { %77 = vsyncpa [#allocation13 + $0x1], 0 }
  0x4c   :  { %78 = vsyncpa [#allocation16], 0 }
  0x4d   :  { %79 = vsyncpa [#allocation19], 0 }
  0x4e   :  { %80 = vsyncpa [#allocation22], 0 }
  0x4f   :  { %81 = vsyncpa [#allocation25], 0 }
  0x50   :  { %82 = vsyncpa [#allocation28], 0 }
  0x51   :  { %83 = vsyncpa [#allocation31], 0 }
  0x52   :  { %84 = vsyncpa [#allocation8], 0 }
  0x53   :  { %86 = vsyncpa [#allocation8 + $0x1], 0 }
  0x54   :  { %87 = vsyncpa [#allocation35], 0 }
  0x55   :  { %89 = vsyncpa [#allocation35 + $0x1], 0 }
  0x56   :  { %90 = vsyncpa [#allocation38], 0 }
  0x57   :  { %92 = vsyncpa [#allocation38 + $0x1], 0  ;;  %s8968_s0 = smov 0   ;;  %s8970_s22 = smov 0  }
  0x58   :  { %s8972_s23 = smov 0   ;;  %s8974_s26 = smov 0  }
  0x59   :  { %s8976_s28 = smov 0   ;;  %s8978_s1 = smov 0  }
  0x5a   :  { %s8980_s2 = smov 0   ;;  %s8982_s7 = smov 0  }
  0x5b   :  { %s8984_s10 = smov 0   ;;  %s8986_s11 = smov 0  }
  0x5c   :  { %s8988_s15 = smov 0  }
  0x5d LB: > { %s11076_s13 = sld [smem:[#allocation55_spill]]  ;;  %s9024_s16 = sadd.s32 4294967295, %s8708_s15   ;;  %s8668_s0 = sphi %s8968_s0, %s11212_s0   ;;  %s8708_s15 = sphi %s8988_s15, %s98_s15   ;;  %s8704_s11 = sphi %s8986_s11, %s11211_s11   ;;  %s8700_s10 = sphi %s8984_s10, %s11210_s10   ;;  %s8696_s7 = sphi %s8982_s7, %s11217_s7   ;;  %s8692_s2 = sphi %s8980_s2, %s11208_s2   ;;  %s8688_s1 = sphi %s8978_s1, %s11216_s1   ;;  %s8684_s28 = sphi %s8976_s28, %s11215_s28   ;;  %s8680_s26 = sphi %s8974_s26, %s11214_s26   ;;  %s8676_s23 = sphi %s8972_s23, %s11206_s23   ;;  %s8672_s22 = sphi %s8970_s22, %s11213_s22  }
  0x5e   : > { %11077 = sst [smem:[#allocation85_spill]] %s8668_s0  ;;  %p6653_p0 = scmp.ge.s32.totalorder %s8708_s15, 1 }
  0x5f   : > { %11078 = sst [smem:[#allocation86_spill]] %s8676_s23  ;;  %p10975_p1 = scmp.eq.s32.totalorder %s9024_s16, 0 }
  0x60   : > { %11079 = sst [smem:[#allocation87_spill]] %s8680_s26  ;;  %p841_p2 = scmp.lt.s32.totalorder %s8708_s15, 5 }
  0x61   : > { %11080 = sst [smem:[#allocation88_spill]] %s8692_s2  ;;  %s8741_s25 = smov [#allocation14]  }
  0x62   : > { %11081 = sst [smem:[#allocation89_spill]] %s8696_s7  ;;  %p9029_p3 = pnand %p6653_p0, %p841_p2 }
  0x63   : > { %11082 = sst [smem:[#allocation90_spill]] %s8700_s10  ;;  %s857_s9 = sshll.u32 %s8741_s25, 4  ;;  %s858_s9 = int_to_ptr.vmem [resolvable:$true] %s857_s9 }
  0x64   : > { %11083 = sst [smem:[#allocation91_spill]] %s8704_s11  ;;  %p7532_p4 = pneg %p9029_p3 }
  0x65   : > { %s11084_s18 = scalar_select %p9029_p3, 1, 0 }
  0x66   : > { %s8742_s17 = smov [#allocation15]   ;;  %p9037_p5 = pnand %p7532_p4, %p10975_p1 }
  0x67   : > { %11085 = sst [smem:[#allocation92_spill]] %s11084_s18  ;;  %s867_s5 = sshll.u32 %s8742_s17, 4  ;;  %s9041_s5 = int_to_ptr.vmem [resolvable:$true] %s867_s5 }
  0x68   : > { %s11086_s2 = scalar_select %p9037_p5, 1, 0 }
  0x69   : > { %s8743_s7 = smov [#allocation18]   ;;  %p9045_p6 = pneg %p9037_p5 }
  0x6a   : > { %s895_s0 = sshll.u32 %s8743_s7, 4  ;;  %s8001_s25 = scalar_lea.vmem %s858_s9, 16  ;;  %s896_s0 = int_to_ptr.vmem [resolvable:$true] %s895_s0 }
  0x6b   : > { %s11087_s26 = scalar_select %p9045_p6, 1, 0 }
  0x6c   : > { %p8002_p7 = scmp.ne.s32.totalorder %s858_s9, %s8001_s25  ;;  %s8008_s17 = scalar_lea.vmem %s858_s9, 32 }
  0x6d   : > { %p8009_p10 = scmp.lt.s32.totalorder %s858_s9, %s858_s9  ;;  %p8010_p11 = scmp.lt.s32.totalorder %s8008_s17, %s8001_s25 }
  0x6e   : > { %p8004_p8 = pnand %p8002_p7, %p9045_p6 }
  0x6f   : > { %p8011_p12 = por %p8010_p11, %p8009_p10 }
  0x70   : > { %p8005_p9 = pneg %p8004_p8 }
  0x72   : > { %p8012_p13 = pnand %p8011_p12, %p8005_p9 }
  0x74   : > { %8015 = shalt.err (!%p8012_p13)
}
  0x75   : > { %s11088_s29 = sld [smem:[#allocation59_spill]]  ;;  %s8027_s7 = scalar_lea.vmem %s9041_s5, 256 }
  0x76   : > { %p8028_p0 = scmp.ne.s32.totalorder %s9041_s5, %s8027_s7  ;;  %p8035_p7 = scmp.lt.s32.totalorder %s9041_s5, %s9041_s5 }
  0x77   : > { %p8036_p8 = scmp.lt.s32.totalorder %s8027_s7, %s8027_s7 }
  0x78   : > { %p8030_p2 = pnand %p8028_p0, %p9045_p6 }
  0x79   : > { %p8037_p1 = por %p8036_p8, %p8035_p7 }
  0x7a   : > { %p8031_p4 = pneg %p8030_p2 }
  0x7b   : > { %7535 = dma.hbm_to_vmem [thread:$0]  (!%p9037_p5), %s11088_s29, 16, %s858_s9, [#allocation13]  }
  0x7c   : > { %p8038_p10 = pnand %p8037_p1, %p8031_p4 }
  0x7e   : > { %8041 = shalt.err (!%p8038_p10)
}
  0x7f   : > { %s10977_s25 = smov 64   ;;  %s11089_s3 = sld [smem:[#allocation60_spill]] }
  0x80   : > { %s10979_s17 = smov 4   ;;  %s8053_s9 = scalar_lea.vmem %s896_s0, 16 }
  0x81   : > { %p8054_p9 = scmp.ne.s32.totalorder %s896_s0, %s8053_s9  ;;  %s8060_s7 = scalar_lea.vmem %s896_s0, 32 }
  0x82   : > { %p8061_p1 = scmp.lt.s32.totalorder %s896_s0, %s896_s0  ;;  %p8062_p13 = scmp.lt.s32.totalorder %s8060_s7, %s8053_s9 }
  0x83   : > { %p8056_p11 = pnand %p8054_p9, %p9045_p6 }
  0x84   : > { %p8063_p0 = por %p8062_p13, %p8061_p1 }
  0x85   : > { %7538 = dma.hbm_to_vmem [thread:$0]  (!%p9037_p5), %s11089_s3, 256, %s9041_s5, [#allocation16], %s10977_s25, %s10977_s25, %s10979_s17  }
  0x86   : > { %p8057_p12 = pneg %p8056_p11 }
  0x88   : > { %p8064_p2 = pnand %p8063_p0, %p8057_p12 }
  0x8a   : > { %8067 = shalt.err (!%p8064_p2)
}
  0x8b   : > { %s11090_s19 = sld [smem:[#allocation63_spill]]  ;;  %s8746_s29 = smov [#allocation21]  }
  0x8c   : > { %s917_s18 = sshll.u32 %s8746_s29, 4  ;;  %s8747_s5 = smov [#allocation24]   ;;  %s918_s18 = int_to_ptr.vmem [resolvable:$true] %s917_s18 }
  0x8d   : > { %s941_s25 = sshll.u32 %s8747_s5, 4  ;;  %s8079_s17 = scalar_lea.vmem %s918_s18, 16  ;;  %s942_s25 = int_to_ptr.vmem [resolvable:$true] %s941_s25 }
  0x8e   : > { %p8080_p4 = scmp.ne.s32.totalorder %s918_s18, %s8079_s17  ;;  %s8086_s3 = scalar_lea.vmem %s918_s18, 32 }
  0x8f   : > { %p8087_p10 = scmp.lt.s32.totalorder %s918_s18, %s918_s18  ;;  %p8088_p9 = scmp.lt.s32.totalorder %s8086_s3, %s8079_s17 }
  0x90   : > { %p8082_p7 = pnand %p8080_p4, %p9045_p6 }
  0x91   : > { %7544 = dma.hbm_to_vmem [thread:$0]  (!%p9037_p5), %s11090_s19, 16, %s896_s0, [#allocation19]  }
  0x92   : > { %p8083_p8 = pneg %p8082_p7  ;;  %p8089_p11 = por %p8088_p9, %p8087_p10 }
  0x94   : > { %p8090_p12 = pnand %p8089_p11, %p8083_p8 }
  0x96   : > { %8093 = shalt.err (!%p8090_p12)
}
  0x97   : > { %s11091_s30 = sld [smem:[#allocation65_spill]]  ;;  %s8105_s29 = scalar_lea.vmem %s942_s25, 16 }
  0x98   : > { %p8106_p1 = scmp.ne.s32.totalorder %s942_s25, %s8105_s29  ;;  %s8112_s0 = scalar_lea.vmem %s942_s25, 32 }
  0x99   : > { %p8113_p2 = scmp.lt.s32.totalorder %s942_s25, %s942_s25  ;;  %p8114_p4 = scmp.lt.s32.totalorder %s8112_s0, %s8105_s29 }
  0x9a   : > { %p8108_p13 = pnand %p8106_p1, %p9045_p6 }
  0x9b   : > { %p8115_p7 = por %p8114_p4, %p8113_p2 }
  0x9c   : > { %p8109_p0 = pneg %p8108_p13 }
  0x9d   : > { %7550 = dma.hbm_to_vmem [thread:$0]  (!%p9037_p5), %s11091_s30, 16, %s918_s18, [#allocation22]  }
  0x9e   : > { %p8116_p3 = pnand %p8115_p7, %p8109_p0 }
  0xa0   : > { %8119 = shalt.err (!%p8116_p3)
}
  0xa1   : > { %s11092_s12 = sld [smem:[#allocation67_spill]]  ;;  %s8748_s3 = smov [#allocation27]  }
  0xa2   : > { %s965_s17 = sshll.u32 %s8748_s3, 4  ;;  %s8749_s18 = smov [#allocation30]   ;;  %s966_s17 = int_to_ptr.vmem [resolvable:$true] %s965_s17 }
  0xa3   : > { %s989_s9 = sshll.u32 %s8749_s18, 4  ;;  %s8131_s7 = scalar_lea.vmem %s966_s17, 16  ;;  %s990_s9 = int_to_ptr.vmem [resolvable:$true] %s989_s9 }
  0xa4   : > { %p8132_p8 = scmp.ne.s32.totalorder %s966_s17, %s8131_s7  ;;  %s8138_s5 = scalar_lea.vmem %s966_s17, 32 }
  0xa5   : > { %p8139_p11 = scmp.lt.s32.totalorder %s966_s17, %s966_s17  ;;  %p8140_p12 = scmp.lt.s32.totalorder %s8138_s5, %s8131_s7 }
  0xa6   : > { %p8134_p10 = pnand %p8132_p8, %p9045_p6 }
  0xa7   : > { %7556 = dma.hbm_to_vmem [thread:$0]  (!%p9037_p5), %s11092_s12, 16, %s942_s25, [#allocation25]  }
  0xa8   : > { %p8135_p9 = pneg %p8134_p10  ;;  %p8141_p1 = por %p8140_p12, %p8139_p11 }
  0xaa   : > { %p8142_p3 = pnand %p8141_p1, %p8135_p9 }
  0xac   : > { %8145 = shalt.err (!%p8142_p3)
}
  0xad   : > { %s11093_s27 = sld [smem:[#allocation69_spill]]  ;;  %s8157_s25 = scalar_lea.vmem %s990_s9, 16 }
  0xae   : > { %p8158_p13 = scmp.ne.s32.totalorder %s990_s9, %s8157_s25  ;;  %s8164_s29 = scalar_lea.vmem %s990_s9, 32 }
  0xaf   : > { %p8165_p4 = scmp.lt.s32.totalorder %s990_s9, %s990_s9  ;;  %p8166_p7 = scmp.lt.s32.totalorder %s8164_s29, %s8157_s25 }
  0xb0   : > { %p8160_p0 = pnand %p8158_p13, %p9045_p6 }
  0xb1   : > { %p8167_p8 = por %p8166_p7, %p8165_p4 }
  0xb2   : > { %p8161_p2 = pneg %p8160_p0 }
  0xb3   : > { %7562 = dma.hbm_to_vmem [thread:$0]  (!%p9037_p5), %s11093_s27, 16, %s966_s17, [#allocation28]  }
  0xb4   : > { %p8168_p10 = pnand %p8167_p8, %p8161_p2 }
  0xb6   : > { %8171 = shalt.err (!%p8168_p10)
}
  0xb7   : > { %s11094_s14 = sld [smem:[#allocation71_spill]]  ;;  %p10984_p9 = scmp.eq.s32.totalorder %s8708_s15, 0 }
  0xb8   : > { %p10983_p11 = scmp.ne.s32.totalorder %s8676_s23, %s8672_s22  ;;  %p10982_p12 = scmp.lt.s32.totalorder %s8708_s15, 4 }
  0xb9   : > { %s10985_s0 = sand.u32 1, %s8708_s15   ;;  %s9098_s3 = sand.u32 1, %s8676_s23  }
  0xba   : > { %p180_p1 = por %p10983_p11, %p10984_p9  ;;  %s6671_s17 = sshll.u32 %s9098_s3, 4 }
  0xbb   : > { %s6830_s18 = sshll.u32 %s8704_s11, 8  ;;  %s9120_s29 = scalar_lea.sflag [#allocation10], %s10985_s0 }
  0xbc   : > { %s9108_s7 = scalar_lea.hbm %s11076_s13, %s6830_s18  ;;  %p9112_p3 = pnand %p10982_p12, %p180_p1 }
  0xbd   : > { %7568 = dma.hbm_to_vmem [thread:$0]  (!%p9037_p5), %s11094_s14, 16, %s990_s9, [#allocation31]  }
  0xbe   : > { %s1066_s9 = scalar_lea.vmem [#allocation9], %s6671_s17  ;;  %s8172_s12 = scalar_lea.hbm %s9108_s7, 256 }
  0xbf   : > { %s1073_s5 = sshll.u32 %s1066_s9, 4  ;;  %p8173_p13 = scmp.ne.s32.totalorder %s9108_s7, %s8172_s12  ;;  %s9116_s5 = int_to_ptr.vmem [resolvable:$true] %s1073_s5 }
  0xc0   : > { %s11095_s25 = scalar_select %p9112_p3, 1, 0 }
  0xc1   : > { %p9126_p0 = pneg %p9112_p3  ;;  %s8177_s17 = scalar_lea.hbm %s11076_s13, 512 }
  0xc2   : > { %p8178_p7 = scmp.lt.s32.totalorder %s9108_s7, %s11076_s13  ;;  %p8179_p8 = scmp.lt.s32.totalorder %s8177_s17, %s8172_s12 }
  0xc3   : > { %s11096_s18 = scalar_select %p9126_p0, 1, 0 }
  0xc4   : > { %p8175_p2 = pnand %p9126_p0, %p8173_p13  ;;  %p8180_p10 = por %p8179_p8, %p8178_p7 }
  0xc6   : > { %p8176_p4 = pneg %p8175_p2 }
  0xc8   : > { %p8181_p1 = pnand %p8180_p10, %p8176_p4 }
  0xca   : > { %8184 = shalt.err (!%p8181_p1)
}
  0xcb   : > { %s8185_s9 = scalar_lea.vmem %s9116_s5, 256  ;;  %s8750_s0 = smov [#allocation9]  }
  0xcc   : > { %p8186_p12 = scmp.ne.s32.totalorder %s9116_s5, %s8185_s9  ;;  %s8190_s14 = sshll.u32 %s8750_s0, 4  ;;  %s8191_s14 = int_to_ptr.vmem [resolvable:$false] %s8190_s14 }
  0xcd   : > { %s8192_s19 = scalar_lea.vmem %s8191_s14, 512  ;;  %p8193_p13 = scmp.lt.s32.totalorder %s9116_s5, %s8191_s14 }
  0xce   : > { %p8188_p11 = pnand %p8186_p12, %p9126_p0  ;;  %p8194_p2 = scmp.lt.s32.totalorder %s8192_s19, %s8185_s9 }
  0xd0   : > { %p8189_p9 = pneg %p8188_p11  ;;  %p8195_p5 = por %p8194_p2, %p8193_p13 }
  0xd2   : > { %p8196_p6 = pnand %p8195_p5, %p8189_p9 }
  0xd4   : > { %8199 = shalt.err (!%p8196_p6)
}
  0xd5   : > { %s8751_s12 = smov 128   ;;  %s8752_s17 = smov 8  }
  0xd6   : > { %7578 = dma.hbm_to_vmem [thread:$0]  (!%p9112_p3), %s9108_s7, 256, %s9116_s5, %s9120_s29, %s8751_s12, %s8751_s12, %s8752_s17  }
  0xd7   : > { %s8753_s13 = smov [#allocation17]   ;;  %s8754_s30 = smov [#allocation20]  }
  0xd8   : > { %s881_s27 = sshll.u32 %s8753_s13, 4  ;;  %s906_s0 = sshll.u32 %s8754_s30, 4  ;;  %s882_s27 = int_to_ptr.vmem [resolvable:$true] %s881_s27  ;;  %s907_s0 = int_to_ptr.vmem [resolvable:$true] %s906_s0 }
  0xd9   : > { %s8211_s14 = scalar_lea.vmem %s882_s27, 16  ;;  %p11097_p12 = scmp.ne.s32.totalorder %s11087_s26, 0 }
  0xda   : > { %p8212_p11 = scmp.ne.s32.totalorder %s882_s27, %s8211_s14  ;;  %s8218_s19 = scalar_lea.vmem %s882_s27, 32 }
  0xdb   : > { %p8219_p9 = scmp.lt.s32.totalorder %s882_s27, %s882_s27  ;;  %p8220_p4 = scmp.lt.s32.totalorder %s8218_s19, %s8211_s14 }
  0xdc   : > { %p8214_p5 = pnand %p8212_p11, %p11097_p12 }
  0xdd   : > { %p8221_p7 = por %p8220_p4, %p8219_p9 }
  0xde   : > { %p8215_p6 = pneg %p8214_p5 }
  0xe0   : > { %p8222_p8 = pnand %p8221_p7, %p8215_p6 }
  0xe2   : > { %8225 = shalt.err (!%p8222_p8)
}
  0xe3   : > { %p11098_p10 = scmp.ne.s32.totalorder %s11086_s2, 0  ;;  %s11099_s8 = sld [smem:[#allocation61_spill]] }
  0xe4   : > { %s8237_s13 = scalar_lea.vmem %s907_s0, 16  ;;  %s8244_s30 = scalar_lea.vmem %s907_s0, 32 }
  0xe5   : > { %p8238_p1 = scmp.ne.s32.totalorder %s907_s0, %s8237_s13  ;;  %p8245_p3 = scmp.lt.s32.totalorder %s907_s0, %s907_s0 }
  0xe6   : > { %p8246_p11 = scmp.lt.s32.totalorder %s8244_s30, %s8237_s13 }
  0xe7   : > { %p8240_p13 = pnand %p8238_p1, %p11097_p12 }
  0xe8   : > { %p8247_p5 = por %p8246_p11, %p8245_p3 }
  0xe9   : > { %7541 = dma.hbm_to_vmem [thread:$0]  (!%p11098_p10), %s11099_s8, 16, %s882_s27, [#allocation16]  }
  0xea   : > { %p8241_p2 = pneg %p8240_p13 }
  0xec   : > { %p8248_p0 = pnand %p8247_p5, %p8241_p2 }
  0xee   : > { %8251 = shalt.err (!%p8248_p0)
}
  0xef   : > { %s11100_s24 = sld [smem:[#allocation64_spill]]  ;;  %s8755_s7 = smov [#allocation23]  }
  0xf0   : > { %s927_s5 = sshll.u32 %s8755_s7, 4  ;;  %s8756_s9 = smov [#allocation26]   ;;  %s928_s5 = int_to_ptr.vmem [resolvable:$true] %s927_s5 }
  0xf1   : > { %s951_s27 = sshll.u32 %s8756_s9, 4  ;;  %s8263_s12 = scalar_lea.vmem %s928_s5, 256  ;;  %s952_s27 = int_to_ptr.vmem [resolvable:$true] %s951_s27 }
  0xf2   : > { %p8264_p6 = scmp.ne.s32.totalorder %s928_s5, %s8263_s12  ;;  %p8271_p7 = scmp.lt.s32.totalorder %s928_s5, %s928_s5 }
  0xf3   : > { %p8272_p3 = scmp.lt.s32.totalorder %s8263_s12, %s8263_s12 }
  0xf4   : > { %p8266_p9 = pnand %p8264_p6, %p11097_p12 }
  0xf5   : > { %7547 = dma.hbm_to_vmem [thread:$0]  (!%p11098_p10), %s11100_s24, 16, %s907_s0, [#allocation19]  }
  0xf6   : > { %p8267_p4 = pneg %p8266_p9  ;;  %p8273_p8 = por %p8272_p3, %p8271_p7 }
  0xf8   : > { %p8274_p0 = pnand %p8273_p8, %p8267_p4 }
  0xfa   : > { %8277 = shalt.err (!%p8274_p0)
}
  0xfb   : > { %s11101_s17 = smov 4   ;;  %s11102_s0 = smov 64  }
  0xfc   : > { %s11103_s6 = sld [smem:[#allocation66_spill]]  ;;  %s8289_s14 = scalar_lea.vmem %s952_s27, 256 }
  0xfd   : > { %p8290_p1 = scmp.ne.s32.totalorder %s952_s27, %s8289_s14  ;;  %p8297_p11 = scmp.lt.s32.totalorder %s952_s27, %s952_s27 }
  0xfe   : > { %p8298_p5 = scmp.lt.s32.totalorder %s8289_s14, %s8289_s14 }
  0xff   : > { %p8292_p13 = pnand %p8290_p1, %p11097_p12 }
 0x100   : > { %p8299_p6 = por %p8298_p5, %p8297_p11 }
 0x101   : > { %p8293_p2 = pneg %p8292_p13 }
 0x102   : > { %7553 = dma.hbm_to_vmem [thread:$0]  (!%p11098_p10), %s11103_s6, 256, %s928_s5, [#allocation22], %s11102_s0, %s11102_s0, %s11101_s17  }
 0x103   : > { %p8300_p9 = pnand %p8299_p6, %p8293_p2 }
 0x105   : > { %8303 = shalt.err (!%p8300_p9)
}
 0x106   : > { %s11104_s20 = sld [smem:[#allocation68_spill]]  ;;  %s8757_s19 = smov [#allocation29]  }
 0x107   : > { %s975_s13 = sshll.u32 %s8757_s19, 4  ;;  %s8758_s30 = smov [#allocation32]   ;;  %s976_s13 = int_to_ptr.vmem [resolvable:$true] %s975_s13 }
 0x108   : > { %s1005_s7 = sshll.u32 %s8758_s30, 4  ;;  %s8315_s5 = scalar_lea.vmem %s976_s13, 256  ;;  %s1006_s7 = int_to_ptr.vmem [resolvable:$true] %s1005_s7 }
 0x109   : > { %p8316_p4 = scmp.ne.s32.totalorder %s976_s13, %s8315_s5  ;;  %p8323_p8 = scmp.lt.s32.totalorder %s976_s13, %s976_s13 }
 0x10a   : > { %p8324_p0 = scmp.lt.s32.totalorder %s8315_s5, %s8315_s5 }
 0x10b   : > { %p8318_p7 = pnand %p8316_p4, %p11097_p12 }
 0x10c   : > { %7559 = dma.hbm_to_vmem [thread:$0]  (!%p11098_p10), %s11104_s20, 256, %s952_s27, [#allocation25], %s11102_s0, %s11102_s0, %s11101_s17  }
 0x10d   : > { %p8319_p3 = pneg %p8318_p7  ;;  %p8325_p1 = por %p8324_p0, %p8323_p8 }
 0x10f   : > { %p8326_p13 = pnand %p8325_p1, %p8319_p3 }
 0x111   : > { %8329 = shalt.err (!%p8326_p13)
}
 0x112   : > { %s11105_s4 = sld [smem:[#allocation70_spill]]  ;;  %s8341_s9 = scalar_lea.vmem %s1006_s7, 256 }
 0x113   : > { %p8342_p2 = scmp.ne.s32.totalorder %s1006_s7, %s8341_s9  ;;  %p8349_p6 = scmp.lt.s32.totalorder %s1006_s7, %s1006_s7 }
 0x114   : > { %p8350_p9 = scmp.lt.s32.totalorder %s8341_s9, %s8341_s9 }
 0x115   : > { %p8344_p11 = pnand %p8342_p2, %p11097_p12 }
 0x116   : > { %p8351_p4 = por %p8350_p9, %p8349_p6 }
 0x117   : > { %p8345_p5 = pneg %p8344_p11 }
 0x118   : > { %7565 = dma.hbm_to_vmem [thread:$0]  (!%p11098_p10), %s11105_s4, 256, %s976_s13, [#allocation28], %s11102_s0, %s11102_s0, %s11101_s17  }
 0x119   : > { %p8352_p7 = pnand %p8351_p4, %p8345_p5 }
 0x11b   : > { %8355 = shalt.err (!%p8352_p7)
}
 0x11c   : > { %s11106_s21 = sld [smem:[#allocation74_spill]]  ;;  %s107_s12 = sadd.s32 1, %s8700_s10 }
 0x11d   : > { %s11107_s26 = sld [smem:[#allocation87_spill]]  ;;  %p108_p12 = scmp.ge.s32.totalorder %s107_s12, 2 }
 0x11e   : > { %s11108_s27 = sld [smem:[#allocation85_spill]]  ;;  %s110_s14 = sadd.s32 1, %s8704_s11 }
 0x11f   : > { %s145_s19 = sadd.s32 1, %s8688_s1  ;;  %p152_p3 = scmp.ne.s32.totalorder %s8688_s1, %s8684_s28 }
 0x120   : > { %s11219_s12 = smov (%p108_p12, %s107_s12), 0  ;;  %s11221_s14 = smov (!%p108_p12, %s110_s14), %s8704_s11 }
 0x121   : > { %11109 = sst [smem:[#allocation93_spill]] %s11219_s12  ;;  %p112_p0 = scmp.ge.s32.totalorder %s11221_s14, 2 }
 0x122   : > { %7571 = dma.hbm_to_vmem [thread:$0]  (!%p11098_p10), %s11106_s21, 256, %s1006_s7, [#allocation31], %s11102_s0, %s11102_s0, %s11101_s17  }
 0x123   : > { %s141_s17 = ssub.s32 %s8700_s10, %s11219_s12  ;;  %p11110_p10 = scmp.eq.s32.totalorder %s8708_s15, 0 }
 0x124   : > { %p158_p1 = scmp.ne.s32.totalorder %s8684_s28, %s11107_s26  ;;  %s171_s13 = sadd.s32 1, %s8676_s23 }
 0x125   : > { %p9203_p8 = por %p11110_p10, %p152_p3  ;;  %p184_p13 = scmp.ne.s32.totalorder %s8672_s22, %s11108_s27 }
 0x126   : > { %s11223_s14 = smov (%p112_p0, %s11221_s14), 0  ;;  %p11113_p2 = scmp.eq.s32.totalorder %s9024_s16, 0 }
 0x127   : > { %11112 = sst [smem:[#allocation94_spill]] %s11223_s14  ;;  %s140_s5 = ssub.s32 %s8704_s11, %s11223_s14 }
 0x128   : > { %p9219_p11 = por %p11113_p2, %p158_p1  ;;  %p11115_p5 = pmov %p11113_p2 }
 0x129   : > { %p724_p9 = scmp.eq.s32.totalorder %s9024_s16, 3  ;;  %s142_s9 = sor.u32 %s141_s17, %s140_s5 }
 0x12a   : > { %s11114_s30 = scalar_select %p9219_p11, 1, 0 }
 0x12b   : > { %p9228_p6 = por %p184_p13, %p11115_p5  ;;  %p169_p4 = scmp.eq.s32.totalorder %s140_s5, 0 }
 0x12c   : > { %s11117_s2 = sld [smem:[#allocation54_spill]]  ;;  %p143_p7 = scmp.eq.s32.totalorder %s142_s9, 0 }
 0x12d   : > { %s11116_s7 = scalar_select %p9228_p6, 1, 0 }
 0x12e   : > { %p9238_p12 = por %p724_p9, %p152_p3  ;;  %s11122_s21 = sadd.s32 4294967294, %s8708_s15  }
 0x12f   : > { %s9243_s8 = scalar_select %p169_p4, %s8676_s23, %s171_s13  }
 0x130   : > { %s11119_s6 = scalar_select %p9238_p12, 1, 0 }
 0x131   : > { %11120 = sst [smem:[#allocation95_spill]] %s9243_s8  ;;  %p730_p10 = scmp.eq.s32.totalorder %s11122_s21, 3 }
 0x132   : > { %s11118_s4 = smov %s11117_s2  ;;  %p11123_p0 = scmp.ne.s32.totalorder %s8676_s23, %s8672_s22 }
 0x133   : > { %s9246_s20 = scalar_select %p143_p7, %s8688_s1, %s145_s19  }
 0x134   : > { %p9253_p2 = por %p724_p9, %p11123_p0  ;;  %s11125_s5 = sld [smem:[#allocation56_spill]] }
 0x135   : > { %11121 = sst [smem:[#allocation96_spill]] %s9246_s20  ;;  %s1042_s9 = sand.u32 1, %s8688_s1  }
 0x136   : > { %s11124_s17 = scalar_select %p9253_p2, 1, 0 }
 0x137   : > { %s6669_s24 = sshll.u32 %s8704_s11, 1  ;;  %p9262_p3 = por %p730_p10, %p158_p1 }
 0x138   : > { %p9269_p5 = por %p730_p10, %p184_p13  ;;  %s6668_s21 = sshll.u32 %s1042_s9, 3 }
 0x139   : > { %s11126_s14 = scalar_select %p9262_p3, 1, 0 }
 0x13a   : > { %s11127_s19 = scalar_select %p9269_p5, 1, 0 }
 0x13b   : > { %s1051_s13 = sadd.s32 %s8700_s10, %s6669_s24  ;;  %s1046_s20 = scalar_lea.vmem [#allocation6], %s6668_s21 }
 0x13c   : > { %s6670_s12 = sshll.u32 %s1051_s13, 7  ;;  %s1055_s8 = sshll.u32 %s1046_s20, 4  ;;  %s9277_s8 = int_to_ptr.vmem [resolvable:$true] %s1055_s8 }
 0x13d   : > { %s9275_s23 = scalar_lea.hbm %s11117_s2, %s6670_s12  ;;  %p11128_p1 = scmp.lt.s32.totalorder %s8708_s15, 4 }
 0x13e   : > { %s11000_s24 = sshll.u32 %s8704_s11, 4  ;;  %s1086_s27 = scalar_lea.vmem [#allocation11], %s9098_s3 }
 0x13f   : > { %p9283_p13 = pnand %p11128_p1, %p9203_p8  ;;  %s9289_s13 = sshll.u32 %s1086_s27, 4  ;;  %s1094_s13 = int_to_ptr.vmem [resolvable:$true] %s9289_s13 }
 0x140   : > { %s9294_s20 = scalar_lea.hbm %s11125_s5, %s11000_s24  ;;  %s1043_s2 = scalar_lea.sflag [#allocation7], %s1042_s9 }
 0x141   : > { %s8356_s12 = scalar_lea.hbm %s9275_s23, 128  ;;  %p8358_p4 = pneg %p9283_p13 }
 0x142   : > { %p8357_p9 = scmp.ne.s32.totalorder %s9275_s23, %s8356_s12  ;;  %s8361_s0 = scalar_lea.hbm %s11118_s4, 512 }
 0x143   : > { %p8362_p8 = scmp.lt.s32.totalorder %s9275_s23, %s11118_s4  ;;  %p8363_p0 = scmp.lt.s32.totalorder %s8361_s0, %s8356_s12 }
 0x144   : > { %p8359_p7 = pnand %p8358_p4, %p8357_p9 }
 0x145   : > { %p8364_p1 = por %p8363_p0, %p8362_p8 }
 0x146   : > { %p8360_p10 = pneg %p8359_p7 }
 0x148   : > { %p8365_p5 = pnand %p8364_p1, %p8360_p10 }
 0x14a   : > { %8368 = shalt.err (!%p8365_p5)
}
 0x14b   : > { %s8369_s21 = scalar_lea.vmem %s9277_s8, 128  ;;  %s8759_s9 = smov [#allocation6]  }
 0x14c   : > { %p8370_p3 = scmp.ne.s32.totalorder %s9277_s8, %s8369_s21  ;;  %s8374_s27 = sshll.u32 %s8759_s9, 4  ;;  %s8375_s27 = int_to_ptr.vmem [resolvable:$false] %s8374_s27 }
 0x14d   : > { %s8376_s24 = scalar_lea.vmem %s8375_s27, 256  ;;  %p8377_p6 = scmp.lt.s32.totalorder %s9277_s8, %s8375_s27 }
 0x14e   : > { %p8372_p12 = pnand %p8370_p3, %p8358_p4  ;;  %p8378_p9 = scmp.lt.s32.totalorder %s8376_s24, %s8369_s21 }
 0x150   : > { %p8373_p2 = pneg %p8372_p12  ;;  %p8379_p7 = por %p8378_p9, %p8377_p6 }
 0x152   : > { %p8380_p11 = pnand %p8379_p7, %p8373_p2 }
 0x154   : > { %8383 = shalt.err (!%p8380_p11)
}
 0x155   : > { %7575 = dma.hbm_to_vmem [thread:$0]  (!%p9283_p13), %s9275_s23, 128, %s9277_s8, %s1043_s2  }
 0x156   : > { %s8384_s12 = scalar_lea.hbm %s9294_s20, 16  ;;  %p11130_p3 = scmp.ne.s32.totalorder %s11096_s18, 0 }
 0x157   : > { %p8385_p12 = scmp.ne.s32.totalorder %s9294_s20, %s8384_s12  ;;  %s8389_s24 = scalar_lea.hbm %s11125_s5, 32 }
 0x158   : > { %p8390_p11 = scmp.lt.s32.totalorder %s9294_s20, %s11125_s5  ;;  %p8391_p2 = scmp.lt.s32.totalorder %s8389_s24, %s8384_s12 }
 0x159   : > { %p8387_p5 = pnand %p8385_p12, %p11130_p3 }
 0x15a   : > { %p8392_p4 = por %p8391_p2, %p8390_p11 }
 0x15b   : > { %p8388_p6 = pneg %p8387_p5 }
 0x15d   : > { %p8393_p10 = pnand %p8392_p4, %p8388_p6 }
 0x15f   : > { %8396 = shalt.err (!%p8393_p10)
}
 0x160   : > { %s8397_s26 = scalar_lea.vmem %s1094_s13, 16  ;;  %s8760_s0 = smov [#allocation11]  }
 0x161   : > { %p8398_p8 = scmp.ne.s32.totalorder %s1094_s13, %s8397_s26  ;;  %s8402_s8 = sshll.u32 %s8760_s0, 4  ;;  %s8403_s8 = int_to_ptr.vmem [resolvable:$false] %s8402_s8 }
 0x162   : > { %s8404_s23 = scalar_lea.vmem %s8403_s8, 32  ;;  %p8405_p13 = scmp.lt.s32.totalorder %s1094_s13, %s8403_s8 }
 0x163   : > { %p8400_p0 = pnand %p8398_p8, %p11130_p3  ;;  %p8406_p9 = scmp.lt.s32.totalorder %s8404_s23, %s8397_s26 }
 0x165   : > { %p8401_p1 = pneg %p8400_p0  ;;  %p8407_p7 = por %p8406_p9, %p8405_p13 }
 0x167   : > { %p8408_p12 = pnand %p8407_p7, %p8401_p1 }
 0x169   : > { %8411 = shalt.err (!%p8408_p12)
}
 0x16a   : > { %p11131_p5 = scmp.ne.s32.totalorder %s11095_s25, 0  ;;  %s11132_s2 = sld [smem:[#allocation57_spill]] }
 0x16b   : > { %s11134_s9 = sshll.u32 %s8704_s11, 4  ;;  %s1103_s12 = scalar_lea.vmem [#allocation12], %s9098_s3 }
 0x16c   : > { %7581 = dma.hbm_to_vmem [thread:$0]  (!%p11131_p5), %s9294_s20, 16, %s1094_s13, %s9120_s29  }
 0x16d   : > { %s1110_s24 = sshll.u32 %s1103_s12, 4  ;;  %s11135_s26 = sand.u32 1, %s8708_s15   ;;  %s1111_s24 = int_to_ptr.vmem [resolvable:$true] %s1110_s24 }
 0x16e   : > { %s1101_s0 = scalar_lea.sflag [#allocation13], %s11135_s26 }
 0x170   : > { %s11133_s21 = smov %s11132_s2  ;;  %s9327_s27 = scalar_lea.hbm %s11132_s2, %s11134_s9 }
 0x171   : > { %s8412_s8 = scalar_lea.hbm %s9327_s27, 16  ;;  %s8417_s23 = scalar_lea.hbm %s11133_s21, 32 }
 0x172   : > { %p8413_p6 = scmp.ne.s32.totalorder %s9327_s27, %s8412_s8  ;;  %p8418_p4 = scmp.lt.s32.totalorder %s9327_s27, %s11133_s21 }
 0x173   : > { %p8419_p10 = scmp.lt.s32.totalorder %s8417_s23, %s8412_s8 }
 0x174   : > { %p8415_p11 = pnand %p8413_p6, %p11130_p3 }
 0x175   : > { %p8420_p8 = por %p8419_p10, %p8418_p4 }
 0x176   : > { %p8416_p2 = pneg %p8415_p11 }
 0x178   : > { %p8421_p0 = pnand %p8420_p8, %p8416_p2 }
 0x17a   : > { %8424 = shalt.err (!%p8421_p0)
}
 0x17b   : > { %s8425_s29 = scalar_lea.vmem %s1111_s24, 16  ;;  %s8761_s3 = smov [#allocation12]  }
 0x17c   : > { %p8426_p1 = scmp.ne.s32.totalorder %s1111_s24, %s8425_s29  ;;  %s8430_s13 = sshll.u32 %s8761_s3, 4  ;;  %s8431_s13 = int_to_ptr.vmem [resolvable:$false] %s8430_s13 }
 0x17d   : > { %s8432_s20 = scalar_lea.vmem %s8431_s13, 32  ;;  %p8433_p7 = scmp.lt.s32.totalorder %s1111_s24, %s8431_s13 }
 0x17e   : > { %p8428_p13 = pnand %p8426_p1, %p11130_p3  ;;  %p8434_p12 = scmp.lt.s32.totalorder %s8432_s20, %s8425_s29 }
 0x180   : > { %p8429_p9 = pneg %p8428_p13  ;;  %p8435_p6 = por %p8434_p12, %p8433_p7 }
 0x182   : > { %p8436_p11 = pnand %p8435_p6, %p8429_p9 }
 0x184   : > { %8439 = shalt.err (!%p8436_p11)
}
 0x185   : > { %7584 = dma.hbm_to_vmem [thread:$0]  (!%p11131_p5), %s9327_s27, 16, %s1111_s24, %s1101_s0  }
 0x186   : > { %s11136_s2 = sld [smem:[#allocation92_spill]] }
 0x18c   : > { %p11137_p2 = scmp.ne.s32.totalorder %s11136_s2, 0 }
 0x18d   : > { %s9347_s18 = sand.u32 (!%p11137_p2), 1, %s8684_s28   ;;  %p11138_p3 = scmp.ne.s32.totalorder (!%p11137_p2), %s11114_s30, 0 }
 0x18e   : > { %1119 = sbr.rel (%p11137_p2) target bundleno = 5458 (0x1552), region = 128  ;;  %s6677_s9 = sshll.u32 (!%p11137_p2), %s9347_s18, 3 }
 0x18f   : > { %s1122_s12 = scalar_lea.sflag (!%p11137_p2), [#allocation7], %s9347_s18  ;;  %s9353_s26 = scalar_lea.vmem (!%p11137_p2), [#allocation6], %s6677_s9 }
 0x193   : > { %8615 = dma.done.wait (%p11138_p3), %s1122_s12, 128  }
 0x194   : > { %8617 = vsyncadd (%p11138_p3), %s1122_s12, 4294967168  ;;  %s9360_s25 = sand.u32 1, %s9024_s16   ;;  %s9363_s27 = sand.u32 1, %s8672_s22  }
 0x195   : > { %s6678_s24 = sshll.u32 %s9363_s27, 4  ;;  %s1131_s0 = scalar_lea.sflag [#allocation10], %s9360_s25 }
 0x196   : > { %s9367_s8 = scalar_lea.vmem [#allocation9], %s6678_s24  ;;  %p11139_p5 = scmp.ne.s32.totalorder %s11116_s7, 0 }
 0x198   : > { %8619 = dma.done.wait (%p11139_p5), %s1131_s0, 272  }
 0x199   : > { %8621 = vsyncadd (%p11139_p5), %s1131_s0, 4294967024  ;;  %s1148_s23 = scalar_lea.sflag [#allocation13], %s9360_s25 }
 0x19a   : > { %8623 = dma.done.wait (%p11139_p5), %s1148_s23, 16  }
 0x19b   : > { %8625 = vsyncadd (%p11139_p5), %s1148_s23, 4294967280  ;;  %p11140_p4 = scmp.eq.s32.totalorder %s9024_s16, 0 }
 0x19d   : > { %8627 = dma.done.wait (%p11140_p4), [#allocation13], 16   ;;  %p11141_p10 = pmov %p11140_p4 }
 0x19e   : > { %p11142_p8 = pmov %p11140_p4 }
 0x19f   : > { %8629 = vsyncadd (%p11141_p10), [#allocation13], 4294967280 }
 0x1a0   : > { %8631 = dma.done.wait (%p11142_p8), [#allocation16], 272   ;;  %p11143_p0 = pmov %p11140_p4 }
 0x1a2   : > { %8633 = vsyncadd (%p11143_p0), [#allocation16], 4294967024  ;;  %p11144_p1 = pmov %p11143_p0 }
 0x1a3   : > { %p11145_p13 = pmov %p11143_p0 }
 0x1a4   : > { %8635 = dma.done.wait (%p11144_p1), [#allocation19], 32  }
 0x1a5   : > { %8637 = vsyncadd (%p11145_p13), [#allocation19], 4294967264  ;;  %p11146_p9 = pmov %p11143_p0 }
 0x1a6   : > { %p11147_p7 = pmov %p11143_p0 }
 0x1a7   : > { %8639 = dma.done.wait (%p11146_p9), [#allocation22], 272  }
 0x1a8   : > { %8641 = vsyncadd (%p11147_p7), [#allocation22], 4294967024  ;;  %p11148_p12 = pmov %p11143_p0 }
 0x1a9   : > { %p11149_p6 = pmov %p11143_p0 }
 0x1aa   : > { %8643 = dma.done.wait (%p11148_p12), [#allocation25], 272  }
 0x1ab   : > { %8645 = vsyncadd (%p11149_p6), [#allocation25], 4294967024  ;;  %p11150_p11 = pmov %p11143_p0 }
 0x1ac   : > { %p11151_p2 = pmov %p11143_p0 }
 0x1ad   : > { %8647 = dma.done.wait (%p11150_p11), [#allocation28], 272  }
 0x1ae   : > { %8649 = vsyncadd (%p11151_p2), [#allocation28], 4294967024  ;;  %p11152_p3 = pmov %p11143_p0 }
 0x1af   : > { %p11153_p5 = pmov %p11143_p0 }
 0x1b0   : > { %8651 = dma.done.wait (%p11152_p3), [#allocation31], 272  }
 0x1b1   : > { %8653 = vsyncadd (%p11153_p5), [#allocation31], 4294967024  ;;  %s11154_s7 = sld [smem:[#allocation89_spill]]  ;;  %s6693_s13 = sshll.u32 %s9363_s27, 3 }
 0x1b2   : > { %s11155_s3 = sld [smem:[#allocation53_spill]]  ;;  %s9414_s12 = scalar_lea.vmem [#allocation33], %s6677_s9 }
 0x1b3   : > { %s9416_s24 = scalar_lea.vmem [#allocation34], %s6693_s13  ;;  %s9418_s0 = scalar_lea.vmem [#allocation36], %s6693_s13 }
 0x1b4   : > { %s9420_s23 = scalar_lea.vmem [#allocation37], %s6693_s13  ;;  %s9422_s16 = scalar_lea.vmem [#allocation39], %s6693_s13 }
 0x1b5   : > { %s11156_s29 = sld [smem:[#allocation88_spill]] }
 0x1b7   : > { %p1319_p4 = scmp.lt.s32.totalorder %s11154_s7, 1 }
 0x1b9   : > { %s11225_s7 = smov (!%p1319_p4, %s11154_s7), 1 }
 0x1ba   : > { %s6831_s20 = sshll.u32 %s11225_s7, 4 }
 0x1bb   : > { %s1323_s2 = scalar_lea.vmem %s11155_s3, %s6831_s20  ;;  %p6699_p10 = scmp.ne.s32.totalorder %s11156_s29, 0 }
 0x1bc   : > { %s8764_s9 = smov (!%p6699_p10), 124   ;;  %s8766_s29 = smov (!%p6699_p10), 92  }
 0x1bd   : > { %1328 = sbr.rel (%p6699_p10) target bundleno = 888 (0x378), region = 200  ;;  %s11003_s7 = smov (!%p6699_p10), 120  }
 0x1be   : > { %s11005_s3 = smov (!%p6699_p10), 88   ;;  %s11007_s13 = smov (!%p6699_p10), 116  }
 0x1bf   : > { %s11009_s20 = smov (!%p6699_p10), 84   ;;  %s11013_s30 = smov (!%p6699_p10), 80  }
 0x1c2   : > { %v7801_v0 = vld [vmem:[#allocation15 + $0x8] sm:$0xff]   ;;  %v8762_v1 = vmov 0.0   ;;  %v7802_v2 = vld [vmem:[#allocation15] sm:$0xff]   ;;  %vm8763_vm0 = vmmov 0   ;;  %v1330_v4 = vld [vmem:[%s1323_s2 + $0x8] sm:$0xff]  ;;  %vm1355_vm1 = vcmask 261120  }
 0x1c3   : > { %6998 = vmatprep.subr.bf16.mxu0 %v8762_v1  ;;  %7006 = vmatprep.subr.bf16.mxu1 %v8762_v1  ;;  %v1329_v3 = vld [vmem:[%s1323_s2] sm:$0xff]  ;;  %v7803_v5 = vld [vmem:[#allocation26 + $0x8] sm:$0xff]   ;;  %v6706_v14 = vld [vmem:[#allocation27] ss:$0 sm:$0xff]  ;;  %vm1419_vm2 = vcmask 27648   ;;  %vm1408_vm3 = vcmask 257024  }
 0x1c4   : > { %6999 = vmatpush3.bf16.msra.mxu0 %v7801_v0  ;;  %7002 = vmatprep.mubr.msk.bf16.mxu0 %vm8763_vm0, %v8762_v1  ;;  %v1331_v6 = vpack.c.bf16 %v1330_v4, %v1329_v3  ;;  %v7804_v7 = vld [vmem:[#allocation26] sm:$0xff]   ;;  %v1551_v9 = vld [vmem:[%s9367_s8 + $0x8] sm:$0xff]  ;;  %s11011_s2 = smov 112  }
 0x1c5   : > { %7000 = vmatprep.subr.bf16.mxu0 %v8762_v1  ;;  %7010 = vmatprep.mubr.msk.bf16.mxu1 %vm8763_vm0, %v8762_v1  ;;  %v1550_v8 = vld [vmem:[%s9367_s8] sm:$0xff]  ;;  %s11021_s8 = smov 96  }
 0x1c6   : > { %7007 = vmatpush3.bf16.msra.mxu1 %v7803_v5  ;;  %v1552_v10 = vpack.c.bf16 %v1551_v9, %v1550_v8  ;;  %v6700_v11 = vld [vmem:[#allocation17] ss:$0 sm:$0xff] }
 0x1c7   : > { %7008 = vmatprep.subr.bf16.mxu1 %v8762_v1 }
 0x1c8   : > { %7001 = vmatpush3.bf16.msra.mxu0 %v7802_v2 }
 0x1ca   : > { %7009 = vmatpush3.bf16.msra.mxu1 %v7804_v7 }
 0x1cb   : > { %7003 = vmatmul.mubr.msk.bf16.vlgmr.msra.gmra.mxu0 %vm1355_vm1, %v1331_v6 }
 0x1cd   : > { %7011 = vmatmul.mubr.msk.bf16.vlgmr.msra.gmra.mxu1 %vm1355_vm1, %v1552_v10 }
 0x28b   : > { %v1393_v12 = vpop.f32.mrf.mxu0 }
 0x28c   : > { %v1394_v13 = vadd.f32 %v6700_v11, %v1393_v12 }
 0x28d   : > { %v7004_v15 = vpop.f32.mrf.mxu0  ;;  %v1613_v17 = vpop.f32.mrf.mxu1 }
 0x28e   : > { %v6832_v16 = vpack.c.bf16 %v1394_v13, %v1394_v13  ;;  %v1614_v19 = vadd.f32 %v6706_v14, %v1613_v17 }
 0x28f   : > { %v1396_v18 = vpop.f32.mrf.mxu0  ;;  %v7012_v21 = vpop.f32.mrf.mxu1 }
 0x290   : > { %1420 = vst.msk [vmem:[#allocation2] sm:$0xf] %vm1419_vm2, %v6832_v16  ;;  %v1397_v20 = vadd.f32 %v6700_v11, %v1396_v18  ;;  %1424 = vrot.lane.b32.xlu1 %v6832_v16, %s8764_s9  ;;  %1411 = vrot.lane.b32.xlu0 %v6832_v16, %s11021_s8  ;;  %v9432_v23 = vpack.c.bf16 %v1614_v19, %v1614_v19 }
 0x291   : > { %1409 = vst.msk [vmem:[%s9416_s24] sm:$0xf] %vm1408_vm3, %v6832_v16  ;;  %v7005_v22 = vpop.f32.mrf.mxu0  ;;  %v1616_v25 = vpop.f32.mrf.mxu1 }
 0x292   : > { %v9434_v24 = vpack.c.bf16 %v1397_v20, %v1397_v20  ;;  %1638 = vst.msk [vmem:[#allocation4] sm:$0xf] %vm1419_vm2, %v9432_v23  ;;  %v1617_v26 = vadd.f32 %v6706_v14, %v1616_v25 }
 0x293   : > { %1628 = vst.msk [vmem:[%s9420_s23] sm:$0xf] %vm1408_vm3, %v9432_v23  ;;  %v7013_v27 = vpop.f32.mrf.mxu1 }
 0x294   : > { %1421 = vst.msk [vmem:[#allocation2 + $0x4] sm:$0xf] %vm1419_vm2, %v9434_v24  ;;  %1433 = vrot.lane.b32.xlu0 %v6832_v16, %s8766_s29  ;;  %1426 = vrot.lane.b32.xlu1 %v9434_v24, %s8764_s9  ;;  %v9449_v28 = vpack.c.bf16 %v1617_v26, %v1617_v26 }
 0x295   : > { %1410 = vst.msk [vmem:[%s9416_s24 + $0x4] sm:$0xf] %vm1408_vm3, %v9434_v24 }
 0x296   : > { %1639 = vst.msk [vmem:[#allocation4 + $0x4] sm:$0xf] %vm1419_vm2, %v9449_v28 }
 0x297   : > { %1629 = vst.msk [vmem:[%s9420_s23 + $0x4] sm:$0xf] %vm1408_vm3, %v9449_v28 }
 0x298   : > { %1442 = vrot.lane.b32.xlu0 %v6832_v16, %s11003_s7  ;;  %1435 = vrot.lane.b32.xlu1 %v9434_v24, %s8766_s29 }
 0x29c   : > { %1451 = vrot.lane.b32.xlu0 %v6832_v16, %s11005_s3  ;;  %1444 = vrot.lane.b32.xlu1 %v9434_v24, %s11003_s7  ;;  %s8773_s7 = smov 108  }
 0x2a0   : > { %1460 = vrot.lane.b32.xlu0 %v6832_v16, %s11007_s13  ;;  %1453 = vrot.lane.b32.xlu1 %v9434_v24, %s11005_s3  ;;  %s8774_s3 = smov 76  }
 0x2a4   : > { %1469 = vrot.lane.b32.xlu0 %v6832_v16, %s11009_s20  ;;  %1462 = vrot.lane.b32.xlu1 %v9434_v24, %s11007_s13  ;;  %s8775_s13 = smov 104  }
 0x2a8   : > { %1478 = vrot.lane.b32.xlu0 %v6832_v16, %s11011_s2  ;;  %1471 = vrot.lane.b32.xlu1 %v9434_v24, %s11009_s20  ;;  %s11015_s20 = smov 72  }
 0x2ac   : > { %1487 = vrot.lane.b32.xlu0 %v6832_v16, %s11013_s30  ;;  %1480 = vrot.lane.b32.xlu1 %v9434_v24, %s11011_s2  ;;  %s11017_s2 = smov 100  }
 0x2b0   : > { %1496 = vrot.lane.b32.xlu0 %v6832_v16, %s8773_s7  ;;  %1489 = vrot.lane.b32.xlu1 %v9434_v24, %s11013_s30  ;;  %s11019_s30 = smov 68  }
 0x2b4   : > { %1505 = vrot.lane.b32.xlu0 %v6832_v16, %s8774_s3  ;;  %1498 = vrot.lane.b32.xlu1 %v9434_v24, %s8773_s7 }
 0x2b8   : > { %1514 = vrot.lane.b32.xlu0 %v6832_v16, %s8775_s13  ;;  %1507 = vrot.lane.b32.xlu1 %v9434_v24, %s8774_s3 }
 0x2bc   : > { %1523 = vrot.lane.b32.xlu0 %v6832_v16, %s11015_s20  ;;  %1516 = vrot.lane.b32.xlu1 %v9434_v24, %s8775_s13 }
 0x2c0   : > { %1532 = vrot.lane.b32.xlu0 %v6832_v16, %s11017_s2  ;;  %1525 = vrot.lane.b32.xlu1 %v9434_v24, %s11015_s20  ;;  %s11157_s20 = smov 120  }
 0x2c4   : > { %1541 = vrot.lane.b32.xlu0 %v6832_v16, %s11019_s30  ;;  %1534 = vrot.lane.b32.xlu1 %v9434_v24, %s11017_s2  ;;  %s11158_s2 = smov 88  }
 0x2c8   : > { %1630 = vrot.lane.b32.xlu0 %v9432_v23, %s11021_s8  ;;  %1543 = vrot.lane.b32.xlu1 %v9434_v24, %s11019_s30  ;;  %s11159_s30 = smov 116  }
 0x2cc   : > { %1642 = vrot.lane.b32.xlu0 %v9432_v23, %s8764_s9  ;;  %1632 = vrot.lane.b32.xlu1 %v9449_v28, %s11021_s8  ;;  %s11160_s8 = smov 84  }
 0x2d0   : > { %1651 = vrot.lane.b32.xlu0 %v9432_v23, %s8766_s29  ;;  %1644 = vrot.lane.b32.xlu1 %v9449_v28, %s8764_s9  ;;  %s11161_s9 = smov 112  }
 0x2d4   : > { %1660 = vrot.lane.b32.xlu0 %v9432_v23, %s11157_s20  ;;  %1653 = vrot.lane.b32.xlu1 %v9449_v28, %s8766_s29  ;;  %s11162_s29 = smov 80  }
 0x2d8   : > { %1669 = vrot.lane.b32.xlu0 %v9432_v23, %s11158_s2  ;;  %1662 = vrot.lane.b32.xlu1 %v9449_v28, %s11157_s20 }
 0x2dc   : > { %1678 = vrot.lane.b32.xlu0 %v9432_v23, %s11159_s30  ;;  %1671 = vrot.lane.b32.xlu1 %v9449_v28, %s11158_s2 }
 0x2e0   : > { %1687 = vrot.lane.b32.xlu0 %v9432_v23, %s11160_s8  ;;  %1680 = vrot.lane.b32.xlu1 %v9449_v28, %s11159_s30  ;;  %s11163_s30 = smov 72  }
 0x2e4   : > { %1696 = vrot.lane.b32.xlu0 %v9432_v23, %s11161_s9  ;;  %1689 = vrot.lane.b32.xlu1 %v9449_v28, %s11160_s8  ;;  %s11164_s8 = smov 100  }
 0x2e8   : > { %1705 = vrot.lane.b32.xlu0 %v9432_v23, %s11162_s29  ;;  %1698 = vrot.lane.b32.xlu1 %v9449_v28, %s11161_s9 }
 0x2ec   : > { %1714 = vrot.lane.b32.xlu0 %v9432_v23, %s8773_s7  ;;  %1707 = vrot.lane.b32.xlu1 %v9449_v28, %s11162_s29 }
 0x2f0   : > { %1723 = vrot.lane.b32.xlu0 %v9432_v23, %s8774_s3  ;;  %1716 = vrot.lane.b32.xlu1 %v9449_v28, %s8773_s7  ;;  %s11165_s7 = smov 96  }
 0x2f4   : > { %1732 = vrot.lane.b32.xlu0 %v9432_v23, %s8775_s13  ;;  %1725 = vrot.lane.b32.xlu1 %v9449_v28, %s8774_s3  ;;  %s11166_s3 = smov 68  }
 0x2f8   : > { %1741 = vrot.lane.b32.xlu0 %v9432_v23, %s11163_s30  ;;  %1734 = vrot.lane.b32.xlu1 %v9449_v28, %s8775_s13 }
 0x2fc   : > { %1750 = vrot.lane.b32.xlu0 %v9432_v23, %s11164_s8  ;;  %1743 = vrot.lane.b32.xlu1 %v9449_v28, %s11163_s30 }
 0x300   : > { %1752 = vrot.lane.b32.xlu1 %v9449_v28, %s11164_s8  ;;  %1413 = vrot.lane.b32.xlu0 %v9434_v24, %s11165_s7 }
 0x302   : > { %v1425_v29 = vpop.permute.xlu1 %1424  ;;  %v1412_v30 = vpop.permute.xlu0 %1411 }
 0x303   : > { %1431 = vst.msk [vmem:[#allocation2 + $0x8] sm:$0xf] %vm1419_vm2, %v1425_v29  ;;  %1422 = vst.msk [vmem:[#allocation3] sm:$0xf] %vm1419_vm2, %v1412_v30 }
 0x304   : > { %1417 = vst.msk [vmem:[%s9418_s0] sm:$0xf] %vm1408_vm3, %v1412_v30  ;;  %1761 = vrot.lane.b32.xlu1 %v9449_v28, %s11166_s3  ;;  %1759 = vrot.lane.b32.xlu0 %v9432_v23, %s11166_s3 }
 0x306   : > { %v1434_v31 = vpop.permute.xlu0 %1433  ;;  %v1427_v32 = vpop.permute.xlu1 %1426 }
 0x307   : > { %1440 = vst.msk [vmem:[#allocation3 + $0x8] sm:$0xf] %vm1419_vm2, %v1434_v31  ;;  %1432 = vst.msk [vmem:[#allocation2 + $0xc] sm:$0xf] %vm1419_vm2, %v1427_v32 }
 0x30a   : > { %v1443_v33 = vpop.permute.xlu0 %1442  ;;  %v1436_v34 = vpop.permute.xlu1 %1435 }
 0x30b   : > { %1449 = vst.msk [vmem:[#allocation2 + $0x10] sm:$0xf] %vm1419_vm2, %v1443_v33  ;;  %1441 = vst.msk [vmem:[#allocation3 + $0xc] sm:$0xf] %vm1419_vm2, %v1436_v34 }
 0x30e   : > { %v1452_v35 = vpop.permute.xlu0 %1451  ;;  %v1445_v36 = vpop.permute.xlu1 %1444 }
 0x30f   : > { %1458 = vst.msk [vmem:[#allocation3 + $0x10] sm:$0xf] %vm1419_vm2, %v1452_v35  ;;  %1450 = vst.msk [vmem:[#allocation2 + $0x14] sm:$0xf] %vm1419_vm2, %v1445_v36 }
 0x312   : > { %v1461_v37 = vpop.permute.xlu0 %1460  ;;  %v1454_v38 = vpop.permute.xlu1 %1453 }
 0x313   : > { %1467 = vst.msk [vmem:[#allocation2 + $0x18] sm:$0xf] %vm1419_vm2, %v1461_v37  ;;  %1459 = vst.msk [vmem:[#allocation3 + $0x14] sm:$0xf] %vm1419_vm2, %v1454_v38 }
 0x316   : > { %v1470_v39 = vpop.permute.xlu0 %1469  ;;  %v1463_v40 = vpop.permute.xlu1 %1462 }
 0x317   : > { %1476 = vst.msk [vmem:[#allocation3 + $0x18] sm:$0xf] %vm1419_vm2, %v1470_v39  ;;  %1468 = vst.msk [vmem:[#allocation2 + $0x1c] sm:$0xf] %vm1419_vm2, %v1463_v40 }
 0x31a   : > { %v1479_v41 = vpop.permute.xlu0 %1478  ;;  %v1472_v42 = vpop.permute.xlu1 %1471 }
 0x31b   : > { %1485 = vst.msk [vmem:[#allocation2 + $0x20] sm:$0xf] %vm1419_vm2, %v1479_v41  ;;  %1477 = vst.msk [vmem:[#allocation3 + $0x1c] sm:$0xf] %vm1419_vm2, %v1472_v42 }
 0x31e   : > { %v1488_v43 = vpop.permute.xlu0 %1487  ;;  %v1481_v44 = vpop.permute.xlu1 %1480 }
 0x31f   : > { %1494 = vst.msk [vmem:[#allocation3 + $0x20] sm:$0xf] %vm1419_vm2, %v1488_v43  ;;  %1486 = vst.msk [vmem:[#allocation2 + $0x24] sm:$0xf] %vm1419_vm2, %v1481_v44 }
 0x322   : > { %v1497_v45 = vpop.permute.xlu0 %1496  ;;  %v1490_v46 = vpop.permute.xlu1 %1489 }
 0x323   : > { %1503 = vst.msk [vmem:[#allocation2 + $0x28] sm:$0xf] %vm1419_vm2, %v1497_v45  ;;  %1495 = vst.msk [vmem:[#allocation3 + $0x24] sm:$0xf] %vm1419_vm2, %v1490_v46 }
 0x326   : > { %v1506_v47 = vpop.permute.xlu0 %1505  ;;  %v1499_v48 = vpop.permute.xlu1 %1498 }
 0x327   : > { %1512 = vst.msk [vmem:[#allocation3 + $0x28] sm:$0xf] %vm1419_vm2, %v1506_v47  ;;  %1504 = vst.msk [vmem:[#allocation2 + $0x2c] sm:$0xf] %vm1419_vm2, %v1499_v48 }
 0x32a   : > { %v1515_v49 = vpop.permute.xlu0 %1514  ;;  %v1508_v50 = vpop.permute.xlu1 %1507 }
 0x32b   : > { %1521 = vst.msk [vmem:[#allocation2 + $0x30] sm:$0xf] %vm1419_vm2, %v1515_v49  ;;  %1513 = vst.msk [vmem:[#allocation3 + $0x2c] sm:$0xf] %vm1419_vm2, %v1508_v50 }
 0x32e   : > { %v1524_v51 = vpop.permute.xlu0 %1523  ;;  %v1517_v52 = vpop.permute.xlu1 %1516 }
 0x32f   : > { %1530 = vst.msk [vmem:[#allocation3 + $0x30] sm:$0xf] %vm1419_vm2, %v1524_v51  ;;  %1522 = vst.msk [vmem:[#allocation2 + $0x34] sm:$0xf] %vm1419_vm2, %v1517_v52 }
 0x332   : > { %v1533_v53 = vpop.permute.xlu0 %1532  ;;  %v1526_v54 = vpop.permute.xlu1 %1525 }
 0x333   : > { %1539 = vst.msk [vmem:[#allocation2 + $0x38] sm:$0xf] %vm1419_vm2, %v1533_v53  ;;  %1531 = vst.msk [vmem:[#allocation3 + $0x34] sm:$0xf] %vm1419_vm2, %v1526_v54 }
 0x336   : > { %v1542_v55 = vpop.permute.xlu0 %1541  ;;  %v1535_v56 = vpop.permute.xlu1 %1534 }
 0x337   : > { %1548 = vst.msk [vmem:[#allocation3 + $0x38] sm:$0xf] %vm1419_vm2, %v1542_v55  ;;  %1540 = vst.msk [vmem:[#allocation2 + $0x3c] sm:$0xf] %vm1419_vm2, %v1535_v56 }
 0x33a   : > { %v1631_v57 = vpop.permute.xlu0 %1630  ;;  %v1544_v58 = vpop.permute.xlu1 %1543 }
 0x33b   : > { %1636 = vst.msk [vmem:[%s9422_s16] sm:$0xf] %vm1408_vm3, %v1631_v57 }
 0x33c   : > { %1640 = vst.msk [vmem:[#allocation5] sm:$0xf] %vm1419_vm2, %v1631_v57  ;;  %1549 = vst.msk [vmem:[#allocation3 + $0x3c] sm:$0xf] %vm1419_vm2, %v1544_v58 }
 0x33e   : > { %v1643_v59 = vpop.permute.xlu0 %1642  ;;  %v1633_v60 = vpop.permute.xlu1 %1632 }
 0x33f   : > { %1649 = vst.msk [vmem:[#allocation4 + $0x8] sm:$0xf] %vm1419_vm2, %v1643_v59  ;;  %1641 = vst.msk [vmem:[#allocation5 + $0x4] sm:$0xf] %vm1419_vm2, %v1633_v60 }
 0x340   : > { %1637 = vst.msk [vmem:[%s9422_s16 + $0x4] sm:$0xf] %vm1408_vm3, %v1633_v60 }
 0x342   : > { %v1652_v61 = vpop.permute.xlu0 %1651  ;;  %v1645_v62 = vpop.permute.xlu1 %1644 }
 0x343   : > { %1658 = vst.msk [vmem:[#allocation5 + $0x8] sm:$0xf] %vm1419_vm2, %v1652_v61  ;;  %1650 = vst.msk [vmem:[#allocation4 + $0xc] sm:$0xf] %vm1419_vm2, %v1645_v62 }
 0x346   : > { %v1661_v63 = vpop.permute.xlu0 %1660  ;;  %v1654_v0 = vpop.permute.xlu1 %1653 }
 0x347   : > { %1667 = vst.msk [vmem:[#allocation4 + $0x10] sm:$0xf] %vm1419_vm2, %v1661_v63  ;;  %1659 = vst.msk [vmem:[#allocation5 + $0xc] sm:$0xf] %vm1419_vm2, %v1654_v0 }
 0x34a   : > { %v1670_v1 = vpop.permute.xlu0 %1669  ;;  %v1663_v2 = vpop.permute.xlu1 %1662 }
 0x34b   : > { %1676 = vst.msk [vmem:[#allocation5 + $0x10] sm:$0xf] %vm1419_vm2, %v1670_v1  ;;  %1668 = vst.msk [vmem:[#allocation4 + $0x14] sm:$0xf] %vm1419_vm2, %v1663_v2 }
 0x34e   : > { %v1679_v3 = vpop.permute.xlu0 %1678  ;;  %v1672_v4 = vpop.permute.xlu1 %1671 }
 0x34f   : > { %1685 = vst.msk [vmem:[#allocation4 + $0x18] sm:$0xf] %vm1419_vm2, %v1679_v3  ;;  %1677 = vst.msk [vmem:[#allocation5 + $0x14] sm:$0xf] %vm1419_vm2, %v1672_v4 }
 0x352   : > { %v1688_v5 = vpop.permute.xlu0 %1687  ;;  %v1681_v6 = vpop.permute.xlu1 %1680 }
 0x353   : > { %1694 = vst.msk [vmem:[#allocation5 + $0x18] sm:$0xf] %vm1419_vm2, %v1688_v5  ;;  %1686 = vst.msk [vmem:[#allocation4 + $0x1c] sm:$0xf] %vm1419_vm2, %v1681_v6 }
 0x356   : > { %v1697_v7 = vpop.permute.xlu0 %1696  ;;  %v1690_v8 = vpop.permute.xlu1 %1689 }
 0x357   : > { %1703 = vst.msk [vmem:[#allocation4 + $0x20] sm:$0xf] %vm1419_vm2, %v1697_v7  ;;  %1695 = vst.msk [vmem:[#allocation5 + $0x1c] sm:$0xf] %vm1419_vm2, %v1690_v8 }
 0x35a   : > { %v1706_v9 = vpop.permute.xlu0 %1705  ;;  %v1699_v10 = vpop.permute.xlu1 %1698 }
 0x35b   : > { %1712 = vst.msk [vmem:[#allocation5 + $0x20] sm:$0xf] %vm1419_vm2, %v1706_v9  ;;  %1704 = vst.msk [vmem:[#allocation4 + $0x24] sm:$0xf] %vm1419_vm2, %v1699_v10 }
 0x35e   : > { %v1715_v11 = vpop.permute.xlu0 %1714  ;;  %v1708_v12 = vpop.permute.xlu1 %1707 }
 0x35f   : > { %1721 = vst.msk [vmem:[#allocation4 + $0x28] sm:$0xf] %vm1419_vm2, %v1715_v11  ;;  %1713 = vst.msk [vmem:[#allocation5 + $0x24] sm:$0xf] %vm1419_vm2, %v1708_v12 }
 0x362   : > { %v1724_v13 = vpop.permute.xlu0 %1723  ;;  %v1717_v14 = vpop.permute.xlu1 %1716 }
 0x363   : > { %1730 = vst.msk [vmem:[#allocation5 + $0x28] sm:$0xf] %vm1419_vm2, %v1724_v13  ;;  %1722 = vst.msk [vmem:[#allocation4 + $0x2c] sm:$0xf] %vm1419_vm2, %v1717_v14 }
 0x366   : > { %v1733_v15 = vpop.permute.xlu0 %1732  ;;  %v1726_v16 = vpop.permute.xlu1 %1725 }
 0x367   : > { %1739 = vst.msk [vmem:[#allocation4 + $0x30] sm:$0xf] %vm1419_vm2, %v1733_v15  ;;  %1731 = vst.msk [vmem:[#allocation5 + $0x2c] sm:$0xf] %vm1419_vm2, %v1726_v16 }
 0x36a   : > { %v1742_v17 = vpop.permute.xlu0 %1741  ;;  %v1735_v18 = vpop.permute.xlu1 %1734 }
 0x36b   : > { %1748 = vst.msk [vmem:[#allocation5 + $0x30] sm:$0xf] %vm1419_vm2, %v1742_v17  ;;  %1740 = vst.msk [vmem:[#allocation4 + $0x34] sm:$0xf] %vm1419_vm2, %v1735_v18 }
 0x36e   : > { %v1751_v19 = vpop.permute.xlu0 %1750  ;;  %v1744_v20 = vpop.permute.xlu1 %1743 }
 0x36f   : > { %1757 = vst.msk [vmem:[#allocation4 + $0x38] sm:$0xf] %vm1419_vm2, %v1751_v19  ;;  %1749 = vst.msk [vmem:[#allocation5 + $0x34] sm:$0xf] %vm1419_vm2, %v1744_v20 }
 0x372   : > { %v1753_v21 = vpop.permute.xlu1 %1752  ;;  %v1414_v22 = vpop.permute.xlu0 %1413 }
 0x373   : > { %1758 = vst.msk [vmem:[#allocation4 + $0x3c] sm:$0xf] %vm1419_vm2, %v1753_v21  ;;  %1423 = vst.msk [vmem:[#allocation3 + $0x4] sm:$0xf] %vm1419_vm2, %v1414_v22 }
 0x374   : > { %1418 = vst.msk [vmem:[%s9418_s0 + $0x4] sm:$0xf] %vm1408_vm3, %v1414_v22 }
 0x376   : > { %v1762_v23 = vpop.permute.xlu1 %1761  ;;  %v1760_v24 = vpop.permute.xlu0 %1759 }
 0x377   : > { %1767 = vst.msk [vmem:[#allocation5 + $0x3c] sm:$0xf] %vm1419_vm2, %v1762_v23  ;;  %1766 = vst.msk [vmem:[#allocation5 + $0x38] sm:$0xf] %vm1419_vm2, %v1760_v24 }
 0x378 PF: > { %s11167_s13 = sld [smem:[#allocation58_spill]]  ;;  %v8779_v26 = vmov 0.0   ;;  %vm8780_vm4 = vmmov 0   ;;  %v1769_v28 = vld [vmem:[%s9353_s26] sm:$0xff]  ;;  %vm1878_vm5 = vcmask 31744   ;;  %vm1796_vm6 = vcmask 261120  }
 0x379   : > { %7014 = vmatprep.subr.bf16.mxu0 %v8779_v26  ;;  %7022 = vmatprep.subr.bf16.mxu1 %v8779_v26  ;;  %v1856_v29 = vld [vmem:[#allocation2] sm:$0xf]  ;;  %v1772_v31 = vpack.c.bf16 %v1769_v28, %v1769_v28  ;;  %v1857_v32 = vld [vmem:[#allocation2 + $0x8] sm:$0xf]  ;;  %v6713_v34 = vld [vmem:[#allocation14] ss:$0 sm:$0xff]  ;;  %v2247_v60 = vlaneseq }
 0x37a   : > { %7018 = vmatprep.mubr.msk.bf16.mxu0 %vm8780_vm4, %v8779_v26  ;;  %v1883_v30 = vsel %vm1878_vm5, %v1856_v29, 0  ;;  %7024 = vmatprep.mubr.msk.bf16.mxu1 %vm8780_vm4, %v8779_v26  ;;  %v1929_v33 = vsel %vm1878_vm5, %v1857_v32, 0  ;;  %v1858_v37 = vld [vmem:[#allocation2 + $0x10] sm:$0xf]  ;;  %s8781_s20 = smov 116   ;;  %s8782_s2 = smov 124  }
 0x37b   : > { %7023 = vmatpush3.bf16.xpose.msra.mxu1 %v1883_v30  ;;  %v1975_v41 = vsel %vm1878_vm5, %v1858_v37, 0  ;;  %s11030_s9 = smov 112   ;;  %s8784_s29 = smov 120   ;;  %v1859_v43 = vld [vmem:[#allocation2 + $0x18] sm:$0xf]  ;;  %v2248_v61 = vshrl.u32 %v2247_v60, 7 }
 0x37c   : > { %7034 = vmatprep.subr.bf16.mxu1 %v8779_v26  ;;  %s11023_s30 = smov 104   ;;  %s11024_s8 = smov 108   ;;  %v2021_v44 = vsel %vm1878_vm5, %v1859_v43, 0  ;;  %v1860_v46 = vld [vmem:[#allocation2 + $0x20] sm:$0xf]  ;;  %v9719_v0 = vand.u32 127, %v2247_v60 }
 0x37d   : > { %s11022_s7 = smov 100   ;;  %v2067_v47 = vsel %vm1878_vm5, %v1860_v46, 0  ;;  %v1861_v49 = vld [vmem:[#allocation2 + $0x28] sm:$0xf]  ;;  %v1862_v52 = vld [vmem:[#allocation2 + $0x30] sm:$0xf] }
 0x37e   : > { %v7805_v25 = vld [vmem:[%s11167_s13 + $0x8] sm:$0xff]   ;;  %v7806_v27 = vld [vmem:[%s11167_s13] sm:$0xff]   ;;  %v2113_v51 = vsel %vm1878_vm5, %v1861_v49, 0  ;;  %v2159_v53 = vsel %vm1878_vm5, %v1862_v52, 0  ;;  %v1863_v55 = vld [vmem:[#allocation2 + $0x38] sm:$0xf] }
 0x37f   : > { %7015 = vmatpush3.bf16.msra.mxu0 %v7805_v25  ;;  %s11168_s3 = sld [smem:[#allocation88_spill]]  ;;  %v2205_v56 = vsel %vm1878_vm5, %v1863_v55, 0  ;;  %v8788_v3 = vmov -1e+09   ;;  %vm2263_vm8 = vcmask 64512   ;;  %vm2395_vm9 = vcmask 1043456  }
 0x380   : > { %7016 = vmatprep.subr.bf16.mxu0 %v8779_v26  ;;  %v1864_v11 = vld [vmem:[#allocation3] sm:$0xf]  ;;  %vm3709_vm11 = vcmask 97280   ;;  %vm3711_vm12 = vcmask 130048   ;;  %vm3713_vm13 = vcmask 162816   ;;  %vm3715_vm14 = vcmask 195584  }
 0x381   : > { %v2397_v12 = vsel %vm2395_vm9, %v1864_v11, 0  ;;  %vm3717_vm15 = vcmask 228352   ;;  %s11041_s4 = scalar_lea.sflag [#allocation35], %s9360_s25  ;;  %p11190_p0 = scmp.ne.s32.totalorder %s11124_s17, 0 }
 0x383   : > { %7017 = vmatpush3.bf16.msra.mxu0 %v7806_v27 }
 0x384   : > { %7028 = vmatprep.subr.bf16.mxu0 %v8779_v26 }
 0x386   : > { %7019 = vmatmul.mubr.msk.bf16.vlgmr.msra.gmra.mxu0 %vm1796_vm6, %v1772_v31 }
 0x387   : > { %7030 = vmatprep.mubr.msk.bf16.mxu0 %vm8780_vm4, %v8779_v26  ;;  %7029 = vmatpush3.bf16.xpose.msra.mxu0 %v1929_v33 }
 0x388   : > { %7040 = vmatprep.subr.bf16.mxu0 %v8779_v26 }
 0x446   : > { %v1834_v35 = vpop.f32.mrf.mxu0 }
 0x447   : > { %v1835_v36 = vadd.f32 %v6713_v34, %v1834_v35 }
 0x448   : > { %v7020_v38 = vpop.f32.mrf.mxu0 }
 0x449   : > { %v9642_v39 = vpack.c.bf16 %v1835_v36, %v1835_v36 }
 0x44a   : > { %v1837_v40 = vpop.f32.mrf.mxu0 }
 0x44b   : > { %1846 = vrot.lane.b32.xlu1 %v9642_v39, %s8781_s20  ;;  %1842 = vrot.lane.b32.xlu0 %v9642_v39, %s8782_s2 }
 0x44c   : > { %7025 = vmatmul.mubr.msk.bf16.vlgmr.msra.gmra.mxu1 %vm1878_vm5, %v9642_v39  ;;  %v7021_v42 = vpop.f32.mrf.mxu0 }
 0x44d   : > { %7035 = vmatpush3.bf16.xpose.msra.mxu1 %v1975_v41  ;;  %7036 = vmatprep.mubr.msk.bf16.mxu1 %vm8780_vm4, %v8779_v26 }
 0x44e   : > { %7046 = vmatprep.subr.bf16.mxu1 %v8779_v26 }
 0x44f   : > { %1848 = vrot.lane.b32.xlu1 %v9642_v39, %s11030_s9  ;;  %1844 = vrot.lane.b32.xlu0 %v9642_v39, %s8784_s29  ;;  %s11031_s9 = smov 28  }
 0x453   : > { %1852 = vrot.lane.b32.xlu1 %v9642_v39, %s11023_s30  ;;  %1850 = vrot.lane.b32.xlu0 %v9642_v39, %s11024_s8  ;;  %s11169_s30 = scalar_lea.vmem [#allocation11], %s9363_s27  ;;  %s11027_s8 = smov 8  }
 0x454   : > { %v9725_v1 = vld [vmem:[%s11169_s30] ss:$0 sm:$0xff]  ;;  %s11170_s30 = sld [smem:[#allocation62_spill]] }
 0x457   : > { %1854 = vrot.lane.b32.xlu0 %v9642_v39, %s11022_s7  ;;  %s6712_s7 = sshll.u32 %s11168_s3, 3 }
 0x458   : > { %v2249_v62 = vstv %s6712_s7  ;;  %s11025_s7 = smov 4  }
 0x459   : > { %v9717_v63 = vadd.s32 %v2249_v62, %v2248_v61 }
 0x45b   : > { %vm2253_vm7 = vcmp.le.s32.totalorder %v9719_v0, %v9717_v63 }
 0x45c   : > { %v9728_v4 = vsel %vm2253_vm7, 0.0, %v8788_v3 }
 0x4bd   : > { %v9665_v45 = vpop.permute.xlu0 %1842  ;;  %v9677_v50 = vpop.permute.xlu1 %1846 }
 0x4be   : > { %7031 = vmatmul.mubr.msk.bf16.vlgmr.msra.gmra.mxu0 %vm1878_vm5, %v9665_v45 }
 0x4bf   : > { %7041 = vmatpush3.bf16.xpose.msra.mxu0 %v2021_v44  ;;  %7042 = vmatprep.mubr.msk.bf16.mxu0 %vm8780_vm4, %v8779_v26 }
 0x4c0   : > { %7052 = vmatprep.subr.bf16.mxu0 %v8779_v26 }
 0x4c1   : > { %v9673_v48 = vpop.permute.xlu0 %1844  ;;  %v9689_v54 = vpop.permute.xlu1 %1848 }
 0x4c2   : > { %7037 = vmatmul.mubr.msk.bf16.vlgmr.msra.gmra.mxu1 %vm1878_vm5, %v9673_v48 }
 0x4c3   : > { %7047 = vmatpush3.bf16.xpose.msra.mxu1 %v2067_v47  ;;  %7048 = vmatprep.mubr.msk.bf16.mxu1 %vm8780_vm4, %v8779_v26 }
 0x4c4   : > { %7058 = vmatprep.subr.bf16.mxu1 %v8779_v26 }
 0x4c5   : > { %v9697_v57 = vpop.permute.xlu0 %1850  ;;  %v9704_v58 = vpop.permute.xlu1 %1852 }
 0x4c6   : > { %7043 = vmatmul.mubr.msk.bf16.vlgmr.msra.gmra.mxu0 %vm1878_vm5, %v9677_v50 }
 0x4c7   : > { %7053 = vmatpush3.bf16.xpose.msra.mxu0 %v2113_v51  ;;  %7054 = vmatprep.mubr.msk.bf16.mxu0 %vm8780_vm4, %v8779_v26 }
 0x4c8   : > { %7064 = vmatprep.subr.bf16.mxu0 %v8779_v26 }
 0x4c9   : > { %v9710_v59 = vpop.permute.xlu0 %1854 }
 0x4ca   : > { %7049 = vmatmul.mubr.msk.bf16.vlgmr.msra.gmra.mxu1 %vm1878_vm5, %v9689_v54 }
 0x4cb   : > { %7059 = vmatpush3.bf16.xpose.msra.mxu1 %v2159_v53  ;;  %7060 = vmatprep.mubr.msk.bf16.mxu1 %vm8780_vm4, %v8779_v26 }
 0x4cc   : > { %7070 = vmatprep.subr.bf16.mxu1 %v8779_v26 }
 0x4ce   : > { %7055 = vmatmul.mubr.msk.bf16.vlgmr.msra.gmra.mxu0 %vm1878_vm5, %v9697_v57 }
 0x4cf   : > { %7065 = vmatpush3.bf16.xpose.msra.mxu0 %v2205_v56  ;;  %7066 = vmatprep.mubr.msk.bf16.mxu0 %vm8780_vm4, %v8779_v26 }
 0x4d0   : > { %7076 = vmatprep.subr.bf16.mxu0 %v8779_v26 }
 0x4d2   : > { %7061 = vmatmul.mubr.msk.bf16.vlgmr.msra.gmra.mxu1 %vm1878_vm5, %v9704_v58 }
 0x4d3   : > { %7072 = vmatprep.mubr.msk.bf16.mxu1 %vm8780_vm4, %v8779_v26  ;;  %7071 = vmatpush3.bf16.msra.mxu1 %v2397_v12 }
 0x4d4   : > { %7082 = vmatprep.subr.bf16.mxu1 %v8779_v26 }
 0x4d6   : > { %7067 = vmatmul.mubr.msk.bf16.vlgmr.msra.gmra.mxu0 %vm1878_vm5, %v9710_v59 }
 0x4d7   : > { %7078 = vmatprep.mubr.msk.bf16.mxu0 %vm8780_vm4, %v8779_v26 }
 0x50c   : > { %v1919_v2 = vpop.f32.mrf.mxu1 }
 0x50d   : > { %v1920_v5 = vadd.f32 %v9725_v1, %v1919_v2 }
 0x50e   : > { %v7026_v6 = vpop.f32.mrf.mxu1 }
 0x50f   : > { %v9732_v7 = vadd.f32 %v9728_v4, %v1920_v5 }
 0x510   : > { %v1922_v8 = vpop.f32.mrf.mxu1 }
 0x511   : > { %v2264_v9 = vsel %vm2263_vm8, %v9732_v7, -inf }
 0x512   : > { %v7027_v10 = vpop.f32.mrf.mxu1  ;;  %2265 = vmax.xlane.f32.xlu1 %v2264_v9 }
 0x57e   : > { %v1965_v13 = vpop.f32.mrf.mxu0 }
 0x57f   : > { %v1966_v14 = vadd.f32 %v9725_v1, %v1965_v13 }
 0x580   : > { %v7032_v15 = vpop.f32.mrf.mxu0 }
 0x581   : > { %v9740_v16 = vadd.f32 %v9728_v4, %v1966_v14 }
 0x582   : > { %v1968_v17 = vpop.f32.mrf.mxu0  ;;  %v2011_v18 = vpop.f32.mrf.mxu1 }
 0x583   : > { %v2012_v19 = vadd.f32 %v9725_v1, %v2011_v18  ;;  %v2267_v20 = vsel %vm2263_vm8, %v9740_v16, -inf  ;;  %v1865_v18 = vld [vmem:[#allocation3 + $0x8] sm:$0xf] }
 0x584   : > { %v7033_v21 = vpop.f32.mrf.mxu0  ;;  %v7038_v22 = vpop.f32.mrf.mxu1  ;;  %2268 = vmax.xlane.f32.xlu0 %v2267_v20 }
 0x585   : > { %v9746_v23 = vadd.f32 %v9728_v4, %v2012_v19  ;;  %v2443_v19 = vsel %vm2395_vm9, %v1865_v18, 0 }
 0x586   : > { %v2014_v24 = vpop.f32.mrf.mxu1  ;;  %v2057_v25 = vpop.f32.mrf.mxu0  ;;  %7077 = vmatpush3.bf16.msra.mxu0 %v2443_v19 }
 0x587   : > { %v2058_v27 = vadd.f32 %v9725_v1, %v2057_v25  ;;  %v2270_v28 = vsel %vm2263_vm8, %v9746_v23, -inf  ;;  %7088 = vmatprep.subr.bf16.mxu0 %v8779_v26 }
 0x588   : > { %v7039_v29 = vpop.f32.mrf.mxu1  ;;  %v7044_v30 = vpop.f32.mrf.mxu0  ;;  %2271 = vmax.xlane.f32.xlu0 %v2270_v28 }
 0x589   : > { %v9752_v31 = vadd.f32 %v9728_v4, %v2058_v27 }
 0x58a   : > { %v2060_v32 = vpop.f32.mrf.mxu0  ;;  %v2103_v33 = vpop.f32.mrf.mxu1 }
 0x58b   : > { %v2104_v34 = vadd.f32 %v9725_v1, %v2103_v33  ;;  %v2273_v35 = vsel %vm2263_vm8, %v9752_v31, -inf }
 0x58c   : > { %v7045_v36 = vpop.f32.mrf.mxu0  ;;  %v7050_v37 = vpop.f32.mrf.mxu1  ;;  %2274 = vmax.xlane.f32.xlu1 %v2273_v35 }
 0x58d   : > { %v9758_v38 = vadd.f32 %v9728_v4, %v2104_v34 }
 0x58e   : > { %v2106_v40 = vpop.f32.mrf.mxu1  ;;  %v2149_v41 = vpop.f32.mrf.mxu0 }
 0x58f   : > { %v2150_v42 = vadd.f32 %v9725_v1, %v2149_v41  ;;  %v2276_v43 = vsel %vm2263_vm8, %v9758_v38, -inf }
 0x590   : > { %v7051_v44 = vpop.f32.mrf.mxu1  ;;  %v7056_v46 = vpop.f32.mrf.mxu0  ;;  %2277 = vmax.xlane.f32.xlu0 %v2276_v43 }
 0x591   : > { %v9764_v47 = vadd.f32 %v9728_v4, %v2150_v42 }
 0x592   : > { %v2152_v49 = vpop.f32.mrf.mxu0  ;;  %v2195_v51 = vpop.f32.mrf.mxu1 }
 0x593   : > { %v2196_v52 = vadd.f32 %v9725_v1, %v2195_v51  ;;  %v2279_v53 = vsel %vm2263_vm8, %v9764_v47, -inf }
 0x594   : > { %v7057_v55 = vpop.f32.mrf.mxu0  ;;  %v7062_v56 = vpop.f32.mrf.mxu1  ;;  %2280 = vmax.xlane.f32.xlu1 %v2279_v53 }
 0x595   : > { %v9770_v60 = vadd.f32 %v9728_v4, %v2196_v52  ;;  %v1868_v52 = vld [vmem:[#allocation3 + $0x20] sm:$0xf] }
 0x596   : > { %v2198_v61 = vpop.f32.mrf.mxu1  ;;  %v2241_v62 = vpop.f32.mrf.mxu0 }
 0x597   : > { %v2242_v2 = vadd.f32 %v9725_v1, %v2241_v62  ;;  %v2282_v5 = vsel %vm2263_vm8, %v9770_v60, -inf }
 0x598   : > { %v7063_v6 = vpop.f32.mrf.mxu1  ;;  %v7068_v8 = vpop.f32.mrf.mxu0  ;;  %2283 = vmax.xlane.f32.xlu0 %v2282_v5 }
 0x599   : > { %v9776_v9 = vadd.f32 %v9728_v4, %v2242_v2  ;;  %v1866_v4 = vld [vmem:[#allocation3 + $0x10] sm:$0xf]  ;;  %v2581_v2 = vsel %vm2395_vm9, %v1868_v52, 0 }
 0x59a   : > { %v2244_v10 = vpop.f32.mrf.mxu0  ;;  %v2489_v22 = vsel %vm2395_vm9, %v1866_v4, 0 }
 0x59b   : > { %v2266_v11 = vpop.xlane.xlu1 %2265  ;;  %v2285_v12 = vsel %vm2263_vm8, %v9776_v9, -inf }
 0x59c   : > { %v9780_v13 = vmax.f32 %v2266_v11, -1e+30  ;;  %v7069_v14 = vpop.f32.mrf.mxu0  ;;  %2286 = vmax.xlane.f32.xlu1 %v2285_v12  ;;  %v1870_v12 = vld [vmem:[#allocation3 + $0x30] sm:$0xf] }
 0x59e   : > { %v2320_v15 = vsub.f32 %v9732_v7, %v9780_v13 }
 0x5a0   : > { %v2328_v17 = vmul.f32 1.442695, %v2320_v15  ;;  %v2673_v15 = vsel %vm2395_vm9, %v1870_v12, 0 }
 0x5a2   : > { %7819 = vpow2.f32 %v2328_v17  ;;  %v1871_v17 = vld [vmem:[#allocation3 + $0x38] sm:$0xf] }
 0x5a3   : > { %v2719_v4 = vsel %vm2395_vm9, %v1871_v17, 0 }
 0x5ae   : > { %2785 = vrot.lane.b32.xlu0 %v9725_v1, %s8784_s29 }
 0x5af   : > { %v9788_v20 = vpop.eup %7819 }
 0x5b0   : > { %v2384_v21 = vpack.c.bf16 %v9788_v20, %v9788_v20 }
 0x5b2   : > { %7073 = vmatmul.mubr.msk.bf16.vlgmr.msra.gmra.mxu1 %vm2263_vm8, %v2384_v21  ;;  %v2769_v21 = vld [vmem:[#allocation2 + $0x4] sm:$0xf] }
 0x5b3   : > { %7083 = vmatpush3.bf16.msra.mxu1 %v2489_v22  ;;  %7084 = vmatprep.mubr.msk.bf16.mxu1 %vm8780_vm4, %v8779_v26 }
 0x5b4   : > { %7094 = vmatprep.subr.bf16.mxu1 %v8779_v26 }
 0x60d   : > { %v2269_v7 = vpop.xlane.xlu0 %2268 }
 0x60e   : > { %v9797_v24 = vmax.f32 %v2269_v7, -1e+30 }
 0x610   : > { %v2321_v1 = vsub.f32 %v9740_v16, %v9797_v24 }
 0x611   : > { %v2272_v25 = vpop.xlane.xlu0 %2271 }
 0x612   : > { %v2330_v27 = vmul.f32 1.442695, %v2321_v1  ;;  %v9801_v28 = vmax.f32 %v2272_v25, -1e+30  ;;  %v2789_v1 = vsel %vm1878_vm5, %v2769_v21, 0 }
 0x613   : > { %v2770_v25 = vld [vmem:[#allocation2 + $0xc] sm:$0xf] }
 0x614   : > { %7821 = vpow2.f32 %v2330_v27  ;;  %v2322_v29 = vsub.f32 %v9746_v23, %v9801_v28  ;;  %v1867_v23 = vld [vmem:[#allocation3 + $0x18] sm:$0xf] }
 0x615   : > { %v2275_v30 = vpop.xlane.xlu1 %2274 }
 0x616   : > { %v2332_v32 = vmul.f32 1.442695, %v2322_v29  ;;  %v9805_v33 = vmax.f32 %v2275_v30, -1e+30  ;;  %v2832_v30 = vsel %vm1878_vm5, %v2770_v25, 0 }
 0x618   : > { %7823 = vpow2.f32 %v2332_v32  ;;  %v2323_v34 = vsub.f32 %v9752_v31, %v9805_v33  ;;  %v2771_v32 = vld [vmem:[#allocation2 + $0x14] sm:$0xf] }
 0x619   : > { %v2278_v35 = vpop.xlane.xlu0 %2277 }
 0x61a   : > { %v2334_v36 = vmul.f32 1.442695, %v2323_v34  ;;  %v9809_v37 = vmax.f32 %v2278_v35, -1e+30  ;;  %v2875_v34 = vsel %vm1878_vm5, %v2771_v32, 0 }
 0x61b   : > { %v2772_v35 = vld [vmem:[#allocation2 + $0x1c] sm:$0xf] }
 0x61c   : > { %7825 = vpow2.f32 %v2334_v36  ;;  %v2324_v16 = vsub.f32 %v9758_v38, %v9809_v37  ;;  %v2535_v38 = vsel %vm2395_vm9, %v1867_v23, 0  ;;  %v2918_v36 = vsel %vm1878_vm5, %v2772_v35, 0 }
 0x61d   : > { %v2281_v40 = vpop.xlane.xlu1 %2280 }
 0x61e   : > { %v2336_v41 = vmul.f32 1.442695, %v2324_v16  ;;  %v9813_v42 = vmax.f32 %v2281_v40, -1e+30  ;;  %v2773_v16 = vld [vmem:[#allocation2 + $0x24] sm:$0xf] }
 0x61f   : > { %v2961_v40 = vsel %vm1878_vm5, %v2773_v16, 0 }
 0x620   : > { %7827 = vpow2.f32 %v2336_v41  ;;  %v2325_v43 = vsub.f32 %v9764_v47, %v9813_v42 }
 0x621   : > { %v9817_v44 = vpop.eup %7821  ;;  %v2284_v31 = vpop.xlane.xlu0 %2283 }
 0x622   : > { %v2338_v46 = vmul.f32 1.442695, %v2325_v43  ;;  %v9819_v49 = vmax.f32 %v2284_v31, -1e+30  ;;  %v2385_v51 = vpack.c.bf16 %v9817_v44, %v9817_v44 }
 0x624   : > { %7829 = vpow2.f32 %v2338_v46  ;;  %v2326_v53 = vsub.f32 %v9770_v60, %v9819_v49  ;;  %7079 = vmatmul.mubr.msk.bf16.vlgmr.msra.gmra.mxu0 %vm2263_vm8, %v2385_v51  ;;  %v1869_v60 = vld [vmem:[#allocation3 + $0x28] sm:$0xf] }
 0x625   : > { %v9827_v55 = vpop.eup %7823  ;;  %7089 = vmatpush3.bf16.msra.mxu0 %v2535_v38  ;;  %v2287_v47 = vpop.xlane.xlu1 %2286  ;;  %7090 = vmatprep.mubr.msk.bf16.mxu0 %vm8780_vm4, %v8779_v26  ;;  %v2627_v11 = vsel %vm2395_vm9, %v1869_v60, 0 }
 0x626   : > { %v2340_v56 = vmul.f32 1.442695, %v2326_v53  ;;  %v9831_v61 = vmax.f32 %v2287_v47, -1e+30  ;;  %v2386_v62 = vpack.c.bf16 %v9827_v55, %v9827_v55  ;;  %7100 = vmatprep.subr.bf16.mxu0 %v8779_v26  ;;  %v2786_v25 = vpop.permute.xlu0 %2785 }
 0x628   : > { %7831 = vpow2.f32 %v2340_v56  ;;  %v2327_v5 = vsub.f32 %v9776_v9, %v9831_v61  ;;  %7085 = vmatmul.mubr.msk.bf16.vlgmr.msra.gmra.mxu1 %vm2263_vm8, %v2386_v62 }
 0x629   : > { %v9840_v6 = vpop.eup %7825  ;;  %7095 = vmatpush3.bf16.msra.mxu1 %v2581_v2  ;;  %7096 = vmatprep.mubr.msk.bf16.mxu1 %vm8780_vm4, %v8779_v26 }
 0x62a   : > { %v2342_v8 = vmul.f32 1.442695, %v2327_v5  ;;  %v2387_v10 = vpack.c.bf16 %v9840_v6, %v9840_v6  ;;  %7106 = vmatprep.subr.bf16.mxu1 %v8779_v26 }
 0x62c   : > { %7833 = vpow2.f32 %v2342_v8  ;;  %7091 = vmatmul.mubr.msk.bf16.vlgmr.msra.gmra.mxu0 %vm2263_vm8, %v2387_v10 }
 0x62d   : > { %v9849_v9 = vpop.eup %7827  ;;  %7101 = vmatpush3.bf16.msra.mxu0 %v2627_v11  ;;  %7102 = vmatprep.mubr.msk.bf16.mxu0 %vm8780_vm4, %v8779_v26 }
 0x62e   : > { %v2388_v14 = vpack.c.bf16 %v9849_v9, %v9849_v9  ;;  %7112 = vmatprep.subr.bf16.mxu0 %v8779_v26 }
 0x630   : > { %7097 = vmatmul.mubr.msk.bf16.vlgmr.msra.gmra.mxu1 %vm2263_vm8, %v2388_v14 }
 0x631   : > { %v9858_v18 = vpop.eup %7829  ;;  %7107 = vmatpush3.bf16.msra.mxu1 %v2673_v15  ;;  %7108 = vmatprep.mubr.msk.bf16.mxu1 %vm8780_vm4, %v8779_v26 }
 0x632   : > { %v2389_v19 = vpack.c.bf16 %v9858_v18, %v9858_v18  ;;  %7118 = vmatprep.subr.bf16.mxu1 %v8779_v26 }
 0x634   : > { %7103 = vmatmul.mubr.msk.bf16.vlgmr.msra.gmra.mxu0 %vm2263_vm8, %v2389_v19  ;;  %v3132_v19 = vadd.s32 8, %v9719_v0 }
 0x635   : > { %v9867_v22 = vpop.eup %7831  ;;  %7113 = vmatpush3.bf16.msra.mxu0 %v2719_v4  ;;  %7114 = vmatprep.mubr.msk.bf16.mxu0 %vm8780_vm4, %v8779_v26 }
 0x636   : > { %v2390_v7 = vpack.c.bf16 %v9867_v22, %v9867_v22  ;;  %7124 = vmatprep.subr.bf16.mxu0 %v8779_v26  ;;  %vm3133_vm10 = vcmp.le.s32.totalorder %v3132_v19, %v9717_v63 }
 0x637   : > { %v3134_v35 = vsel %vm3133_vm10, 0.0, %v8788_v3 }
 0x638   : > { %7109 = vmatmul.mubr.msk.bf16.vlgmr.msra.gmra.mxu1 %vm2263_vm8, %v2390_v7 }
 0x639   : > { %v9876_v27 = vpop.eup %7833  ;;  %7119 = vmatpush3.bf16.xpose.msra.mxu1 %v2789_v1  ;;  %7120 = vmatprep.mubr.msk.bf16.mxu1 %vm8780_vm4, %v8779_v26 }
 0x63a   : > { %v2391_v29 = vpack.c.bf16 %v9876_v27, %v9876_v27  ;;  %7130 = vmatprep.subr.bf16.mxu1 %v8779_v26 }
 0x63c   : > { %7115 = vmatmul.mubr.msk.bf16.vlgmr.msra.gmra.mxu0 %vm2263_vm8, %v2391_v29 }
 0x63d   : > { %7125 = vmatpush3.bf16.xpose.msra.mxu0 %v2832_v30  ;;  %7126 = vmatprep.mubr.msk.bf16.mxu0 %vm8780_vm4, %v8779_v26 }
 0x63e   : > { %7136 = vmatprep.subr.bf16.mxu0 %v8779_v26 }
 0x640   : > { %7121 = vmatmul.mubr.msk.bf16.vlgmr.msra.gmra.mxu1 %vm1878_vm5, %v9642_v39  ;;  %v2774_v39 = vld [vmem:[#allocation2 + $0x2c] sm:$0xf] }
 0x641   : > { %7131 = vmatpush3.bf16.xpose.msra.mxu1 %v2875_v34  ;;  %7132 = vmatprep.mubr.msk.bf16.mxu1 %vm8780_vm4, %v8779_v26  ;;  %v3004_v41 = vsel %vm1878_vm5, %v2774_v39, 0 }
 0x642   : > { %7142 = vmatprep.subr.bf16.mxu1 %v8779_v26 }
 0x644   : > { %7127 = vmatmul.mubr.msk.bf16.vlgmr.msra.gmra.mxu0 %vm1878_vm5, %v9665_v45  ;;  %v2775_v45 = vld [vmem:[#allocation2 + $0x34] sm:$0xf] }
 0x645   : > { %7137 = vmatpush3.bf16.xpose.msra.mxu0 %v2918_v36  ;;  %7138 = vmatprep.mubr.msk.bf16.mxu0 %vm8780_vm4, %v8779_v26  ;;  %v3047_v23 = vsel %vm1878_vm5, %v2775_v45, 0 }
 0x646   : > { %7148 = vmatprep.subr.bf16.mxu0 %v8779_v26 }
 0x648   : > { %7133 = vmatmul.mubr.msk.bf16.vlgmr.msra.gmra.mxu1 %vm1878_vm5, %v9673_v48  ;;  %v2776_v48 = vld [vmem:[#allocation2 + $0x3c] sm:$0xf] }
 0x649   : > { %7143 = vmatpush3.bf16.xpose.msra.mxu1 %v2961_v40  ;;  %7144 = vmatprep.mubr.msk.bf16.mxu1 %vm8780_vm4, %v8779_v26  ;;  %v3090_v43 = vsel %vm1878_vm5, %v2776_v48, 0 }
 0x64a   : > { %7154 = vmatprep.subr.bf16.mxu1 %v8779_v26 }
 0x64c   : > { %7139 = vmatmul.mubr.msk.bf16.vlgmr.msra.gmra.mxu0 %vm1878_vm5, %v9677_v50 }
 0x64d   : > { %7149 = vmatpush3.bf16.xpose.msra.mxu0 %v3004_v41  ;;  %7150 = vmatprep.mubr.msk.bf16.mxu0 %vm8780_vm4, %v8779_v26 }
 0x64e   : > { %7160 = vmatprep.subr.bf16.mxu0 %v8779_v26 }
 0x650   : > { %7145 = vmatmul.mubr.msk.bf16.vlgmr.msra.gmra.mxu1 %vm1878_vm5, %v9689_v54 }
 0x651   : > { %7155 = vmatpush3.bf16.xpose.msra.mxu1 %v3047_v23  ;;  %7156 = vmatprep.mubr.msk.bf16.mxu1 %vm8780_vm4, %v8779_v26 }
 0x652   : > { %7166 = vmatprep.subr.bf16.mxu1 %v8779_v26 }
 0x654   : > { %7151 = vmatmul.mubr.msk.bf16.vlgmr.msra.gmra.mxu0 %vm1878_vm5, %v9697_v57 }
 0x655   : > { %7161 = vmatpush3.bf16.xpose.msra.mxu0 %v3090_v43  ;;  %7162 = vmatprep.mubr.msk.bf16.mxu0 %vm8780_vm4, %v8779_v26 }
 0x656   : > { %7172 = vmatprep.subr.bf16.mxu0 %v8779_v26 }
 0x658   : > { %7157 = vmatmul.mubr.msk.bf16.vlgmr.msra.gmra.mxu1 %vm1878_vm5, %v9704_v58 }
 0x659   : > { %7168 = vmatprep.mubr.msk.bf16.mxu1 %vm8780_vm4, %v8779_v26 }
 0x65c   : > { %7163 = vmatmul.mubr.msk.bf16.vlgmr.msra.gmra.mxu0 %vm1878_vm5, %v9710_v59 }
 0x65d   : > { %7174 = vmatprep.mubr.msk.bf16.mxu0 %vm8780_vm4, %v8779_v26 }
 0x672   : > { %v9932_v50 = vpop.f32.mrf.mxu1 }
 0x674   : > { %v7074_v54 = vpop.f32.mrf.mxu1 }
 0x676   : > { %v2436_v57 = vpop.f32.mrf.mxu1 }
 0x678   : > { %v7075_v31 = vpop.f32.mrf.mxu1 }
 0x6e4   : > { %v9934_v46 = vpop.f32.mrf.mxu0 }
 0x6e6   : > { %v7080_v51 = vpop.f32.mrf.mxu0 }
 0x6e8   : > { %v2482_v38 = vpop.f32.mrf.mxu0  ;;  %v9936_v52 = vpop.f32.mrf.mxu1 }
 0x6ea   : > { %v7081_v58 = vpop.f32.mrf.mxu0  ;;  %v7086_v53 = vpop.f32.mrf.mxu1 }
 0x6ec   : > { %v2528_v47 = vpop.f32.mrf.mxu1  ;;  %v9938_v56 = vpop.f32.mrf.mxu0 }
 0x6ee   : > { %v7087_v59 = vpop.f32.mrf.mxu1  ;;  %v7092_v62 = vpop.f32.mrf.mxu0 }
 0x6f0   : > { %v2574_v2 = vpop.f32.mrf.mxu0  ;;  %v9940_v60 = vpop.f32.mrf.mxu1 }
 0x6f2   : > { %v7093_v5 = vpop.f32.mrf.mxu0  ;;  %v7098_v8 = vpop.f32.mrf.mxu1 }
 0x6f4   : > { %v2620_v10 = vpop.f32.mrf.mxu1  ;;  %v9942_v11 = vpop.f32.mrf.mxu0 }
 0x6f6   : > { %v7099_v12 = vpop.f32.mrf.mxu1  ;;  %v7104_v14 = vpop.f32.mrf.mxu0 }
 0x6f8   : > { %v2666_v15 = vpop.f32.mrf.mxu0  ;;  %v9944_v17 = vpop.f32.mrf.mxu1 }
 0x6fa   : > { %v7105_v4 = vpop.f32.mrf.mxu0  ;;  %v7110_v21 = vpop.f32.mrf.mxu1 }
 0x6fc   : > { %v2712_v7 = vpop.f32.mrf.mxu1  ;;  %v9947_v1 = vpop.f32.mrf.mxu0 }
 0x6fe   : > { %v7111_v29 = vpop.f32.mrf.mxu1  ;;  %v7116_v30 = vpop.f32.mrf.mxu0 }
 0x700   : > { %v2758_v32 = vpop.f32.mrf.mxu0  ;;  %v2825_v34 = vpop.f32.mrf.mxu1 }
 0x701   : > { %v2826_v36 = vadd.f32 %v2825_v34, %v2786_v25 }
 0x702   : > { %v7117_v16 = vpop.f32.mrf.mxu0  ;;  %v7122_v40 = vpop.f32.mrf.mxu1 }
 0x703   : > { %v9951_v39 = vadd.f32 %v3134_v35, %v2826_v36 }
 0x704   : > { %v2828_v0 = vpop.f32.mrf.mxu1  ;;  %v2868_v41 = vpop.f32.mrf.mxu0 }
 0x705   : > { %v2869_v45 = vadd.f32 %v2868_v41, %v2786_v25  ;;  %v3143_v23 = vsel %vm2263_vm8, %v9951_v39, -inf }
 0x706   : > { %3144 = vmax.xlane.f32.xlu1 %v3143_v23  ;;  %v7123_v48 = vpop.f32.mrf.mxu1  ;;  %v7128_v63 = vpop.f32.mrf.mxu0 }
 0x707   : > { %v9955_v43 = vadd.f32 %v3134_v35, %v2869_v45 }
 0x708   : > { %v2871_v54 = vpop.f32.mrf.mxu0  ;;  %v2911_v57 = vpop.f32.mrf.mxu1 }
 0x709   : > { %v2912_v31 = vadd.f32 %v2911_v57, %v2786_v25  ;;  %v3146_v3 = vsel %vm2263_vm8, %v9955_v43, -inf }
 0x70a   : > { %v7134_v51 = vpop.f32.mrf.mxu1  ;;  %3147 = vmax.xlane.f32.xlu1 %v3146_v3  ;;  %v7129_v38 = vpop.f32.mrf.mxu0 }
 0x70b   : > { %v9959_v58 = vadd.f32 %v3134_v35, %v2912_v31 }
 0x70c   : > { %v2914_v53 = vpop.f32.mrf.mxu1  ;;  %v2954_v47 = vpop.f32.mrf.mxu0 }
 0x70d   : > { %v2955_v59 = vadd.f32 %v2954_v47, %v2786_v25  ;;  %v3149_v62 = vsel %vm2263_vm8, %v9959_v58, -inf }
 0x70e   : > { %v7135_v2 = vpop.f32.mrf.mxu1  ;;  %3150 = vmax.xlane.f32.xlu1 %v3149_v62  ;;  %v7140_v5 = vpop.f32.mrf.mxu0 }
 0x70f   : > { %v9963_v8 = vadd.f32 %v3134_v35, %v2955_v59  ;;  %v2370_v59 = vsel %vm2263_vm8, %v9867_v22, 0.0  ;;  %v2777_v5 = vld [vmem:[#allocation3 + $0x4] sm:$0xf] }
 0x710   : > { %v2957_v10 = vpop.f32.mrf.mxu0  ;;  %v2997_v12 = vpop.f32.mrf.mxu1 }
 0x711   : > { %v2998_v14 = vadd.f32 %v2997_v12, %v2786_v25  ;;  %v3152_v15 = vsel %vm2263_vm8, %v9963_v8, -inf  ;;  %v2355_v10 = vsel %vm2263_vm8, %v9817_v44, 0.0  ;;  %v2778_v12 = vld [vmem:[#allocation3 + $0xc] sm:$0xf]  ;;  %v2361_v44 = vsel %vm2263_vm8, %v9840_v6, 0.0 }
 0x712   : > { %v7146_v19 = vpop.f32.mrf.mxu1  ;;  %3153 = vmax.xlane.f32.xlu1 %v3152_v15  ;;  %v7141_v4 = vpop.f32.mrf.mxu0  ;;  %v3329_v22 = vsel %vm2395_vm9, %v2778_v12, 0  ;;  %v2367_v15 = vsel %vm2263_vm8, %v9858_v18, 0.0 }
 0x713   : > { %v9967_v21 = vadd.f32 %v3134_v35, %v2998_v14  ;;  %v2358_v14 = vsel %vm2263_vm8, %v9827_v55, 0.0  ;;  %7173 = vmatpush3.bf16.msra.mxu0 %v3329_v22  ;;  %v2296_v19 = vsub.f32 -1e+30, %v9780_v13  ;;  %v2297_v55 = vsub.f32 -1e+30, %v9797_v24 }
 0x714   : > { %v3000_v7 = vpop.f32.mrf.mxu1  ;;  %v3040_v29 = vpop.f32.mrf.mxu0  ;;  %7184 = vmatprep.subr.bf16.mxu0 %v8779_v26 }
 0x715   : > { %v3041_v30 = vadd.f32 %v3040_v29, %v2786_v25  ;;  %v3155_v32 = vsel %vm2263_vm8, %v9967_v21, -inf  ;;  %v2304_v4 = vmul.f32 1.442695, %v2296_v19  ;;  %v2298_v7 = vsub.f32 -1e+30, %v9801_v28 }
 0x716   : > { %v7147_v34 = vpop.f32.mrf.mxu1  ;;  %3156 = vmax.xlane.f32.xlu1 %v3155_v32  ;;  %v7152_v36 = vpop.f32.mrf.mxu0  ;;  %v2306_v29 = vmul.f32 1.442695, %v2297_v55 }
 0x717   : > { %v9971_v16 = vadd.f32 %v3134_v35, %v3041_v30  ;;  %7835 = vpow2.f32 %v2304_v4  ;;  %v2308_v32 = vmul.f32 1.442695, %v2298_v7  ;;  %v2779_v4 = vld [vmem:[#allocation3 + $0x14] sm:$0xf] }
 0x718   : > { %v3043_v40 = vpop.f32.mrf.mxu0  ;;  %v3083_v0 = vpop.f32.mrf.mxu1  ;;  %7837 = vpow2.f32 %v2306_v29  ;;  %v2303_v29 = vsub.f32 -1e+30, %v9831_v61 }
 0x719   : > { %v3084_v41 = vadd.f32 %v3083_v0, %v2786_v25  ;;  %v3158_v45 = vsel %vm2263_vm8, %v9971_v16, -inf  ;;  %7839 = vpow2.f32 %v2308_v32 }
 0x71a   : > { %v7158_v23 = vpop.f32.mrf.mxu1  ;;  %3159 = vmax.xlane.f32.xlu1 %v3158_v45  ;;  %v7153_v48 = vpop.f32.mrf.mxu0 }
 0x71b   : > { %v9975_v63 = vadd.f32 %v3134_v35, %v3084_v41 }
 0x71c   : > { %v3086_v54 = vpop.f32.mrf.mxu1  ;;  %v3126_v57 = vpop.f32.mrf.mxu0 }
 0x71d   : > { %v3127_v31 = vadd.f32 %v3126_v57, %v2786_v25  ;;  %v3161_v3 = vsel %vm2263_vm8, %v9975_v63, -inf  ;;  %v3283_v25 = vsel %vm2395_vm9, %v2777_v5, 0  ;;  %v2300_v57 = vsub.f32 -1e+30, %v9809_v37 }
 0x71e   : > { %3162 = vmax.xlane.f32.xlu0 %v3161_v3  ;;  %v7159_v51 = vpop.f32.mrf.mxu1  ;;  %v7164_v38 = vpop.f32.mrf.mxu0  ;;  %7167 = vmatpush3.bf16.msra.mxu1 %v3283_v25  ;;  %v2301_v3 = vsub.f32 -1e+30, %v9813_v42  ;;  %v2302_v25 = vsub.f32 -1e+30, %v9819_v49 }
 0x71f   : > { %v9979_v53 = vadd.f32 %v3134_v35, %v3127_v31  ;;  %v2373_v35 = vsel %vm2263_vm8, %v9876_v27, 0.0  ;;  %7178 = vmatprep.subr.bf16.mxu1 %v8779_v26  ;;  %v2364_v27 = vsel %vm2263_vm8, %v9849_v9, 0.0  ;;  %v2299_v9 = vsub.f32 -1e+30, %v9805_v33 }
 0x720   : > { %v3129_v47 = vpop.f32.mrf.mxu0  ;;  %v2314_v5 = vmul.f32 1.442695, %v2301_v3 }
 0x721   : > { %v3164_v62 = vsel %vm2263_vm8, %v9979_v53, -inf  ;;  %v2310_v45 = vmul.f32 1.442695, %v2299_v9 }
 0x722   : > { %2371 = vadd.xlane.f32.xlu0 %v2370_v59  ;;  %3165 = vmax.xlane.f32.xlu1 %v3164_v62  ;;  %v7165_v2 = vpop.f32.mrf.mxu0 }
 0x724   : > { %v7836_v47 = vpop.eup %7835 }
 0x725   : > { %v10020_v12 = vmul.f32 0.0, %v7836_v47 }
 0x726   : > { %2356 = vadd.xlane.f32.xlu1 %v2355_v10  ;;  %2374 = vadd.xlane.f32.xlu0 %v2373_v35 }
 0x727   : > { %v2761_v19 = vadd.f32 %v9932_v50, %v10020_v12 }
 0x72a   : > { %2359 = vadd.xlane.f32.xlu1 %v2358_v14 }
 0x72e   : > { %2362 = vadd.xlane.f32.xlu1 %v2361_v44 }
 0x732   : > { %2365 = vadd.xlane.f32.xlu1 %v2364_v27  ;;  %v2316_v27 = vmul.f32 1.442695, %v2302_v25 }
 0x736   : > { %2368 = vadd.xlane.f32.xlu1 %v2367_v15 }
 0x78f   : > { %v3145_v30 = vpop.xlane.xlu1 %3144 }
 0x790   : > { %v3167_v6 = vmax.f32 %v9780_v13, %v3145_v30 }
 0x792   : > { %v3175_v34 = vsub.f32 %v9780_v13, %v3167_v6  ;;  %v3199_v18 = vsub.f32 %v9951_v39, %v3167_v6 }
 0x793   : > { %v3148_v36 = vpop.xlane.xlu1 %3147 }
 0x794   : > { %v3183_v40 = vmul.f32 1.442695, %v3175_v34  ;;  %v3207_v0 = vmul.f32 1.442695, %v3199_v18  ;;  %v3168_v41 = vmax.f32 %v9797_v24, %v3148_v36 }
 0x796   : > { %7841 = vpow2.f32 %v3183_v40  ;;  %v3176_v23 = vsub.f32 %v9797_v24, %v3168_v41  ;;  %v3200_v48 = vsub.f32 %v9955_v43, %v3168_v41  ;;  %v2312_v43 = vmul.f32 1.442695, %v2300_v57  ;;  %v2780_v41 = vld [vmem:[#allocation3 + $0x1c] sm:$0xf] }
 0x797   : > { %7843 = vpow2.f32 %v3207_v0  ;;  %v3151_v54 = vpop.xlane.xlu1 %3150  ;;  %v3421_v3 = vsel %vm2395_vm9, %v2780_v41, 0  ;;  %v2784_v41 = vld [vmem:[#allocation3 + $0x3c] sm:$0xf] }
 0x798   : > { %v3185_v13 = vmul.f32 1.442695, %v3176_v23  ;;  %v3209_v31 = vmul.f32 1.442695, %v3200_v48  ;;  %v3169_v39 = vmax.f32 %v9801_v28, %v3151_v54  ;;  %7845 = vpow2.f32 %v2310_v45 }
 0x799   : > { %v2318_v23 = vmul.f32 1.442695, %v2303_v29 }
 0x79a   : > { %7847 = vpow2.f32 %v3185_v13  ;;  %v3177_v51 = vsub.f32 %v9801_v28, %v3169_v39  ;;  %v3201_v38 = vsub.f32 %v9959_v58, %v3169_v39  ;;  %v7838_v58 = vpop.eup %7837 }
 0x79b   : > { %7849 = vpow2.f32 %v3209_v31  ;;  %v3154_v24 = vpop.xlane.xlu1 %3153  ;;  %v7840_v15 = vpop.eup %7839  ;;  %v10029_v7 = vmul.f32 0.0, %v7838_v58 }
 0x79c   : > { %v3187_v59 = vmul.f32 1.442695, %v3177_v51  ;;  %v3211_v62 = vmul.f32 1.442695, %v3201_v38  ;;  %v3170_v2 = vmax.f32 %v9805_v33, %v3154_v24  ;;  %v2781_v24 = vld [vmem:[#allocation3 + $0x24] sm:$0xf] }
 0x79d   : > { %v2762_v36 = vadd.f32 %v9934_v46, %v10029_v7  ;;  %v10054_v46 = vmul.f32 0.0, %v7840_v15 }
 0x79e   : > { %7851 = vpow2.f32 %v3187_v59  ;;  %v3178_v10 = vsub.f32 %v9805_v33, %v3170_v2  ;;  %v3202_v35 = vsub.f32 %v9963_v8, %v3170_v2 }
 0x79f   : > { %7853 = vpow2.f32 %v3211_v62  ;;  %v3157_v28 = vpop.xlane.xlu1 %3156 }
 0x7a0   : > { %7855 = vpow2.f32 %v2312_v43  ;;  %v3189_v22 = vmul.f32 1.442695, %v3178_v10  ;;  %v3213_v14 = vmul.f32 1.442695, %v3202_v35  ;;  %v3171_v44 = vmax.f32 %v9809_v37, %v3157_v28 }
 0x7a1   : > { %7857 = vpow2.f32 %v2314_v5  ;;  %v2763_v43 = vadd.f32 %v9936_v52, %v10054_v46  ;;  %v3467_v35 = vsel %vm2395_vm9, %v2781_v24, 0 }
 0x7a2   : > { %7859 = vpow2.f32 %v3189_v22  ;;  %v3179_v33 = vsub.f32 %v9809_v37, %v3171_v44  ;;  %v3203_v8 = vsub.f32 %v9967_v21, %v3171_v44  ;;  %v3375_v21 = vsel %vm2395_vm9, %v2779_v4, 0  ;;  %v2782_v44 = vld [vmem:[#allocation3 + $0x2c] sm:$0xf] }
 0x7a3   : > { %v10027_v55 = vpop.eup %7841  ;;  %7861 = vpow2.f32 %v3213_v14  ;;  %v3160_v30 = vpop.xlane.xlu1 %3159  ;;  %v3513_v29 = vsel %vm2395_vm9, %v2782_v44, 0 }
 0x7a4   : > { %v10032_v6 = vpop.eup %7843  ;;  %v3191_v32 = vmul.f32 1.442695, %v3179_v33  ;;  %v3215_v9 = vmul.f32 1.442695, %v3203_v8  ;;  %v3172_v50 = vmax.f32 %v9813_v42, %v3160_v30  ;;  %v10036_v34 = vmul.f32 %v10027_v55, %v2761_v19 }
 0x7a5   : > { %7863 = vpow2.f32 %v2316_v27  ;;  %v3271_v37 = vpack.c.bf16 %v10032_v6, %v10032_v6  ;;  %v7846_v18 = vpop.eup %7845 }
 0x7a6   : > { %7865 = vpow2.f32 %v3191_v32  ;;  %v3180_v40 = vsub.f32 %v9813_v42, %v3172_v50  ;;  %v3204_v0 = vsub.f32 %v9971_v16, %v3172_v50  ;;  %v10065_v59 = vmul.f32 0.0, %v7846_v18 }
 0x7a7   : > { %v10045_v45 = vpop.eup %7847  ;;  %7867 = vpow2.f32 %v3215_v9  ;;  %7169 = vmatmul.mubr.msk.bf16.vlgmr.msra.gmra.mxu1 %vm2263_vm8, %v3271_v37  ;;  %v3163_v48 = vpop.xlane.xlu0 %3162  ;;  %v2783_v9 = vld [vmem:[#allocation3 + $0x34] sm:$0xf] }
 0x7a8   : > { %v7850_v54 = vpop.eup %7849  ;;  %v3193_v57 = vmul.f32 1.442695, %v3180_v40  ;;  %v3217_v13 = vmul.f32 1.442695, %v3204_v0  ;;  %v3173_v31 = vmax.f32 %v9819_v49, %v3163_v48  ;;  %7179 = vmatpush3.bf16.msra.mxu1 %v3375_v21  ;;  %7180 = vmatprep.mubr.msk.bf16.mxu1 %vm8780_vm4, %v8779_v26  ;;  %v10052_v42 = vmul.f32 %v10045_v45, %v2762_v36 }
 0x7a9   : > { %v3234_v16 = vsel %vm2263_vm8, %v7850_v54, 0.0  ;;  %v3272_v39 = vpack.c.bf16 %v7850_v54, %v7850_v54  ;;  %7190 = vmatprep.subr.bf16.mxu1 %v8779_v26  ;;  %v2764_v15 = vadd.f32 %v9938_v56, %v10065_v59  ;;  %v3559_v40 = vsel %vm2395_vm9, %v2783_v9, 0 }
 0x7aa   : > { %7869 = vpow2.f32 %v3193_v57  ;;  %v3181_v51 = vsub.f32 %v9819_v49, %v3173_v31  ;;  %v3205_v38 = vsub.f32 %v9975_v63, %v3173_v31  ;;  %3235 = vadd.xlane.f32.xlu1 %v3234_v16  ;;  %v3605_v16 = vsel %vm2395_vm9, %v2784_v41, 0 }
 0x7ab   : > { %v10061_v47 = vpop.eup %7851  ;;  %7871 = vpow2.f32 %v3217_v13  ;;  %7175 = vmatmul.mubr.msk.bf16.vlgmr.msra.gmra.mxu0 %vm2263_vm8, %v3272_v39  ;;  %v3166_v62 = vpop.xlane.xlu1 %3165 }
 0x7ac   : > { %v7854_v2 = vpop.eup %7853  ;;  %7873 = vpow2.f32 %v2318_v23  ;;  %v3195_v5 = vmul.f32 1.442695, %v3181_v51  ;;  %v3219_v25 = vmul.f32 1.442695, %v3205_v38  ;;  %7185 = vmatpush3.bf16.msra.mxu0 %v3421_v3  ;;  %v3174_v49 = vmax.f32 %v9831_v61, %v3166_v62  ;;  %7186 = vmatprep.mubr.msk.bf16.mxu0 %vm8780_vm4, %v8779_v26  ;;  %v2372_v44 = vpop.xlane.xlu0 %2371 }
 0x7ad   : > { %v7856_v63 = vpop.eup %7855  ;;  %v3237_v10 = vsel %vm2263_vm8, %v7854_v2, 0.0  ;;  %v3273_v52 = vpack.c.bf16 %v7854_v2, %v7854_v2  ;;  %7196 = vmatprep.subr.bf16.mxu0 %v8779_v26  ;;  %v10075_v28 = vmul.f32 %v10061_v47, %v2763_v43 }
 0x7ae   : > { %v7858_v58 = vpop.eup %7857  ;;  %7875 = vpow2.f32 %v3195_v5  ;;  %v3182_v22 = vsub.f32 %v9831_v61, %v3174_v49  ;;  %v3206_v14 = vsub.f32 %v9979_v53, %v3174_v49  ;;  %3238 = vadd.xlane.f32.xlu1 %v3237_v10  ;;  %v10084_v33 = vmul.f32 0.0, %v7856_v63 }
 0x7af   : > { %v10079_v27 = vpop.eup %7859  ;;  %7877 = vpow2.f32 %v3219_v25  ;;  %7181 = vmatmul.mubr.msk.bf16.vlgmr.msra.gmra.mxu1 %vm2263_vm8, %v3273_v52  ;;  %v10099_v21 = vmul.f32 0.0, %v7858_v58  ;;  %v2352_v49 = vsel %vm2263_vm8, %v9788_v20, 0.0  ;;  %v2357_v52 = vpop.xlane.xlu1 %2356 }
 0x7b0   : > { %v7862_v19 = vpop.eup %7861  ;;  %v3197_v8 = vmul.f32 1.442695, %v3182_v22  ;;  %v3221_v4 = vmul.f32 1.442695, %v3206_v14  ;;  %7191 = vmatpush3.bf16.msra.mxu1 %v3467_v35  ;;  %7192 = vmatprep.mubr.msk.bf16.mxu1 %vm8780_vm4, %v8779_v26  ;;  %v10092_v56 = vmul.f32 %v10079_v27, %v2764_v15  ;;  %v2765_v32 = vadd.f32 %v9940_v60, %v10084_v33 }
 0x7b1   : > { %v3240_v61 = vsel %vm2263_vm8, %v7862_v19, 0.0  ;;  %v3274_v53 = vpack.c.bf16 %v7862_v19, %v7862_v19  ;;  %7202 = vmatprep.subr.bf16.mxu1 %v8779_v26  ;;  %v2766_v0 = vadd.f32 %v9942_v11, %v10099_v21  ;;  %v2375_v19 = vpop.xlane.xlu0 %2374 }
 0x7b2   : > { %v7864_v30 = vpop.eup %7863  ;;  %7879 = vpow2.f32 %v3197_v8  ;;  %3241 = vadd.xlane.f32.xlu1 %v3240_v61 }
 0x7b3   : > { %v10096_v50 = vpop.eup %7865  ;;  %7881 = vpow2.f32 %v3221_v4  ;;  %7187 = vmatmul.mubr.msk.bf16.vlgmr.msra.gmra.mxu0 %vm2263_vm8, %v3274_v53  ;;  %v10114_v54 = vmul.f32 0.0, %v7864_v30  ;;  %v2360_v35 = vpop.xlane.xlu1 %2359 }
 0x7b4   : > { %v7868_v37 = vpop.eup %7867  ;;  %7197 = vmatpush3.bf16.msra.mxu0 %v3513_v29  ;;  %7198 = vmatprep.mubr.msk.bf16.mxu0 %vm8780_vm4, %v8779_v26  ;;  %v10104_v18 = vmul.f32 %v10096_v50, %v2765_v32 }
 0x7b5   : > { %v3243_v60 = vsel %vm2263_vm8, %v7868_v37, 0.0  ;;  %v3275_v36 = vpack.c.bf16 %v7868_v37, %v7868_v37  ;;  %7208 = vmatprep.subr.bf16.mxu0 %v8779_v26  ;;  %v2767_v39 = vadd.f32 %v9944_v17, %v10114_v54  ;;  %v2377_v37 = vadd.f32 %v2357_v52, %v10029_v7 }
 0x7b6   : > { %3244 = vadd.xlane.f32.xlu0 %v3243_v60 }
 0x7b7   : > { %v10111_v23 = vpop.eup %7869  ;;  %7193 = vmatmul.mubr.msk.bf16.vlgmr.msra.gmra.mxu1 %vm2263_vm8, %v3275_v36  ;;  %v2363_v58 = vpop.xlane.xlu1 %2362  ;;  %v2378_v36 = vadd.f32 %v2360_v35, %v10054_v46 }
 0x7b8   : > { %v7872_v48 = vpop.eup %7871  ;;  %7203 = vmatpush3.bf16.msra.mxu1 %v3559_v40  ;;  %7204 = vmatprep.mubr.msk.bf16.mxu1 %vm8780_vm4, %v8779_v26  ;;  %v10119_v57 = vmul.f32 %v10111_v23, %v2766_v0  ;;  %v3224_v40 = vmul.f32 %v10045_v45, %v2377_v37 }
 0x7b9   : > { %v7874_v13 = vpop.eup %7873  ;;  %v3246_v31 = vsel %vm2263_vm8, %v7872_v48, 0.0  ;;  %v3276_v11 = vpack.c.bf16 %v7872_v48, %v7872_v48  ;;  %7214 = vmatprep.subr.bf16.mxu1 %v8779_v26  ;;  %v2379_v48 = vadd.f32 %v2363_v58, %v10065_v59 }
 0x7ba   : > { %3247 = vadd.xlane.f32.xlu1 %v3246_v31  ;;  %v10129_v38 = vmul.f32 0.0, %v7874_v13  ;;  %v3225_v13 = vmul.f32 %v10061_v47, %v2378_v36  ;;  %v2382_v47 = vadd.f32 %v2372_v44, %v10114_v54 }
 0x7bb   : > { %v10126_v3 = vpop.eup %7875  ;;  %7199 = vmatmul.mubr.msk.bf16.vlgmr.msra.gmra.mxu0 %vm2263_vm8, %v3276_v11  ;;  %v2366_v22 = vpop.xlane.xlu1 %2365 }
 0x7bc   : > { %v7878_v51 = vpop.eup %7877  ;;  %7209 = vmatpush3.bf16.msra.mxu0 %v3605_v16  ;;  %7210 = vmatprep.mubr.msk.bf16.mxu0 %vm8780_vm4, %v8779_v26  ;;  %v10134_v24 = vmul.f32 %v10126_v3, %v2767_v39  ;;  %v2768_v17 = vadd.f32 %v9947_v1, %v10129_v38  ;;  %v3231_v1 = vsel %vm2263_vm8, %v10032_v6, 0.0 }
 0x7bd   : > { %v3249_v43 = vsel %vm2263_vm8, %v7878_v51, 0.0  ;;  %v3277_v62 = vpack.c.bf16 %v7878_v51, %v7878_v51  ;;  %7222 = vmatprep.subr.bf16.mxu0 %v8779_v26 }
 0x7be   : > { %3250 = vadd.xlane.f32.xlu0 %v3249_v43 }
 0x7bf   : > { %v10140_v2 = vpop.eup %7879  ;;  %7205 = vmatmul.mubr.msk.bf16.vlgmr.msra.gmra.mxu1 %vm2263_vm8, %v3277_v62  ;;  %v2369_v14 = vpop.xlane.xlu1 %2368 }
 0x7c0   : > { %v7882_v5 = vpop.eup %7881  ;;  %v10144_v25 = vmul.f32 %v10140_v2, %v2768_v17  ;;  %7218 = vmatprep.mubr.msk.bf16.mxu1 %vm8780_vm4, %v8779_v26  ;;  %v2381_v46 = vadd.f32 %v2369_v14, %v10099_v21 }
 0x7c1   : > { %v3252_v63 = vsel %vm2263_vm8, %v7882_v5, 0.0  ;;  %v3278_v10 = vpack.c.bf16 %v7882_v5, %v7882_v5 }
 0x7c2   : > { %2353 = vadd.xlane.f32.xlu0 %v2352_v49  ;;  %3253 = vadd.xlane.f32.xlu1 %v3252_v63  ;;  %v3228_v59 = vmul.f32 %v10111_v23, %v2381_v46  ;;  %v3229_v49 = vmul.f32 %v10126_v3, %v2382_v47 }
 0x7c3   : > { %7211 = vmatmul.mubr.msk.bf16.vlgmr.msra.gmra.mxu0 %vm2263_vm8, %v3278_v10 }
 0x7c4   : > { %7226 = vmatprep.mubr.msk.bf16.mxu0 %vm8780_vm4, %v8779_v26 }
 0x7c6   : > { %3232 = vadd.xlane.f32.xlu1 %v3231_v1 }
 0x833   : > { %v3236_v20 = vpop.xlane.xlu1 %3235 }
 0x834   : > { %v3256_v0 = vadd.f32 %v3236_v20, %v3224_v40 }
 0x836   : > { %v3656_v31 = vmax.f32 %v3256_v0, 1e-30 }
 0x837   : > { %v3239_v15 = vpop.xlane.xlu1 %3238 }
 0x838   : > { %v3257_v11 = vadd.f32 %v3239_v15, %v3225_v13 }
 0x83a   : > { %v3657_v7 = vmax.f32 %v3257_v11, 1e-30 }
 0x83b   : > { %v3242_v8 = vpop.xlane.xlu1 %3241 }
 0x83f   : > { %v3245_v4 = vpop.xlane.xlu0 %3244 }
 0x843   : > { %v3248_v61 = vpop.xlane.xlu1 %3247 }
 0x847   : > { %v3251_v53 = vpop.xlane.xlu0 %3250 }
 0x848   : > { %v3261_v1 = vadd.f32 %v3251_v53, %v3229_v49 }
 0x84a   : > { %v3661_v20 = vmax.f32 %v3261_v1, 1e-30 }
 0x84b   : > { %v2354_v29 = vpop.xlane.xlu0 %2353  ;;  %v3254_v30 = vpop.xlane.xlu1 %3253 }
 0x84c   : > { %v2376_v32 = vadd.f32 %v2354_v29, %v10020_v12  ;;  %v2380_v12 = vadd.f32 %v2366_v22, %v10084_v33  ;;  %v3260_v33 = vadd.f32 %v3248_v61, %v3228_v59 }
 0x84e   : > { %v3223_v6 = vmul.f32 %v10027_v55, %v2376_v32  ;;  %v3226_v55 = vmul.f32 %v10079_v27, %v2379_v48  ;;  %v3227_v45 = vmul.f32 %v10096_v50, %v2380_v12  ;;  %v2383_v50 = vadd.f32 %v2375_v19, %v10129_v38 }
 0x84f   : > { %v3233_v9 = vpop.xlane.xlu1 %3232  ;;  %v3660_v23 = vmax.f32 %v3260_v33, 1e-30 }
 0x850   : > { %v3255_v60 = vadd.f32 %v3233_v9, %v3223_v6  ;;  %v3258_v16 = vadd.f32 %v3242_v8, %v3226_v55  ;;  %v3259_v51 = vadd.f32 %v3245_v4, %v3227_v45 }
 0x852   : > { %v3655_v41 = vmax.f32 %v3255_v60, 1e-30  ;;  %v3658_v39 = vmax.f32 %v3258_v16, 1e-30  ;;  %v3659_v62 = vmax.f32 %v3259_v51, 1e-30 }
 0x853   : > { %v7808_v60 = vld [vmem:[%s11170_s30] sm:$0xff]  }
 0x854   : > { %7883 = vrcp.f32 %v3655_v41 }
 0x855   : > { %7885 = vrcp.f32 %v3656_v31 }
 0x856   : > { %7887 = vrcp.f32 %v3657_v7 }
 0x857   : > { %7889 = vrcp.f32 %v3658_v39 }
 0x858   : > { %7891 = vrcp.f32 %v3659_v62 }
 0x859   : > { %7893 = vrcp.f32 %v3660_v23 }
 0x85a   : > { %7895 = vrcp.f32 %v3661_v20 }
 0x861   : > { %v7884_v17 = vpop.eup %7883 }
 0x862   : > { %v7886_v52 = vpop.eup %7885 }
 0x863   : > { %v7888_v15 = vpop.eup %7887 }
 0x867   : > { %v3319_v43 = vpop.f32.mrf.mxu1 }
 0x868   : > { %v3647_v27 = vadd.f32 %v3319_v43, %v10036_v34  ;;  %v3230_v34 = vmul.f32 %v10140_v2, %v2383_v50  ;;  %v7807_v2 = vld [vmem:[%s11170_s30 + $0x8] sm:$0xff]  }
 0x869   : > { %v7170_v5 = vpop.f32.mrf.mxu1  ;;  %7215 = vmatpush3.bf16.msra.mxu1 %v7807_v2 }
 0x86a   : > { %v10171_v21 = vmul.f32 %v7884_v17, %v3647_v27  ;;  %v3262_v44 = vadd.f32 %v3254_v30, %v3230_v34  ;;  %v7890_v30 = vpop.eup %7889  ;;  %7216 = vmatprep.subr.bf16.mxu1 %v8779_v26 }
 0x86b   : > { %v3322_v63 = vpop.f32.mrf.mxu1  ;;  %v3365_v10 = vpop.f32.mrf.mxu0 }
 0x86c   : > { %v3648_v54 = vadd.f32 %v3365_v10, %v10052_v42  ;;  %v3662_v53 = vmax.f32 %v3262_v44, 1e-30 }
 0x86d   : > { %v7171_v35 = vpop.f32.mrf.mxu1  ;;  %v7176_v58 = vpop.f32.mrf.mxu0  ;;  %7217 = vmatpush3.bf16.msra.mxu1 %v7808_v60 }
 0x86e   : > { %v3672_v22 = vmul.f32 %v7886_v52, %v3648_v54  ;;  %7897 = vrcp.f32 %v3662_v53  ;;  %7230 = vmatprep.subr.bf16.mxu1 %v8779_v26 }
 0x86f   : > { %v3368_v14 = vpop.f32.mrf.mxu0  ;;  %v3411_v3 = vpop.f32.mrf.mxu1 }
 0x870   : > { %v3649_v38 = vadd.f32 %v3411_v3, %v10075_v28  ;;  %3680 = vrot.lane.b32.xlu0 %v3672_v22, %s11025_s7  ;;  %s11028_s7 = smov 12   ;;  %v6750_v3 = vld [vmem:[#allocation18] ss:$0 sm:$0xff] }
 0x871   : > { %v7177_v19 = vpop.f32.mrf.mxu0  ;;  %v7182_v42 = vpop.f32.mrf.mxu1 }
 0x872   : > { %v3673_v8 = vmul.f32 %v7888_v15, %v3649_v38  ;;  %v7989_v15 = vld [vmem:[%s9353_s26] sm:$0xff]  ;;  %s11171_s26 = smov 112  }
 0x873   : > { %v3414_v4 = vpop.f32.mrf.mxu1  ;;  %v3457_v61 = vpop.f32.mrf.mxu0 }
 0x874   : > { %v3650_v29 = vadd.f32 %v3457_v61, %v10092_v56  ;;  %3684 = vrot.lane.b32.xlu1 %v3673_v8, %s11027_s8  ;;  %v7892_v56 = vpop.eup %7891  ;;  %s11029_s8 = smov 16  }
 0x875   : > { %v7183_v28 = vpop.f32.mrf.mxu1  ;;  %v7188_v32 = vpop.f32.mrf.mxu0 }
 0x876   : > { %v3674_v6 = vmul.f32 %v7890_v30, %v3650_v29  ;;  %v7894_v11 = vpop.eup %7893  ;;  %v7809_v28 = vld [vmem:[#allocation23 + $0x8] sm:$0xff]   ;;  %v7810_v32 = vld [vmem:[#allocation23] sm:$0xff]  }
 0x877   : > { %v3460_v9 = vpop.f32.mrf.mxu0  ;;  %v3503_v37 = vpop.f32.mrf.mxu1  ;;  %7223 = vmatpush3.bf16.msra.mxu0 %v7809_v28 }
 0x878   : > { %v3651_v36 = vadd.f32 %v3503_v37, %v10104_v18  ;;  %3688 = vrot.lane.b32.xlu1 %v3674_v6, %s11028_s7  ;;  %s8793_s7 = smov 20   ;;  %v7896_v45 = vpop.eup %7895  ;;  %7224 = vmatprep.subr.bf16.mxu0 %v8779_v26  ;;  %v3900_v6 = vld [vmem:[#allocation4] sm:$0xf] }
 0x879   : > { %v7189_v40 = vpop.f32.mrf.mxu0  ;;  %v7194_v0 = vpop.f32.mrf.mxu1  ;;  %v3926_v9 = vsel %vm1878_vm5, %v3900_v6, 0 }
 0x87a   : > { %v3675_v41 = vmul.f32 %v7892_v56, %v3651_v36  ;;  %v6754_v40 = vld [vmem:[#allocation20] ss:$0 sm:$0xff] }
 0x87b   : > { %v3506_v48 = vpop.f32.mrf.mxu1  ;;  %v3549_v13 = vpop.f32.mrf.mxu0  ;;  %7225 = vmatpush3.bf16.msra.mxu0 %v7810_v32 }
 0x87c   : > { %v3652_v31 = vadd.f32 %v3549_v13, %v10119_v57  ;;  %3692 = vrot.lane.b32.xlu1 %v3675_v41, %s11029_s8  ;;  %s11032_s8 = smov 24   ;;  %v7898_v62 = vpop.eup %7897  ;;  %7236 = vmatprep.subr.bf16.mxu0 %v8779_v26  ;;  %v6755_v41 = vld [vmem:[#allocation21] ss:$0 sm:$0xff] }
 0x87d   : > { %v7195_v12 = vpop.f32.mrf.mxu1  ;;  %v7200_v18 = vpop.f32.mrf.mxu0 }
 0x87e   : > { %v3676_v55 = vmul.f32 %v7894_v11, %v3652_v31  ;;  %v3901_v11 = vld [vmem:[#allocation4 + $0x8] sm:$0xf]  ;;  %v6756_v18 = vld [vmem:[#allocation24] ss:$0 sm:$0xff] }
 0x87f   : > { %v3552_v7 = vpop.f32.mrf.mxu0  ;;  %v3595_v16 = vpop.f32.mrf.mxu1  ;;  %v3972_v12 = vsel %vm1878_vm5, %v3901_v11, 0 }
 0x880   : > { %v3653_v46 = vadd.f32 %v3595_v16, %v10134_v24  ;;  %3696 = vrot.lane.b32.xlu0 %v3676_v55, %s8793_s7  ;;  %v3902_v16 = vld [vmem:[#allocation4 + $0x10] sm:$0xf] }
 0x881   : > { %v7201_v39 = vpop.f32.mrf.mxu0  ;;  %v7206_v51 = vpop.f32.mrf.mxu1 }
 0x882   : > { %v3677_v59 = vmul.f32 %v7896_v45, %v3653_v46  ;;  %v4018_v51 = vsel %vm1878_vm5, %v3902_v16, 0 }
 0x883   : > { %v3598_v47 = vpop.f32.mrf.mxu1  ;;  %v3641_v57 = vpop.f32.mrf.mxu0 }
 0x884   : > { %v3654_v43 = vadd.f32 %v3641_v57, %v10144_v25  ;;  %3700 = vrot.lane.b32.xlu1 %v3677_v59, %s11032_s8  ;;  %s11174_s8 = smov 100   ;;  %v3903_v47 = vld [vmem:[#allocation4 + $0x18] sm:$0xf]  ;;  %v3904_v57 = vld [vmem:[#allocation4 + $0x20] sm:$0xf] }
 0x885   : > { %v7207_v33 = vpop.f32.mrf.mxu1  ;;  %v7212_v27 = vpop.f32.mrf.mxu0 }
 0x886   : > { %v3678_v17 = vmul.f32 %v7898_v62, %v3654_v43  ;;  %v4064_v43 = vsel %vm1878_vm5, %v3903_v47, 0  ;;  %v4110_v62 = vsel %vm1878_vm5, %v3904_v57, 0 }
 0x887   : > { %v3644_v5 = vpop.f32.mrf.mxu0 }
 0x888   : > { %3704 = vrot.lane.b32.xlu0 %v3678_v17, %s11031_s9  ;;  %s11172_s9 = smov 108   ;;  %v3905_v17 = vld [vmem:[#allocation4 + $0x28] sm:$0xf]  ;;  %v3906_v5 = vld [vmem:[#allocation4 + $0x30] sm:$0xf] }
 0x889   : > { %v7213_v24 = vpop.f32.mrf.mxu0 }
 0x88a   : > { %v4156_v24 = vsel %vm1878_vm5, %v3905_v17, 0 }
 0x8e2   : > { %v3681_v63 = vpop.permute.xlu0 %3680 }
 0x8e3   : > { %v3707_v25 = vsel %vm1878_vm5, %v10171_v21, %v3681_v63 }
 0x8e6   : > { %v3685_v49 = vpop.permute.xlu1 %3684 }
 0x8e7   : > { %v3708_v23 = vsel %vm2263_vm8, %v3707_v25, %v3685_v49  ;;  %v4202_v49 = vsel %vm1878_vm5, %v3906_v5, 0 }
 0x8ea   : > { %v3689_v50 = vpop.permute.xlu1 %3688 }
 0x8eb   : > { %v3710_v54 = vsel %vm3709_vm11, %v3708_v23, %v3689_v50 }
 0x8ee   : > { %v3693_v10 = vpop.permute.xlu1 %3692 }
 0x8ef   : > { %v3712_v35 = vsel %vm3711_vm12, %v3710_v54, %v3693_v10  ;;  %v3907_v10 = vld [vmem:[#allocation4 + $0x38] sm:$0xf] }
 0x8f0   : > { %v4248_v25 = vsel %vm1878_vm5, %v3907_v10, 0 }
 0x8f2   : > { %v3697_v1 = vpop.permute.xlu0 %3696 }
 0x8f3   : > { %v3714_v58 = vsel %vm3713_vm13, %v3712_v35, %v3697_v1 }
 0x8f6   : > { %v3701_v52 = vpop.permute.xlu1 %3700 }
 0x8f7   : > { %v3716_v34 = vsel %vm3715_vm14, %v3714_v58, %v3701_v52 }
 0x8fa   : > { %v3705_v22 = vpop.permute.xlu0 %3704 }
 0x8fb   : > { %v3718_v21 = vsel %vm3717_vm15, %v3716_v34, %v3705_v22 }
 0x8fc   : > { %v3719_v14 = vpack.c.bf16 %v3718_v21, %v3718_v21 }
 0x8fe   : > { %7219 = vmatmul.mubr.msk.bf16.vlgmr.msra.gmra.mxu1 %vm1796_vm6, %v3719_v14 }
 0x8ff   : > { %7232 = vmatprep.mubr.msk.bf16.mxu1 %vm8780_vm4, %v8779_v26  ;;  %7231 = vmatpush3.bf16.xpose.msra.mxu1 %v3926_v9 }
 0x900   : > { %7242 = vmatprep.subr.bf16.mxu1 %v8779_v26 }
 0x9be   : > { %v3780_v20 = vpop.f32.mrf.mxu1 }
 0x9bf   : > { %v3781_v44 = vadd.f32 %v6750_v3, %v3780_v20  ;;  %v3908_v3 = vld [vmem:[#allocation5] sm:$0xf] }
 0x9c0   : > { %v7220_v38 = vpop.f32.mrf.mxu1  ;;  %v4422_v20 = vsel %vm2395_vm9, %v3908_v3, 0 }
 0x9c1   : > { %v3786_v19 = vadd.f32 %v7989_v15, %v3781_v44 }
 0x9c2   : > { %v3783_v42 = vpop.f32.mrf.mxu1 }
 0x9c3   : > { %v3789_v8 = vsel %vm1796_vm6, %v3786_v19, 0.0 }
 0x9c4   : > { %3790 = vadd.xlane.f32.xlu1 %v3789_v8  ;;  %v7221_v4 = vpop.f32.mrf.mxu1 }
 0xa4d   : > { %v3791_v61 = vpop.xlane.xlu1 %3790 }
 0xa4e   : > { %v3793_v2 = vmul.f32 0.03125, %v3791_v61 }
 0xa50   : > { %v3794_v53 = vsub.f32 %v3786_v19, %v3793_v2 }
 0xa52   : > { %v3795_v29 = vmul.f32 %v3794_v53, %v3794_v53 }
 0xa54   : > { %v3796_v30 = vsel %vm1796_vm6, %v3795_v29, 0.0 }
 0xa55   : > { %3797 = vadd.xlane.f32.xlu0 %v3796_v30 }
 0xade   : > { %v3798_v37 = vpop.xlane.xlu0 %3797 }
 0xadf   : > { %v3799_v60 = vmul.f32 0.03125, %v3798_v37 }
 0xae1   : > { %v3800_v36 = vadd.f32 1e-05, %v3799_v60 }
 0xae3   : > { %7899 = vrsqrt.f32 %v3800_v36 }
 0xaf0   : > { %v7900_v56 = vpop.eup %7899 }
 0xaf1   : > { %v3802_v0 = vmul.f32 %v7900_v56, %v3794_v53 }
 0xaf3   : > { %v3809_v48 = vmul.f32 %v6754_v40, %v3802_v0 }
 0xaf5   : > { %v10211_v13 = vadd.f32 %v6755_v41, %v3809_v48 }
 0xaf7   : > { %v3817_v31 = vpack.c.bf16 %v10211_v13, %v10211_v13 }
 0xaf9   : > { %7227 = vmatmul.mubr.msk.bf16.vlgmr.msra.gmra.mxu0 %vm1796_vm6, %v3817_v31 }
 0xafa   : > { %7238 = vmatprep.mubr.msk.bf16.mxu0 %vm8780_vm4, %v8779_v26  ;;  %7237 = vmatpush3.bf16.xpose.msra.mxu0 %v3972_v12 }
 0xafb   : > { %7248 = vmatprep.subr.bf16.mxu0 %v8779_v26 }
 0xbb9   : > { %v3878_v55 = vpop.f32.mrf.mxu0 }
 0xbba   : > { %v3879_v7 = vadd.f32 %v6756_v18, %v3878_v55 }
 0xbbb   : > { %v7228_v46 = vpop.f32.mrf.mxu0 }
 0xbbc   : > { %v10220_v45 = vpack.c.bf16 %v3879_v7, %v3879_v7 }
 0xbbd   : > { %v3881_v39 = vpop.f32.mrf.mxu0 }
 0xbbe   : > { %3888 = vrot.lane.b32.xlu1 %v10220_v45, %s8784_s29  ;;  %3886 = vrot.lane.b32.xlu0 %v10220_v45, %s8782_s2  ;;  %s11173_s2 = smov 104  }
 0xbbf   : > { %7233 = vmatmul.mubr.msk.bf16.vlgmr.msra.gmra.mxu1 %vm1878_vm5, %v10220_v45  ;;  %v7229_v59 = vpop.f32.mrf.mxu0 }
 0xbc0   : > { %7243 = vmatpush3.bf16.xpose.msra.mxu1 %v4018_v51  ;;  %7244 = vmatprep.mubr.msk.bf16.mxu1 %vm8780_vm4, %v8779_v26 }
 0xbc1   : > { %7254 = vmatprep.subr.bf16.mxu1 %v8779_v26 }
 0xbc2   : > { %3890 = vrot.lane.b32.xlu1 %v10220_v45, %s8781_s20  ;;  %3892 = vrot.lane.b32.xlu0 %v10220_v45, %s11171_s26  ;;  %s11175_s20 = scalar_lea.vmem [#allocation12], %s9363_s27  ;;  %s11176_s27 = smov 4  }
 0xbc3   : > { %v10296_v52 = vld [vmem:[%s11175_s20] ss:$0 sm:$0xff]  ;;  %s11180_s26 = smov 24   ;;  %s8796_s20 = smov 96  }
 0xbc6   : > { %3894 = vrot.lane.b32.xlu1 %v10220_v45, %s11172_s9  ;;  %3896 = vrot.lane.b32.xlu0 %v10220_v45, %s11173_s2  ;;  %s11177_s9 = smov 8   ;;  %s11181_s2 = smov 28  }
 0xbca   : > { %3898 = vrot.lane.b32.xlu1 %v10220_v45, %s11174_s8  ;;  %s11179_s8 = smov 16  }
 0xc30   : > { %v10244_v33 = vpop.permute.xlu1 %3888  ;;  %v10246_v27 = vpop.permute.xlu0 %3886 }
 0xc31   : > { %7239 = vmatmul.mubr.msk.bf16.vlgmr.msra.gmra.mxu0 %vm1878_vm5, %v10246_v27  ;;  %7245 = vmatmul.mubr.msk.bf16.vlgmr.msra.gmra.mxu1 %vm1878_vm5, %v10244_v33 }
 0xc32   : > { %7249 = vmatpush3.bf16.xpose.msra.mxu0 %v4064_v43  ;;  %7255 = vmatpush3.bf16.xpose.msra.mxu1 %v4110_v62 }
 0xc33   : > { %7250 = vmatprep.mubr.msk.bf16.mxu0 %vm8780_vm4, %v8779_v26  ;;  %7260 = vmatprep.subr.bf16.mxu0 %v8779_v26 }
 0xc34   : > { %7256 = vmatprep.mubr.msk.bf16.mxu1 %vm8780_vm4, %v8779_v26  ;;  %7266 = vmatprep.subr.bf16.mxu1 %v8779_v26  ;;  %v10260_v50 = vpop.permute.xlu1 %3890  ;;  %v10262_v63 = vpop.permute.xlu0 %3892 }
 0xc38   : > { %v10275_v23 = vpop.permute.xlu1 %3894  ;;  %v10277_v1 = vpop.permute.xlu0 %3896 }
 0xc39   : > { %7251 = vmatmul.mubr.msk.bf16.vlgmr.msra.gmra.mxu0 %vm1878_vm5, %v10260_v50  ;;  %7257 = vmatmul.mubr.msk.bf16.vlgmr.msra.gmra.mxu1 %vm1878_vm5, %v10262_v63 }
 0xc3a   : > { %7261 = vmatpush3.bf16.xpose.msra.mxu0 %v4156_v24  ;;  %7267 = vmatpush3.bf16.xpose.msra.mxu1 %v4202_v49 }
 0xc3b   : > { %7262 = vmatprep.mubr.msk.bf16.mxu0 %vm8780_vm4, %v8779_v26  ;;  %7268 = vmatprep.mubr.msk.bf16.mxu1 %vm8780_vm4, %v8779_v26 }
 0xc3c   : > { %7272 = vmatprep.subr.bf16.mxu0 %v8779_v26  ;;  %7278 = vmatprep.subr.bf16.mxu1 %v8779_v26  ;;  %v10288_v54 = vpop.permute.xlu1 %3898 }
 0xc41   : > { %7263 = vmatmul.mubr.msk.bf16.vlgmr.msra.gmra.mxu0 %vm1878_vm5, %v10275_v23  ;;  %7269 = vmatmul.mubr.msk.bf16.vlgmr.msra.gmra.mxu1 %vm1878_vm5, %v10277_v1 }
 0xc42   : > { %7273 = vmatpush3.bf16.xpose.msra.mxu0 %v4248_v25  ;;  %7274 = vmatprep.mubr.msk.bf16.mxu0 %vm8780_vm4, %v8779_v26 }
 0xc43   : > { %7280 = vmatprep.mubr.msk.bf16.mxu1 %vm8780_vm4, %v8779_v26  ;;  %7284 = vmatprep.subr.bf16.mxu0 %v8779_v26 }
 0xc44   : > { %7279 = vmatpush3.bf16.msra.mxu1 %v4422_v20 }
 0xc45   : > { %7290 = vmatprep.subr.bf16.mxu1 %v8779_v26 }
 0xc49   : > { %7275 = vmatmul.mubr.msk.bf16.vlgmr.msra.gmra.mxu0 %vm1878_vm5, %v10288_v54 }
 0xc4a   : > { %7286 = vmatprep.mubr.msk.bf16.mxu0 %vm8780_vm4, %v8779_v26 }
 0xc7f   : > { %v3962_v35 = vpop.f32.mrf.mxu1 }
 0xc80   : > { %v3963_v58 = vadd.f32 %v10296_v52, %v3962_v35 }
 0xc81   : > { %v7234_v34 = vpop.f32.mrf.mxu1 }
 0xc82   : > { %v4290_v22 = vsel %vm2263_vm8, %v3963_v58, -inf  ;;  %v3909_v34 = vld [vmem:[#allocation5 + $0x8] sm:$0xf] }
 0xc83   : > { %4291 = vmax.xlane.f32.xlu0 %v4290_v22  ;;  %v3965_v21 = vpop.f32.mrf.mxu1  ;;  %v4468_v22 = vsel %vm2395_vm9, %v3909_v34, 0 }
 0xc84   : > { %7285 = vmatpush3.bf16.msra.mxu0 %v4468_v22  ;;  %v3910_v21 = vld [vmem:[#allocation5 + $0x10] sm:$0xf] }
 0xc85   : > { %v7235_v14 = vpop.f32.mrf.mxu1  ;;  %7296 = vmatprep.subr.bf16.mxu0 %v8779_v26 }
 0xcf1   : > { %v4008_v44 = vpop.f32.mrf.mxu0  ;;  %v4054_v38 = vpop.f32.mrf.mxu1 }
 0xcf2   : > { %v10303_v15 = vadd.f32 %v10296_v52, %v4008_v44  ;;  %v10306_v19 = vadd.f32 %v10296_v52, %v4054_v38 }
 0xcf3   : > { %v7240_v42 = vpop.f32.mrf.mxu0  ;;  %v7246_v8 = vpop.f32.mrf.mxu1 }
 0xcf4   : > { %v4293_v4 = vsel %vm2263_vm8, %v10303_v15, -inf  ;;  %v4296_v61 = vsel %vm2263_vm8, %v10306_v19, -inf }
 0xcf5   : > { %4294 = vmax.xlane.f32.xlu1 %v4293_v4  ;;  %v4011_v2 = vpop.f32.mrf.mxu0  ;;  %4297 = vmax.xlane.f32.xlu0 %v4296_v61  ;;  %v4057_v53 = vpop.f32.mrf.mxu1 }
 0xcf7   : > { %v7241_v29 = vpop.f32.mrf.mxu0  ;;  %v7247_v30 = vpop.f32.mrf.mxu1 }
 0xcf9   : > { %v4100_v28 = vpop.f32.mrf.mxu0  ;;  %v4146_v32 = vpop.f32.mrf.mxu1 }
 0xcfa   : > { %v10313_v6 = vadd.f32 %v10296_v52, %v4100_v28  ;;  %v10316_v60 = vadd.f32 %v10296_v52, %v4146_v32 }
 0xcfb   : > { %v7252_v9 = vpop.f32.mrf.mxu0  ;;  %v7258_v37 = vpop.f32.mrf.mxu1 }
 0xcfc   : > { %v4299_v36 = vsel %vm2263_vm8, %v10313_v6, -inf  ;;  %v4302_v48 = vsel %vm2263_vm8, %v10316_v60, -inf }
 0xcfd   : > { %v4103_v56 = vpop.f32.mrf.mxu0  ;;  %4300 = vmax.xlane.f32.xlu0 %v4299_v36  ;;  %v4149_v40 = vpop.f32.mrf.mxu1 }
 0xcfe   : > { %v3911_v40 = vld [vmem:[#allocation5 + $0x18] sm:$0xf] }
 0xcff   : > { %v7253_v0 = vpop.f32.mrf.mxu0  ;;  %v7259_v41 = vpop.f32.mrf.mxu1 }
 0xd00   : > { %v3912_v41 = vld [vmem:[#allocation5 + $0x20] sm:$0xf] }
 0xd01   : > { %v4192_v31 = vpop.f32.mrf.mxu0  ;;  %4303 = vmax.xlane.f32.xlu0 %v4302_v48  ;;  %v4238_v11 = vpop.f32.mrf.mxu1 }
 0xd02   : > { %v10323_v12 = vadd.f32 %v10296_v52, %v4192_v31  ;;  %v10326_v18 = vadd.f32 %v10296_v52, %v4238_v11 }
 0xd03   : > { %v7264_v55 = vpop.f32.mrf.mxu0  ;;  %v7270_v7 = vpop.f32.mrf.mxu1 }
 0xd04   : > { %v4305_v16 = vsel %vm2263_vm8, %v10323_v12, -inf  ;;  %v4308_v46 = vsel %vm2263_vm8, %v10326_v18, -inf  ;;  %v4560_v7 = vsel %vm2395_vm9, %v3911_v40, 0 }
 0xd05   : > { %4306 = vmax.xlane.f32.xlu1 %v4305_v16  ;;  %v4195_v39 = vpop.f32.mrf.mxu0  ;;  %4309 = vmax.xlane.f32.xlu0 %v4308_v46  ;;  %v4241_v51 = vpop.f32.mrf.mxu1 }
 0xd06   : > { %v3913_v39 = vld [vmem:[#allocation5 + $0x28] sm:$0xf] }
 0xd07   : > { %v7265_v59 = vpop.f32.mrf.mxu0  ;;  %v7271_v47 = vpop.f32.mrf.mxu1 }
 0xd09   : > { %v4284_v57 = vpop.f32.mrf.mxu0 }
 0xd0a   : > { %v10333_v43 = vadd.f32 %v10296_v52, %v4284_v57 }
 0xd0b   : > { %v7276_v62 = vpop.f32.mrf.mxu0 }
 0xd0c   : > { %v4292_v17 = vpop.xlane.xlu0 %4291  ;;  %v4311_v5 = vsel %vm2263_vm8, %v10333_v43, -inf  ;;  %v4652_v62 = vsel %vm2395_vm9, %v3913_v39, 0 }
 0xd0d   : > { %v10337_v24 = vmax.f32 %v4292_v17, -1e+30  ;;  %4312 = vmax.xlane.f32.xlu1 %v4311_v5  ;;  %v4287_v49 = vpop.f32.mrf.mxu0  ;;  %v3914_v17 = vld [vmem:[#allocation5 + $0x30] sm:$0xf] }
 0xd0e   : > { %v4698_v49 = vsel %vm2395_vm9, %v3914_v17, 0 }
 0xd0f   : > { %v4346_v10 = vsub.f32 %v3963_v58, %v10337_v24  ;;  %v7277_v25 = vpop.f32.mrf.mxu0  ;;  %v4514_v58 = vsel %vm2395_vm9, %v3910_v21, 0  ;;  %v4794_v21 = vld [vmem:[#allocation4 + $0x4] sm:$0xf] }
 0xd11   : > { %v4354_v35 = vmul.f32 1.442695, %v4346_v10  ;;  %v3915_v10 = vld [vmem:[#allocation5 + $0x38] sm:$0xf] }
 0xd12   : > { %v4744_v34 = vsel %vm2395_vm9, %v3915_v10, 0 }
 0xd13   : > { %7901 = vpow2.f32 %v4354_v35 }
 0xd1b   : > { %4810 = vrot.lane.b32.xlu0 %v10296_v52, %s8784_s29  ;;  %s11178_s29 = smov 12  }
 0xd20   : > { %v10344_v14 = vpop.eup %7901 }
 0xd21   : > { %v4410_v3 = vpack.c.bf16 %v10344_v14, %v10344_v14 }
 0xd23   : > { %7281 = vmatmul.mubr.msk.bf16.vlgmr.msra.gmra.mxu1 %vm2263_vm8, %v4410_v3 }
 0xd24   : > { %7291 = vmatpush3.bf16.msra.mxu1 %v4514_v58  ;;  %7292 = vmatprep.mubr.msk.bf16.mxu1 %vm8780_vm4, %v8779_v26  ;;  %v4814_v58 = vsel %vm1878_vm5, %v4794_v21, 0 }
 0xd25   : > { %7302 = vmatprep.subr.bf16.mxu1 %v8779_v26 }
 0xd7e   : > { %v4295_v20 = vpop.xlane.xlu1 %4294  ;;  %v4298_v44 = vpop.xlane.xlu0 %4297 }
 0xd7f   : > { %v10353_v38 = vmax.f32 %v4295_v20, -1e+30  ;;  %v10355_v52 = vmax.f32 %v4298_v44, -1e+30  ;;  %v4795_v20 = vld [vmem:[#allocation4 + $0xc] sm:$0xf] }
 0xd81   : > { %v4347_v42 = vsub.f32 %v10303_v15, %v10353_v38  ;;  %v4348_v8 = vsub.f32 %v10306_v19, %v10355_v52 }
 0xd83   : > { %v4356_v4 = vmul.f32 1.442695, %v4347_v42  ;;  %v4358_v61 = vmul.f32 1.442695, %v4348_v8  ;;  %v4857_v8 = vsel %vm1878_vm5, %v4795_v20, 0 }
 0xd85   : > { %7903 = vpow2.f32 %v4356_v4  ;;  %v4796_v4 = vld [vmem:[#allocation4 + $0x14] sm:$0xf] }
 0xd86   : > { %7905 = vpow2.f32 %v4358_v61  ;;  %v4301_v2 = vpop.xlane.xlu0 %4300  ;;  %v4900_v61 = vsel %vm1878_vm5, %v4796_v4, 0 }
 0xd87   : > { %v10361_v53 = vmax.f32 %v4301_v2, -1e+30  ;;  %v4797_v2 = vld [vmem:[#allocation4 + $0x1c] sm:$0xf] }
 0xd89   : > { %v4349_v29 = vsub.f32 %v10313_v6, %v10361_v53 }
 0xd8a   : > { %v4304_v30 = vpop.xlane.xlu0 %4303 }
 0xd8b   : > { %v4360_v28 = vmul.f32 1.442695, %v4349_v29  ;;  %v10365_v32 = vmax.f32 %v4304_v30, -1e+30  ;;  %v4943_v29 = vsel %vm1878_vm5, %v4797_v2, 0 }
 0xd8c   : > { %v4798_v30 = vld [vmem:[#allocation4 + $0x24] sm:$0xf] }
 0xd8d   : > { %7907 = vpow2.f32 %v4360_v28  ;;  %v4350_v15 = vsub.f32 %v10316_v60, %v10365_v32  ;;  %v4986_v28 = vsel %vm1878_vm5, %v4798_v30, 0 }
 0xd8e   : > { %v4307_v9 = vpop.xlane.xlu1 %4306  ;;  %v4310_v19 = vpop.xlane.xlu0 %4309 }
 0xd8f   : > { %v4362_v37 = vmul.f32 1.442695, %v4350_v15  ;;  %v10369_v36 = vmax.f32 %v4307_v9, -1e+30  ;;  %v10371_v56 = vmax.f32 %v4310_v19, -1e+30 }
 0xd91   : > { %7909 = vpow2.f32 %v4362_v37  ;;  %v4351_v6 = vsub.f32 %v10323_v12, %v10369_v36  ;;  %v4352_v0 = vsub.f32 %v10326_v18, %v10371_v56  ;;  %v4606_v12 = vsel %vm2395_vm9, %v3912_v41, 0 }
 0xd92   : > { %v10377_v48 = vpop.eup %7903  ;;  %v4811_v21 = vpop.permute.xlu0 %4810 }
 0xd93   : > { %v10379_v31 = vpop.eup %7905  ;;  %v4364_v60 = vmul.f32 1.442695, %v4351_v6  ;;  %v4366_v11 = vmul.f32 1.442695, %v4352_v0  ;;  %v4411_v55 = vpack.c.bf16 %v10377_v48, %v10377_v48 }
 0xd94   : > { %v4412_v16 = vpack.c.bf16 %v10379_v31, %v10379_v31 }
 0xd95   : > { %7911 = vpow2.f32 %v4364_v60  ;;  %7287 = vmatmul.mubr.msk.bf16.vlgmr.msra.gmra.mxu0 %vm2263_vm8, %v4411_v55 }
 0xd96   : > { %7293 = vmatmul.mubr.msk.bf16.vlgmr.msra.gmra.mxu1 %vm2263_vm8, %v4412_v16  ;;  %7297 = vmatpush3.bf16.msra.mxu0 %v4560_v7  ;;  %v4313_v18 = vpop.xlane.xlu1 %4312  ;;  %7913 = vpow2.f32 %v4366_v11 }
 0xd97   : > { %v10389_v46 = vmax.f32 %v4313_v18, -1e+30  ;;  %7303 = vmatpush3.bf16.msra.mxu1 %v4606_v12  ;;  %7298 = vmatprep.mubr.msk.bf16.mxu0 %vm8780_vm4, %v8779_v26 }
 0xd98   : > { %7308 = vmatprep.subr.bf16.mxu0 %v8779_v26  ;;  %7304 = vmatprep.mubr.msk.bf16.mxu1 %vm8780_vm4, %v8779_v26 }
 0xd99   : > { %v4353_v51 = vsub.f32 %v10333_v43, %v10389_v46  ;;  %7314 = vmatprep.subr.bf16.mxu1 %v8779_v26 }
 0xd9a   : > { %v10399_v59 = vpop.eup %7907 }
 0xd9b   : > { %v4368_v47 = vmul.f32 1.442695, %v4353_v51  ;;  %v4413_v57 = vpack.c.bf16 %v10399_v59, %v10399_v59 }
 0xd9d   : > { %7915 = vpow2.f32 %v4368_v47  ;;  %7299 = vmatmul.mubr.msk.bf16.vlgmr.msra.gmra.mxu0 %vm2263_vm8, %v4413_v57 }
 0xd9e   : > { %v10405_v5 = vpop.eup %7909  ;;  %7309 = vmatpush3.bf16.msra.mxu0 %v4652_v62  ;;  %7310 = vmatprep.mubr.msk.bf16.mxu0 %vm8780_vm4, %v8779_v26 }
 0xd9f   : > { %v4414_v43 = vpack.c.bf16 %v10405_v5, %v10405_v5  ;;  %7320 = vmatprep.subr.bf16.mxu0 %v8779_v26 }
 0xda1   : > { %7305 = vmatmul.mubr.msk.bf16.vlgmr.msra.gmra.mxu1 %vm2263_vm8, %v4414_v43 }
 0xda2   : > { %v10414_v25 = vpop.eup %7911  ;;  %7315 = vmatpush3.bf16.msra.mxu1 %v4698_v49  ;;  %7316 = vmatprep.mubr.msk.bf16.mxu1 %vm8780_vm4, %v8779_v26 }
 0xda3   : > { %v4415_v35 = vpack.c.bf16 %v10414_v25, %v10414_v25  ;;  %7326 = vmatprep.subr.bf16.mxu1 %v8779_v26  ;;  %v10422_v22 = vpop.eup %7913 }
 0xda4   : > { %v4416_v3 = vpack.c.bf16 %v10422_v22, %v10422_v22 }
 0xda5   : > { %7311 = vmatmul.mubr.msk.bf16.vlgmr.msra.gmra.mxu0 %vm2263_vm8, %v4415_v35 }
 0xda6   : > { %7321 = vmatpush3.bf16.msra.mxu0 %v4744_v34  ;;  %7322 = vmatprep.mubr.msk.bf16.mxu0 %vm8780_vm4, %v8779_v26 }
 0xda7   : > { %7332 = vmatprep.subr.bf16.mxu0 %v8779_v26 }
 0xda9   : > { %7317 = vmatmul.mubr.msk.bf16.vlgmr.msra.gmra.mxu1 %vm2263_vm8, %v4416_v3 }
 0xdaa   : > { %v10432_v44 = vpop.eup %7915  ;;  %7327 = vmatpush3.bf16.xpose.msra.mxu1 %v4814_v58  ;;  %7328 = vmatprep.mubr.msk.bf16.mxu1 %vm8780_vm4, %v8779_v26 }
 0xdab   : > { %v4417_v42 = vpack.c.bf16 %v10432_v44, %v10432_v44  ;;  %7338 = vmatprep.subr.bf16.mxu1 %v8779_v26 }
 0xdad   : > { %7323 = vmatmul.mubr.msk.bf16.vlgmr.msra.gmra.mxu0 %vm2263_vm8, %v4417_v42 }
 0xdae   : > { %7333 = vmatpush3.bf16.xpose.msra.mxu0 %v4857_v8  ;;  %7334 = vmatprep.mubr.msk.bf16.mxu0 %vm8780_vm4, %v8779_v26 }
 0xdaf   : > { %7344 = vmatprep.subr.bf16.mxu0 %v8779_v26 }
 0xdb1   : > { %7329 = vmatmul.mubr.msk.bf16.vlgmr.msra.gmra.mxu1 %vm1878_vm5, %v10220_v45  ;;  %v4799_v45 = vld [vmem:[#allocation4 + $0x2c] sm:$0xf] }
 0xdb2   : > { %7339 = vmatpush3.bf16.xpose.msra.mxu1 %v4900_v61  ;;  %7340 = vmatprep.mubr.msk.bf16.mxu1 %vm8780_vm4, %v8779_v26  ;;  %v5029_v15 = vsel %vm1878_vm5, %v4799_v45, 0 }
 0xdb3   : > { %7350 = vmatprep.subr.bf16.mxu1 %v8779_v26 }
 0xdb5   : > { %7335 = vmatmul.mubr.msk.bf16.vlgmr.msra.gmra.mxu0 %vm1878_vm5, %v10246_v27  ;;  %v4800_v27 = vld [vmem:[#allocation4 + $0x34] sm:$0xf] }
 0xdb6   : > { %7345 = vmatpush3.bf16.xpose.msra.mxu0 %v4943_v29  ;;  %7346 = vmatprep.mubr.msk.bf16.mxu0 %vm8780_vm4, %v8779_v26  ;;  %v5072_v9 = vsel %vm1878_vm5, %v4800_v27, 0 }
 0xdb7   : > { %7356 = vmatprep.subr.bf16.mxu0 %v8779_v26 }
 0xdb9   : > { %7341 = vmatmul.mubr.msk.bf16.vlgmr.msra.gmra.mxu1 %vm1878_vm5, %v10244_v33  ;;  %v4801_v33 = vld [vmem:[#allocation4 + $0x3c] sm:$0xf] }
 0xdba   : > { %7351 = vmatpush3.bf16.xpose.msra.mxu1 %v4986_v28  ;;  %7352 = vmatprep.mubr.msk.bf16.mxu1 %vm8780_vm4, %v8779_v26  ;;  %v5115_v19 = vsel %vm1878_vm5, %v4801_v33, 0 }
 0xdbb   : > { %7362 = vmatprep.subr.bf16.mxu1 %v8779_v26 }
 0xdbd   : > { %7347 = vmatmul.mubr.msk.bf16.vlgmr.msra.gmra.mxu0 %vm1878_vm5, %v10260_v50 }
 0xdbe   : > { %7357 = vmatpush3.bf16.xpose.msra.mxu0 %v5029_v15  ;;  %7358 = vmatprep.mubr.msk.bf16.mxu0 %vm8780_vm4, %v8779_v26 }
 0xdbf   : > { %7368 = vmatprep.subr.bf16.mxu0 %v8779_v26 }
 0xdc1   : > { %7353 = vmatmul.mubr.msk.bf16.vlgmr.msra.gmra.mxu1 %vm1878_vm5, %v10262_v63 }
 0xdc2   : > { %7363 = vmatpush3.bf16.xpose.msra.mxu1 %v5072_v9  ;;  %7364 = vmatprep.mubr.msk.bf16.mxu1 %vm8780_vm4, %v8779_v26 }
 0xdc3   : > { %7374 = vmatprep.subr.bf16.mxu1 %v8779_v26 }
 0xdc5   : > { %7359 = vmatmul.mubr.msk.bf16.vlgmr.msra.gmra.mxu0 %vm1878_vm5, %v10275_v23 }
 0xdc6   : > { %7369 = vmatpush3.bf16.xpose.msra.mxu0 %v5115_v19  ;;  %7370 = vmatprep.mubr.msk.bf16.mxu0 %vm8780_vm4, %v8779_v26 }
 0xdc7   : > { %7380 = vmatprep.subr.bf16.mxu0 %v8779_v26 }
 0xdc9   : > { %7365 = vmatmul.mubr.msk.bf16.vlgmr.msra.gmra.mxu1 %vm1878_vm5, %v10277_v1 }
 0xdca   : > { %7376 = vmatprep.mubr.msk.bf16.mxu1 %vm8780_vm4, %v8779_v26 }
 0xdcd   : > { %7371 = vmatmul.mubr.msk.bf16.vlgmr.msra.gmra.mxu0 %vm1878_vm5, %v10288_v54 }
 0xdce   : > { %7382 = vmatprep.mubr.msk.bf16.mxu0 %vm8780_vm4, %v8779_v26 }
 0xde3   : > { %v10488_v50 = vpop.f32.mrf.mxu1 }
 0xde5   : > { %v7282_v63 = vpop.f32.mrf.mxu1 }
 0xde7   : > { %v4461_v23 = vpop.f32.mrf.mxu1 }
 0xde9   : > { %v7283_v37 = vpop.f32.mrf.mxu1 }
 0xe55   : > { %v10490_v40 = vpop.f32.mrf.mxu0 }
 0xe56   : > { %v10492_v6 = vpop.f32.mrf.mxu1 }
 0xe57   : > { %v7288_v0 = vpop.f32.mrf.mxu0 }
 0xe58   : > { %v7294_v1 = vpop.f32.mrf.mxu1 }
 0xe59   : > { %v4507_v41 = vpop.f32.mrf.mxu0 }
 0xe5a   : > { %v4553_v60 = vpop.f32.mrf.mxu1 }
 0xe5b   : > { %v7289_v11 = vpop.f32.mrf.mxu0 }
 0xe5c   : > { %v7295_v55 = vpop.f32.mrf.mxu1 }
 0xe5d   : > { %v10494_v7 = vpop.f32.mrf.mxu0 }
 0xe5f   : > { %v7300_v54 = vpop.f32.mrf.mxu0 }
 0xe61   : > { %v4599_v16 = vpop.f32.mrf.mxu0  ;;  %v10496_v12 = vpop.f32.mrf.mxu1 }
 0xe63   : > { %v7301_v18 = vpop.f32.mrf.mxu0  ;;  %v7306_v39 = vpop.f32.mrf.mxu1 }
 0xe65   : > { %v4645_v51 = vpop.f32.mrf.mxu1  ;;  %v10498_v47 = vpop.f32.mrf.mxu0 }
 0xe67   : > { %v7307_v57 = vpop.f32.mrf.mxu1  ;;  %v7312_v62 = vpop.f32.mrf.mxu0 }
 0xe69   : > { %v4691_v17 = vpop.f32.mrf.mxu0  ;;  %v10500_v43 = vpop.f32.mrf.mxu1 }
 0xe6b   : > { %v7313_v49 = vpop.f32.mrf.mxu0  ;;  %v7318_v10 = vpop.f32.mrf.mxu1 }
 0xe6d   : > { %v4737_v35 = vpop.f32.mrf.mxu1  ;;  %v10502_v34 = vpop.f32.mrf.mxu0 }
 0xe6f   : > { %v7319_v3 = vpop.f32.mrf.mxu1  ;;  %v7324_v58 = vpop.f32.mrf.mxu0 }
 0xe71   : > { %v4783_v20 = vpop.f32.mrf.mxu0  ;;  %v4850_v42 = vpop.f32.mrf.mxu1 }
 0xe72   : > { %v10504_v8 = vadd.f32 %v4850_v42, %v4811_v21 }
 0xe73   : > { %v7325_v4 = vpop.f32.mrf.mxu0  ;;  %v7330_v61 = vpop.f32.mrf.mxu1 }
 0xe74   : > { %v5157_v2 = vsel %vm2263_vm8, %v10504_v8, -inf }
 0xe75   : > { %v4893_v29 = vpop.f32.mrf.mxu0  ;;  %5158 = vmax.xlane.f32.xlu1 %v5157_v2  ;;  %v4853_v30 = vpop.f32.mrf.mxu1 }
 0xe76   : > { %v10508_v28 = vadd.f32 %v4893_v29, %v4811_v21 }
 0xe77   : > { %v7331_v45 = vpop.f32.mrf.mxu1  ;;  %v7336_v15 = vpop.f32.mrf.mxu0 }
 0xe78   : > { %v5160_v27 = vsel %vm2263_vm8, %v10508_v28, -inf }
 0xe79   : > { %v4896_v9 = vpop.f32.mrf.mxu0  ;;  %5161 = vmax.xlane.f32.xlu1 %v5160_v27  ;;  %v4936_v33 = vpop.f32.mrf.mxu1 }
 0xe7a   : > { %v10512_v19 = vadd.f32 %v4936_v33, %v4811_v21 }
 0xe7b   : > { %v7337_v63 = vpop.f32.mrf.mxu0  ;;  %v7342_v23 = vpop.f32.mrf.mxu1 }
 0xe7c   : > { %v5163_v37 = vsel %vm2263_vm8, %v10512_v19, -inf  ;;  %v4802_v23 = vld [vmem:[#allocation5 + $0x4] sm:$0xf] }
 0xe7d   : > { %v4979_v0 = vpop.f32.mrf.mxu0  ;;  %5164 = vmax.xlane.f32.xlu1 %v5163_v37  ;;  %v4939_v1 = vpop.f32.mrf.mxu1  ;;  %v4381_v37 = vsel %vm2263_vm8, %v10377_v48, 0.0  ;;  %v4390_v48 = vsel %vm2263_vm8, %v10405_v5, 0.0  ;;  %v4324_v5 = vsub.f32 -1e+30, %v10355_v52 }
 0xe7e   : > { %v10516_v41 = vadd.f32 %v4979_v0, %v4811_v21  ;;  %v5297_v0 = vsel %vm2395_vm9, %v4802_v23, 0  ;;  %v4803_v1 = vld [vmem:[#allocation5 + $0xc] sm:$0xf] }
 0xe7f   : > { %v7343_v60 = vpop.f32.mrf.mxu1  ;;  %v7348_v11 = vpop.f32.mrf.mxu0  ;;  %7375 = vmatpush3.bf16.msra.mxu1 %v5297_v0 }
 0xe80   : > { %v5166_v55 = vsel %vm2263_vm8, %v10516_v41, -inf  ;;  %7386 = vmatprep.subr.bf16.mxu1 %v8779_v26  ;;  %v4384_v60 = vsel %vm2263_vm8, %v10379_v31, 0.0  ;;  %v4387_v11 = vsel %vm2263_vm8, %v10399_v59, 0.0  ;;  %v4399_v31 = vsel %vm2263_vm8, %v10432_v44, 0.0 }
 0xe81   : > { %v4982_v54 = vpop.f32.mrf.mxu0  ;;  %5167 = vmax.xlane.f32.xlu1 %v5166_v55  ;;  %v5022_v16 = vpop.f32.mrf.mxu1  ;;  %v4393_v55 = vsel %vm2263_vm8, %v10414_v25, 0.0 }
 0xe82   : > { %v10520_v18 = vadd.f32 %v5022_v16, %v4811_v21  ;;  %v4396_v54 = vsel %vm2263_vm8, %v10422_v22, 0.0  ;;  %v4322_v16 = vsub.f32 -1e+30, %v10337_v24  ;;  %v4325_v22 = vsub.f32 -1e+30, %v10361_v53 }
 0xe83   : > { %v7349_v39 = vpop.f32.mrf.mxu0  ;;  %v7354_v51 = vpop.f32.mrf.mxu1 }
 0xe84   : > { %v5169_v57 = vsel %vm2263_vm8, %v10520_v18, -inf  ;;  %v4330_v59 = vmul.f32 1.442695, %v4322_v16  ;;  %v4323_v39 = vsub.f32 -1e+30, %v10353_v38 }
 0xe85   : > { %v5065_v62 = vpop.f32.mrf.mxu0  ;;  %5170 = vmax.xlane.f32.xlu1 %v5169_v57  ;;  %v5025_v17 = vpop.f32.mrf.mxu1  ;;  %v4329_v16 = vsub.f32 -1e+30, %v10389_v46 }
 0xe86   : > { %v10524_v49 = vadd.f32 %v5065_v62, %v4811_v21  ;;  %7917 = vpow2.f32 %v4330_v59  ;;  %v4332_v51 = vmul.f32 1.442695, %v4323_v39  ;;  %v4334_v62 = vmul.f32 1.442695, %v4324_v5  ;;  %v4804_v5 = vld [vmem:[#allocation5 + $0x14] sm:$0xf] }
 0xe87   : > { %v7355_v10 = vpop.f32.mrf.mxu1  ;;  %v7360_v35 = vpop.f32.mrf.mxu0 }
 0xe88   : > { %v5172_v3 = vsel %vm2263_vm8, %v10524_v49, -inf  ;;  %7919 = vpow2.f32 %v4332_v51 }
 0xe89   : > { %v5068_v58 = vpop.f32.mrf.mxu0  ;;  %5173 = vmax.xlane.f32.xlu1 %v5172_v3  ;;  %v5108_v20 = vpop.f32.mrf.mxu1  ;;  %7921 = vpow2.f32 %v4334_v62 }
 0xe8a   : > { %v10528_v42 = vadd.f32 %v5108_v20, %v4811_v21  ;;  %v4336_v20 = vmul.f32 1.442695, %v4325_v22 }
 0xe8b   : > { %v7361_v4 = vpop.f32.mrf.mxu0  ;;  %v7366_v61 = vpop.f32.mrf.mxu1 }
 0xe8c   : > { %v5175_v2 = vsel %vm2263_vm8, %v10528_v42, -inf }
 0xe8d   : > { %v5151_v29 = vpop.f32.mrf.mxu0  ;;  %5176 = vmax.xlane.f32.xlu0 %v5175_v2  ;;  %v5111_v30 = vpop.f32.mrf.mxu1 }
 0xe8e   : > { %v10532_v45 = vadd.f32 %v5151_v29, %v4811_v21  ;;  %v5343_v21 = vsel %vm2395_vm9, %v4803_v1, 0  ;;  %v4326_v29 = vsub.f32 -1e+30, %v10365_v32  ;;  %v4328_v1 = vsub.f32 -1e+30, %v10371_v56 }
 0xe8f   : > { %v7367_v15 = vpop.f32.mrf.mxu1  ;;  %v7372_v27 = vpop.f32.mrf.mxu0  ;;  %7381 = vmatpush3.bf16.msra.mxu0 %v5343_v21 }
 0xe90   : > { %v5178_v9 = vsel %vm2263_vm8, %v10532_v45, -inf  ;;  %7392 = vmatprep.subr.bf16.mxu0 %v8779_v26  ;;  %v4327_v15 = vsub.f32 -1e+30, %v10369_v36 }
 0xe91   : > { %v5154_v33 = vpop.f32.mrf.mxu0  ;;  %5179 = vmax.xlane.f32.xlu1 %v5178_v9 }
 0xe92   : > { %v4340_v0 = vmul.f32 1.442695, %v4327_v15 }
 0xe93   : > { %v7373_v63 = vpop.f32.mrf.mxu0  ;;  %v7918_v33 = vpop.eup %7917 }
 0xe95   : > { %4382 = vadd.xlane.f32.xlu1 %v4381_v37 }
 0xe99   : > { %4385 = vadd.xlane.f32.xlu1 %v4384_v60 }
 0xe9d   : > { %4388 = vadd.xlane.f32.xlu1 %v4387_v11  ;;  %v10573_v11 = vmul.f32 0.0, %v7918_v33 }
 0xea1   : > { %4391 = vadd.xlane.f32.xlu1 %v4390_v48 }
 0xea5   : > { %4394 = vadd.xlane.f32.xlu1 %v4393_v55 }
 0xea9   : > { %4397 = vadd.xlane.f32.xlu1 %v4396_v54 }
 0xead   : > { %4400 = vadd.xlane.f32.xlu1 %v4399_v31  ;;  %v4342_v31 = vmul.f32 1.442695, %v4328_v1 }
 0xefe   : > { %v5159_v57 = vpop.xlane.xlu1 %5158 }
 0xeff   : > { %v5181_v25 = vmax.f32 %v10337_v24, %v5159_v57 }
 0xf01   : > { %v5189_v17 = vsub.f32 %v10337_v24, %v5181_v25  ;;  %v5213_v44 = vsub.f32 %v10504_v8, %v5181_v25 }
 0xf02   : > { %v5162_v10 = vpop.xlane.xlu1 %5161 }
 0xf03   : > { %v5197_v35 = vmul.f32 1.442695, %v5189_v17  ;;  %v5221_v3 = vmul.f32 1.442695, %v5213_v44  ;;  %v5182_v58 = vmax.f32 %v10353_v38, %v5162_v10  ;;  %v5389_v10 = vsel %vm2395_vm9, %v4804_v5, 0 }
 0xf05   : > { %7923 = vpow2.f32 %v5197_v35  ;;  %v5190_v4 = vsub.f32 %v10353_v38, %v5182_v58  ;;  %v5214_v61 = vsub.f32 %v10508_v28, %v5182_v58  ;;  %v4338_v28 = vmul.f32 1.442695, %v4326_v29 }
 0xf06   : > { %7925 = vpow2.f32 %v5221_v3  ;;  %v5165_v2 = vpop.xlane.xlu1 %5164 }
 0xf07   : > { %v5199_v24 = vmul.f32 1.442695, %v5190_v4  ;;  %v5223_v30 = vmul.f32 1.442695, %v5214_v61  ;;  %v5183_v8 = vmax.f32 %v10355_v52, %v5165_v2  ;;  %7927 = vpow2.f32 %v4336_v20  ;;  %v4805_v4 = vld [vmem:[#allocation5 + $0x1c] sm:$0xf] }
 0xf09   : > { %7929 = vpow2.f32 %v5199_v24  ;;  %v5191_v27 = vsub.f32 %v10355_v52, %v5183_v8  ;;  %v5215_v9 = vsub.f32 %v10512_v19, %v5183_v8  ;;  %v7920_v19 = vpop.eup %7919 }
 0xf0a   : > { %7931 = vpow2.f32 %v5223_v30  ;;  %v5168_v38 = vpop.xlane.xlu1 %5167  ;;  %v7922_v59 = vpop.eup %7921  ;;  %v10583_v57 = vmul.f32 0.0, %v7920_v19 }
 0xf0b   : > { %v5201_v63 = vmul.f32 1.442695, %v5191_v27  ;;  %v5225_v23 = vmul.f32 1.442695, %v5215_v9  ;;  %v5184_v37 = vmax.f32 %v10361_v53, %v5168_v38  ;;  %v10600_v2 = vmul.f32 0.0, %v7922_v59 }
 0xf0c   : > { %v4787_v3 = vadd.f32 %v10490_v40, %v10583_v57  ;;  %v5435_v27 = vsel %vm2395_vm9, %v4805_v4, 0 }
 0xf0d   : > { %7933 = vpow2.f32 %v5201_v63  ;;  %v5192_v21 = vsub.f32 %v10361_v53, %v5184_v37  ;;  %v5216_v60 = vsub.f32 %v10516_v41, %v5184_v37  ;;  %v4786_v53 = vadd.f32 %v10488_v50, %v10573_v11 }
 0xf0e   : > { %7935 = vpow2.f32 %v5225_v23  ;;  %v5171_v52 = vpop.xlane.xlu1 %5170  ;;  %v4788_v9 = vadd.f32 %v10492_v6, %v10600_v2 }
 0xf0f   : > { %7937 = vpow2.f32 %v4338_v28  ;;  %v5203_v48 = vmul.f32 1.442695, %v5192_v21  ;;  %v5227_v55 = vmul.f32 1.442695, %v5216_v60  ;;  %v5185_v54 = vmax.f32 %v10365_v32, %v5171_v52  ;;  %v4806_v28 = vld [vmem:[#allocation5 + $0x24] sm:$0xf] }
 0xf10   : > { %7939 = vpow2.f32 %v4340_v0  ;;  %v5481_v19 = vsel %vm2395_vm9, %v4806_v28, 0 }
 0xf11   : > { %7941 = vpow2.f32 %v5203_v48  ;;  %v5193_v41 = vsub.f32 %v10365_v32, %v5185_v54  ;;  %v5217_v39 = vsub.f32 %v10520_v18, %v5185_v54  ;;  %v4344_v32 = vmul.f32 1.442695, %v4329_v16  ;;  %v4807_v16 = vld [vmem:[#allocation5 + $0x2c] sm:$0xf] }
 0xf12   : > { %v10581_v51 = vpop.eup %7923  ;;  %7943 = vpow2.f32 %v5227_v55  ;;  %v5174_v25 = vpop.xlane.xlu1 %5173 }
 0xf13   : > { %v10585_v62 = vpop.eup %7925  ;;  %v5205_v22 = vmul.f32 1.442695, %v5193_v41  ;;  %v5229_v17 = vmul.f32 1.442695, %v5217_v39  ;;  %v5186_v44 = vmax.f32 %v10369_v36, %v5174_v25  ;;  %v10589_v50 = vmul.f32 %v10581_v51, %v4786_v53 }
 0xf14   : > { %7945 = vpow2.f32 %v4342_v31  ;;  %v5285_v18 = vpack.c.bf16 %v10585_v62, %v10585_v62  ;;  %v7928_v35 = vpop.eup %7927  ;;  %v5527_v25 = vsel %vm2395_vm9, %v4807_v16, 0 }
 0xf15   : > { %7947 = vpow2.f32 %v5205_v22  ;;  %v5194_v58 = vsub.f32 %v10369_v36, %v5186_v44  ;;  %v5218_v20 = vsub.f32 %v10524_v49, %v5186_v44  ;;  %v10618_v23 = vmul.f32 0.0, %v7928_v35  ;;  %v4808_v44 = vld [vmem:[#allocation5 + $0x34] sm:$0xf] }
 0xf16   : > { %v10598_v61 = vpop.eup %7929  ;;  %7949 = vpow2.f32 %v5229_v17  ;;  %7377 = vmatmul.mubr.msk.bf16.vlgmr.msra.gmra.mxu1 %vm2263_vm8, %v5285_v18  ;;  %v5177_v29 = vpop.xlane.xlu0 %5176 }
 0xf17   : > { %v7932_v24 = vpop.eup %7931  ;;  %v5207_v30 = vmul.f32 1.442695, %v5194_v58  ;;  %v5231_v8 = vmul.f32 1.442695, %v5218_v20  ;;  %v5187_v15 = vmax.f32 %v10371_v56, %v5177_v29  ;;  %7387 = vmatpush3.bf16.msra.mxu1 %v5389_v10  ;;  %7388 = vmatprep.mubr.msk.bf16.mxu1 %vm8780_vm4, %v8779_v26  ;;  %v10607_v36 = vmul.f32 %v10598_v61, %v4787_v3  ;;  %v4809_v29 = vld [vmem:[#allocation5 + $0x3c] sm:$0xf] }
 0xf18   : > { %7951 = vpow2.f32 %v4344_v32  ;;  %v5248_v40 = vsel %vm2263_vm8, %v7932_v24, 0.0  ;;  %v5286_v49 = vpack.c.bf16 %v7932_v24, %v7932_v24  ;;  %7398 = vmatprep.subr.bf16.mxu1 %v8779_v26  ;;  %v4789_v55 = vadd.f32 %v10494_v7, %v10618_v23 }
 0xf19   : > { %7953 = vpow2.f32 %v5207_v30  ;;  %v5195_v38 = vsub.f32 %v10371_v56, %v5187_v15  ;;  %v5219_v33 = vsub.f32 %v10528_v42, %v5187_v15  ;;  %5249 = vadd.xlane.f32.xlu1 %v5248_v40  ;;  %v5573_v58 = vsel %vm2395_vm9, %v4808_v44, 0 }
 0xf1a   : > { %v10616_v63 = vpop.eup %7933  ;;  %7955 = vpow2.f32 %v5231_v8  ;;  %7383 = vmatmul.mubr.msk.bf16.vlgmr.msra.gmra.mxu0 %vm2263_vm8, %v5286_v49  ;;  %v5180_v37 = vpop.xlane.xlu1 %5179 }
 0xf1b   : > { %v7936_v0 = vpop.eup %7935  ;;  %v5209_v1 = vmul.f32 1.442695, %v5195_v38  ;;  %v5233_v21 = vmul.f32 1.442695, %v5219_v33  ;;  %7393 = vmatpush3.bf16.msra.mxu0 %v5435_v27  ;;  %v5188_v6 = vmax.f32 %v10389_v46, %v5180_v37  ;;  %7394 = vmatprep.mubr.msk.bf16.mxu0 %vm8780_vm4, %v8779_v26  ;;  %v10625_v56 = vmul.f32 %v10616_v63, %v4788_v9 }
 0xf1c   : > { %v7938_v42 = vpop.eup %7937  ;;  %v5251_v60 = vsel %vm2263_vm8, %v7936_v0, 0.0  ;;  %v5287_v52 = vpack.c.bf16 %v7936_v0, %v7936_v0  ;;  %7404 = vmatprep.subr.bf16.mxu0 %v8779_v26 }
 0xf1d   : > { %v7940_v48 = vpop.eup %7939  ;;  %7957 = vpow2.f32 %v5209_v1  ;;  %v5196_v54 = vsub.f32 %v10389_v46, %v5188_v6  ;;  %v5220_v31 = vsub.f32 %v10532_v45, %v5188_v6  ;;  %5252 = vadd.xlane.f32.xlu0 %v5251_v60  ;;  %v10637_v41 = vmul.f32 0.0, %v7938_v42 }
 0xf1e   : > { %v10634_v59 = vpop.eup %7941  ;;  %7959 = vpow2.f32 %v5233_v21  ;;  %7389 = vmatmul.mubr.msk.bf16.vlgmr.msra.gmra.mxu1 %vm2263_vm8, %v5287_v52  ;;  %v10652_v10 = vmul.f32 0.0, %v7940_v48  ;;  %v4378_v60 = vsel %vm2263_vm8, %v10344_v14, 0.0 }
 0xf1f   : > { %v7944_v53 = vpop.eup %7943  ;;  %v5211_v39 = vmul.f32 1.442695, %v5196_v54  ;;  %v5235_v5 = vmul.f32 1.442695, %v5220_v31  ;;  %7399 = vmatpush3.bf16.msra.mxu1 %v5481_v19  ;;  %7400 = vmatprep.mubr.msk.bf16.mxu1 %vm8780_vm4, %v8779_v26  ;;  %v10642_v46 = vmul.f32 %v10634_v59, %v4789_v55  ;;  %v4790_v17 = vadd.f32 %v10496_v12, %v10637_v41  ;;  %v4383_v19 = vpop.xlane.xlu1 %4382 }
 0xf20   : > { %v5254_v7 = vsel %vm2263_vm8, %v7944_v53, 0.0  ;;  %v5288_v45 = vpack.c.bf16 %v7944_v53, %v7944_v53  ;;  %7410 = vmatprep.subr.bf16.mxu1 %v8779_v26  ;;  %v4791_v4 = vadd.f32 %v10498_v47, %v10652_v10  ;;  %v5619_v47 = vsel %vm2395_vm9, %v4809_v29, 0 }
 0xf21   : > { %v7946_v22 = vpop.eup %7945  ;;  %7961 = vpow2.f32 %v5211_v39  ;;  %5255 = vadd.xlane.f32.xlu0 %v5254_v7 }
 0xf22   : > { %v10649_v32 = vpop.eup %7947  ;;  %7963 = vpow2.f32 %v5235_v5  ;;  %7395 = vmatmul.mubr.msk.bf16.vlgmr.msra.gmra.mxu0 %vm2263_vm8, %v5288_v45  ;;  %v10667_v8 = vmul.f32 0.0, %v7946_v22 }
 0xf23   : > { %v7950_v18 = vpop.eup %7949  ;;  %7405 = vmatpush3.bf16.msra.mxu0 %v5527_v25  ;;  %7406 = vmatprep.mubr.msk.bf16.mxu0 %vm8780_vm4, %v8779_v26  ;;  %v10657_v35 = vmul.f32 %v10649_v32, %v4790_v17  ;;  %v4386_v48 = vpop.xlane.xlu1 %4385 }
 0xf24   : > { %v5257_v12 = vsel %vm2263_vm8, %v7950_v18, 0.0  ;;  %v5289_v3 = vpack.c.bf16 %v7950_v18, %v7950_v18  ;;  %7416 = vmatprep.subr.bf16.mxu0 %v8779_v26  ;;  %v4792_v27 = vadd.f32 %v10500_v43, %v10667_v8 }
 0xf25   : > { %v7952_v20 = vpop.eup %7951  ;;  %5258 = vadd.xlane.f32.xlu1 %v5257_v12  ;;  %v4403_v12 = vadd.f32 %v4383_v19, %v10583_v57 }
 0xf26   : > { %v10664_v24 = vpop.eup %7953  ;;  %7401 = vmatmul.mubr.msk.bf16.vlgmr.msra.gmra.mxu1 %vm2263_vm8, %v5289_v3  ;;  %v10682_v33 = vmul.f32 0.0, %v7952_v20 }
 0xf27   : > { %v7956_v30 = vpop.eup %7955  ;;  %7411 = vmatpush3.bf16.msra.mxu1 %v5573_v58  ;;  %7412 = vmatprep.mubr.msk.bf16.mxu1 %vm8780_vm4, %v8779_v26  ;;  %v10672_v15 = vmul.f32 %v10664_v24, %v4791_v4  ;;  %v4389_v55 = vpop.xlane.xlu1 %4388  ;;  %v4404_v58 = vadd.f32 %v4386_v48, %v10600_v2  ;;  %v5238_v20 = vmul.f32 %v10598_v61, %v4403_v12 }
 0xf28   : > { %v5260_v40 = vsel %vm2263_vm8, %v7956_v30, 0.0  ;;  %v5290_v49 = vpack.c.bf16 %v7956_v30, %v7956_v30  ;;  %7422 = vmatprep.subr.bf16.mxu1 %v8779_v26  ;;  %v4793_v43 = vadd.f32 %v10502_v34, %v10682_v33  ;;  %v5245_v34 = vsel %vm2263_vm8, %v10585_v62, 0.0 }
 0xf29   : > { %5261 = vadd.xlane.f32.xlu0 %v5260_v40  ;;  %v4405_v30 = vadd.f32 %v4389_v55, %v10618_v23  ;;  %v5239_v40 = vmul.f32 %v10616_v63, %v4404_v58  ;;  %v7812_v58 = vld [vmem:[#allocation29] sm:$0xff]  }
 0xf2a   : > { %v10679_v9 = vpop.eup %7957  ;;  %7407 = vmatmul.mubr.msk.bf16.vlgmr.msra.gmra.mxu0 %vm2263_vm8, %v5290_v49 }
 0xf2b   : > { %v7960_v38 = vpop.eup %7959  ;;  %7417 = vmatpush3.bf16.msra.mxu0 %v5619_v47  ;;  %7418 = vmatprep.mubr.msk.bf16.mxu0 %vm8780_vm4, %v8779_v26  ;;  %v10687_v28 = vmul.f32 %v10679_v9, %v4792_v27  ;;  %v4392_v54 = vpop.xlane.xlu1 %4391 }
 0xf2c   : > { %v5263_v37 = vsel %vm2263_vm8, %v7960_v38, 0.0  ;;  %v5291_v0 = vpack.c.bf16 %v7960_v38, %v7960_v38  ;;  %7430 = vmatprep.subr.bf16.mxu0 %v8779_v26 }
 0xf2d   : > { %5264 = vadd.xlane.f32.xlu1 %v5263_v37 }
 0xf2e   : > { %v10693_v1 = vpop.eup %7961  ;;  %7413 = vmatmul.mubr.msk.bf16.vlgmr.msra.gmra.mxu1 %vm2263_vm8, %v5291_v0 }
 0xf2f   : > { %v7964_v21 = vpop.eup %7963  ;;  %v10697_v6 = vmul.f32 %v10693_v1, %v4793_v43  ;;  %7426 = vmatprep.mubr.msk.bf16.mxu1 %vm8780_vm4, %v8779_v26  ;;  %v4395_v31 = vpop.xlane.xlu1 %4394 }
 0xf30   : > { %v5266_v42 = vsel %vm2263_vm8, %v7964_v21, 0.0  ;;  %v5292_v52 = vpack.c.bf16 %v7964_v21, %v7964_v21  ;;  %v4407_v2 = vadd.f32 %v4395_v31, %v10652_v10 }
 0xf31   : > { %5267 = vadd.xlane.f32.xlu0 %v5266_v42  ;;  %4379 = vadd.xlane.f32.xlu1 %v4378_v60 }
 0xf32   : > { %7419 = vmatmul.mubr.msk.bf16.vlgmr.msra.gmra.mxu0 %vm2263_vm8, %v5292_v52  ;;  %v5242_v63 = vmul.f32 %v10664_v24, %v4407_v2 }
 0xf33   : > { %7434 = vmatprep.mubr.msk.bf16.mxu0 %vm8780_vm4, %v8779_v26  ;;  %v4398_v16 = vpop.xlane.xlu1 %4397 }
 0xf34   : > { %v4408_v23 = vadd.f32 %v4398_v16, %v10667_v8 }
 0xf35   : > { %5246 = vadd.xlane.f32.xlu0 %v5245_v34 }
 0xf36   : > { %v5243_v10 = vmul.f32 %v10679_v9, %v4408_v23 }
 0xf37   : > { %v4401_v53 = vpop.xlane.xlu1 %4400 }
 0xf38   : > { %v4409_v60 = vadd.f32 %v4401_v53, %v10682_v33 }
 0xfa2   : > { %v5250_v39 = vpop.xlane.xlu1 %5249 }
 0xfa3   : > { %v5270_v4 = vadd.f32 %v5250_v39, %v5238_v20 }
 0xfa5   : > { %v5670_v49 = vmax.f32 %v5270_v4, 1e-30 }
 0xfa6   : > { %v5253_v14 = vpop.xlane.xlu0 %5252 }
 0xfa7   : > { %v5271_v47 = vadd.f32 %v5253_v14, %v5239_v40 }
 0xfa9   : > { %v5671_v57 = vmax.f32 %v5271_v47, 1e-30 }
 0xfaa   : > { %v5256_v5 = vpop.xlane.xlu0 %5255 }
 0xfae   : > { %v5259_v7 = vpop.xlane.xlu1 %5258 }
 0xfb2   : > { %v5262_v45 = vpop.xlane.xlu0 %5261 }
 0xfb6   : > { %v5265_v25 = vpop.xlane.xlu1 %5264 }
 0xfb7   : > { %v5275_v19 = vadd.f32 %v5265_v25, %v5243_v10 }
 0xfb9   : > { %v5675_v33 = vmax.f32 %v5275_v19, 1e-30 }
 0xfba   : > { %v4380_v22 = vpop.xlane.xlu1 %4379  ;;  %v5268_v17 = vpop.xlane.xlu0 %5267 }
 0xfbb   : > { %v4402_v44 = vadd.f32 %v4380_v22, %v10573_v11  ;;  %v4406_v11 = vadd.f32 %v4392_v54, %v10637_v41  ;;  %v5274_v41 = vadd.f32 %v5262_v45, %v5242_v63  ;;  %v7811_v22 = vld [vmem:[#allocation29 + $0x8] sm:$0xff]  }
 0xfbc   : > { %7423 = vmatpush3.bf16.msra.mxu1 %v7811_v22  ;;  %v7814_v22 = vld [vmem:[#allocation32] sm:$0xff]  }
 0xfbd   : > { %v5237_v62 = vmul.f32 %v10581_v51, %v4402_v44  ;;  %v5240_v51 = vmul.f32 %v10634_v59, %v4405_v30  ;;  %v5241_v61 = vmul.f32 %v10649_v32, %v4406_v11  ;;  %v5674_v8 = vmax.f32 %v5274_v41, 1e-30  ;;  %7424 = vmatprep.subr.bf16.mxu1 %v8779_v26 }
 0xfbe   : > { %v5247_v18 = vpop.xlane.xlu0 %5246 }
 0xfbf   : > { %v5269_v3 = vadd.f32 %v5247_v18, %v5237_v62  ;;  %v5272_v27 = vadd.f32 %v5256_v5, %v5240_v51  ;;  %v5273_v37 = vadd.f32 %v5259_v7, %v5241_v61 }
 0xfc0   : > { %7425 = vmatpush3.bf16.msra.mxu1 %v7812_v58 }
 0xfc1   : > { %v5669_v29 = vmax.f32 %v5269_v3, 1e-30  ;;  %v5672_v38 = vmax.f32 %v5272_v27, 1e-30  ;;  %v5673_v43 = vmax.f32 %v5273_v37, 1e-30  ;;  %7438 = vmatprep.subr.bf16.mxu1 %v8779_v26 }
 0xfc3   : > { %7965 = vrcp.f32 %v5669_v29 }
 0xfc4   : > { %7967 = vrcp.f32 %v5670_v49 }
 0xfc5   : > { %7969 = vrcp.f32 %v5671_v57 }
 0xfc6   : > { %7971 = vrcp.f32 %v5672_v38 }
 0xfc7   : > { %7973 = vrcp.f32 %v5673_v43 }
 0xfc8   : > { %7975 = vrcp.f32 %v5674_v8 }
 0xfc9   : > { %7977 = vrcp.f32 %v5675_v33 }
 0xfd0   : > { %v7966_v21 = vpop.eup %7965 }
 0xfd1   : > { %v7968_v48 = vpop.eup %7967 }
 0xfd2   : > { %v7970_v39 = vpop.eup %7969 }
 0xfd3   : > { %v7972_v62 = vpop.eup %7971 }
 0xfd4   : > { %v7974_v4 = vpop.eup %7973 }
 0xfd5   : > { %v7976_v11 = vpop.eup %7975 }
 0xfd6   : > { %v5333_v0 = vpop.f32.mrf.mxu1  ;;  %v7978_v38 = vpop.eup %7977 }
 0xfd7   : > { %v5661_v59 = vadd.f32 %v5333_v0, %v10589_v50  ;;  %v5244_v50 = vmul.f32 %v10693_v1, %v4409_v60 }
 0xfd8   : > { %v7378_v42 = vpop.f32.mrf.mxu1 }
 0xfd9   : > { %v10725_v32 = vmul.f32 %v7966_v21, %v5661_v59  ;;  %v5276_v9 = vadd.f32 %v5268_v17, %v5244_v50 }
 0xfda   : > { %v5336_v52 = vpop.f32.mrf.mxu1  ;;  %v5379_v34 = vpop.f32.mrf.mxu0 }
 0xfdb   : > { %v5662_v24 = vadd.f32 %v5379_v34, %v10607_v36  ;;  %v5676_v44 = vmax.f32 %v5276_v9, 1e-30 }
 0xfdc   : > { %v7379_v55 = vpop.f32.mrf.mxu1  ;;  %v7384_v54 = vpop.f32.mrf.mxu0 }
 0xfdd   : > { %v5686_v31 = vmul.f32 %v7968_v48, %v5662_v24  ;;  %7979 = vrcp.f32 %v5676_v44 }
 0xfde   : > { %v5382_v16 = vpop.f32.mrf.mxu0  ;;  %v5425_v14 = vpop.f32.mrf.mxu1 }
 0xfdf   : > { %v5663_v53 = vadd.f32 %v5425_v14, %v10625_v56  ;;  %5694 = vrot.lane.b32.xlu1 %v5686_v31, %s11176_s27 }
 0xfe0   : > { %v7385_v5 = vpop.f32.mrf.mxu0  ;;  %v7390_v7 = vpop.f32.mrf.mxu1 }
 0xfe1   : > { %v5687_v45 = vmul.f32 %v7970_v39, %v5663_v53 }
 0xfe2   : > { %v5428_v36 = vpop.f32.mrf.mxu1  ;;  %v5471_v25 = vpop.f32.mrf.mxu0 }
 0xfe3   : > { %v5664_v1 = vadd.f32 %v5471_v25, %v10642_v46  ;;  %5698 = vrot.lane.b32.xlu0 %v5687_v45, %s11177_s9  ;;  %v7813_v25 = vld [vmem:[#allocation32 + $0x8] sm:$0xff]   ;;  %s11183_s9 = sld [smem:[#allocation72_spill]] }
 0xfe4   : > { %v7391_v18 = vpop.f32.mrf.mxu1  ;;  %v7396_v17 = vpop.f32.mrf.mxu0  ;;  %7431 = vmatpush3.bf16.msra.mxu0 %v7813_v25 }
 0xfe5   : > { %v5688_v56 = vmul.f32 %v7972_v62, %v5664_v1  ;;  %7432 = vmatprep.subr.bf16.mxu0 %v8779_v26 }
 0xfe6   : > { %v5474_v12 = vpop.f32.mrf.mxu0  ;;  %v5517_v3 = vpop.f32.mrf.mxu1 }
 0xfe7   : > { %v5665_v20 = vadd.f32 %v5517_v3, %v10657_v35  ;;  %5702 = vrot.lane.b32.xlu1 %v5688_v56, %s11178_s29  ;;  %s11184_s29 = sld [smem:[#allocation73_spill]] }
 0xfe8   : > { %v7397_v29 = vpop.f32.mrf.mxu0  ;;  %v7402_v46 = vpop.f32.mrf.mxu1  ;;  %7433 = vmatpush3.bf16.msra.mxu0 %v7814_v22 }
 0xfe9   : > { %v5689_v30 = vmul.f32 %v7974_v4, %v5665_v20  ;;  %7446 = vmatprep.subr.bf16.mxu0 %v8779_v26  ;;  %v6797_v29 = vld [vmem:[%s11183_s9] ss:$0 sm:$0xff] }
 0xfea   : > { %v5520_v40 = vpop.f32.mrf.mxu1  ;;  %v5563_v49 = vpop.f32.mrf.mxu0 }
 0xfeb   : > { %v5666_v47 = vadd.f32 %v5563_v49, %v10672_v15  ;;  %5706 = vrot.lane.b32.xlu1 %v5689_v30, %s11179_s8  ;;  %v7980_v41 = vpop.eup %7979  ;;  %s11185_s8 = sld [smem:[#allocation76_spill]] }
 0xfec   : > { %v7403_v51 = vpop.f32.mrf.mxu1  ;;  %v7408_v57 = vpop.f32.mrf.mxu0 }
 0xfed   : > { %v5690_v27 = vmul.f32 %v7976_v11, %v5666_v47  ;;  %v6798_v30 = vld [vmem:[%s11184_s29] ss:$0 sm:$0xff] }
 0xfee   : > { %v5566_v35 = vpop.f32.mrf.mxu0  ;;  %v5609_v2 = vpop.f32.mrf.mxu1 }
 0xfef   : > { %v5667_v61 = vadd.f32 %v5609_v2, %v10687_v28  ;;  %5710 = vrot.lane.b32.xlu0 %v5690_v27, %s8793_s7  ;;  %s11182_s7 = sld [smem:[#allocation75_spill]] }
 0xff0   : > { %v7409_v37 = vpop.f32.mrf.mxu0  ;;  %v7414_v23 = vpop.f32.mrf.mxu1 }
 0xff1   : > { %v5691_v63 = vmul.f32 %v7978_v38, %v5667_v61  ;;  %v7815_v11 = vld [vmem:[%s11185_s8 + $0x18] sm:$0xff]   ;;  %v7816_v51 = vld [vmem:[%s11185_s8 + $0x8] sm:$0xff]   ;;  %v7817_v57 = vld [vmem:[%s11185_s8 + $0x10] sm:$0xff]  }
 0xff2   : > { %v5612_v0 = vpop.f32.mrf.mxu1  ;;  %v5655_v43 = vpop.f32.mrf.mxu0  ;;  %v7818_v27 = vld [vmem:[%s11185_s8] sm:$0xff]   ;;  %s8797_s8 = smov [#allocation34]  }
 0xff3   : > { %v5668_v15 = vadd.f32 %v5655_v43, %v10697_v6  ;;  %5714 = vrot.lane.b32.xlu1 %v5691_v63, %s11180_s26  ;;  %s11186_s26 = sld [smem:[#allocation77_spill]]  ;;  %s8444_s13 = sshll.u32 %s8797_s8, 4  ;;  %s8445_s13 = int_to_ptr.vmem [resolvable:$false] %s8444_s13 }
 0xff4   : > { %v7415_v59 = vpop.f32.mrf.mxu1  ;;  %v7420_v21 = vpop.f32.mrf.mxu0  ;;  %s8446_s21 = scalar_lea.vmem %s8445_s13, 256 }
 0xff5   : > { %v5692_v42 = vmul.f32 %v7980_v41, %v5668_v15  ;;  %v6799_v17 = vld [vmem:[%s11182_s7] ss:$0 sm:$0xff]  ;;  %s11188_s7 = sld [smem:[#allocation81_spill]] }
 0xff6   : > { %v5658_v60 = vpop.f32.mrf.mxu0 }
 0xff7   : > { %5718 = vrot.lane.b32.xlu0 %v5692_v42, %s11181_s2  ;;  %s11187_s2 = sld [smem:[#allocation89_spill]] }
 0xff8   : > { %v7421_v28 = vpop.f32.mrf.mxu0 }
 0xffd   : > { %s10787_s9 = sshll.u32 %s11187_s2, 7 }
 0xffe   : > { %s10791_s29 = scalar_lea.hbm %s11188_s7, %s10787_s9 }
0x1051   : > { %v5695_v10 = vpop.permute.xlu1 %5694 }
0x1052   : > { %v5721_v19 = vsel %vm1878_vm5, %v10725_v32, %v5695_v10  ;;  %v6793_v32 = vld [vmem:[#allocation30] ss:$0 sm:$0xff] }
0x1055   : > { %v5699_v34 = vpop.permute.xlu0 %5698 }
0x1056   : > { %v5722_v24 = vsel %vm2263_vm8, %v5721_v19, %v5699_v34 }
0x1059   : > { %v5703_v52 = vpop.permute.xlu1 %5702 }
0x105a   : > { %v5723_v48 = vsel %vm3709_vm11, %v5722_v24, %v5703_v52 }
0x105d   : > { %v5707_v8 = vpop.permute.xlu1 %5706 }
0x105e   : > { %v5724_v54 = vsel %vm3711_vm12, %v5723_v48, %v5707_v8 }
0x1061   : > { %v5711_v6 = vpop.permute.xlu0 %5710 }
0x1062   : > { %v5725_v50 = vsel %vm3713_vm13, %v5724_v54, %v5711_v6 }
0x1065   : > { %v5715_v55 = vpop.permute.xlu1 %5714 }
0x1066   : > { %v5726_v31 = vsel %vm3715_vm14, %v5725_v50, %v5715_v55 }
0x1069   : > { %v5719_v16 = vpop.permute.xlu0 %5718 }
0x106a   : > { %v5727_v14 = vsel %vm3717_vm15, %v5726_v31, %v5719_v16 }
0x106b   : > { %v5728_v33 = vpack.c.bf16 %v5727_v14, %v5727_v14 }
0x106d   : > { %7427 = vmatmul.mubr.msk.bf16.vlgmr.msra.gmra.mxu1 %vm1796_vm6, %v5728_v33 }
0x106e   : > { %7442 = vmatprep.mubr.msk.bf16.mxu1 %vm8780_vm4, %v8779_v26 }
0x112d   : > { %v5789_v9 = vpop.f32.mrf.mxu1 }
0x112e   : > { %v5790_v53 = vadd.f32 %v6793_v32, %v5789_v9  ;;  %v6810_v9 = vld [vmem:[%s11186_s26] ss:$0 sm:$0xff]  ;;  %s6167_s26 = sshll.u32 %s9416_s24, 4  ;;  %s10794_s26 = int_to_ptr.vmem [resolvable:$true] %s6167_s26 }
0x112f   : > { %v7428_v39 = vpop.f32.mrf.mxu1  ;;  %s8440_s5 = scalar_lea.vmem %s10794_s26, 128  ;;  %p8447_p9 = scmp.lt.s32.totalorder %s10794_s26, %s8445_s13 }
0x1130   : > { %v5795_v5 = vadd.f32 %v5790_v53, %v10211_v13  ;;  %p8441_p8 = scmp.ne.s32.totalorder %s10794_s26, %s8440_s5  ;;  %p8448_p7 = scmp.lt.s32.totalorder %s8446_s21, %s8440_s5 }
0x1131   : > { %v5792_v7 = vpop.f32.mrf.mxu1 }
0x1132   : > { %v5798_v45 = vsel %vm1796_vm6, %v5795_v5, 0.0  ;;  %p8442_p1 = pnand %p8441_p8, %p11190_p0  ;;  %p8449_p12 = por %p8448_p7, %p8447_p9 }
0x1133   : > { %5799 = vadd.xlane.f32.xlu1 %v5798_v45  ;;  %v7429_v36 = vpop.f32.mrf.mxu1 }
0x1134   : > { %p8443_p13 = pneg %p8442_p1 }
0x1136   : > { %p8450_p6 = pnand %p8449_p12, %p8443_p13 }
0x1144   : > { %5906 = vrot.lane.b32.xlu1 %v7814_v22, %s8796_s20 }
0x1148   : > { %5912 = vrot.lane.b32.xlu1 %v6799_v17, %s8796_s20 }
0x11bc   : > { %v5800_v44 = vpop.xlane.xlu1 %5799 }
0x11bd   : > { %v5801_v1 = vmul.f32 0.03125, %v5800_v44 }
0x11bf   : > { %v5802_v62 = vsub.f32 %v5795_v5, %v5801_v1 }
0x11c0   : > { %v5907_v20 = vpop.permute.xlu1 %5906 }
0x11c1   : > { %v5803_v13 = vmul.f32 %v5802_v62, %v5802_v62 }
0x11c3   : > { %v5804_v18 = vsel %vm1796_vm6, %v5803_v13, 0.0 }
0x11c4   : > { %5805 = vadd.xlane.f32.xlu0 %v5804_v18  ;;  %v5913_v35 = vpop.permute.xlu1 %5912 }
0x11da   : > { %5908 = vrot.lane.b32.xlu0 %v7813_v25, %s8796_s20  ;;  %s11189_s20 = smov %s11188_s7 }
0x124d   : > { %v5806_v56 = vpop.xlane.xlu0 %5805 }
0x124e   : > { %v5807_v12 = vmul.f32 0.03125, %v5806_v56 }
0x1250   : > { %v5808_v3 = vadd.f32 1e-05, %v5807_v12 }
0x1251   : > { %v5909_v58 = vpop.permute.xlu0 %5908 }
0x1252   : > { %7981 = vrsqrt.f32 %v5808_v3  ;;  %7439 = vmatpush3.bf16.msra.mxu1 %v5909_v58 }
0x1253   : > { %7440 = vmatprep.subr.bf16.mxu1 %v8779_v26 }
0x1256   : > { %7441 = vmatpush3.bf16.msra.mxu1 %v5907_v20 }
0x1257   : > { %7454 = vmatprep.subr.bf16.mxu1 %v8779_v26 }
0x125f   : > { %v7982_v4 = vpop.eup %7981 }
0x1260   : > { %v5810_v46 = vmul.f32 %v7982_v4, %v5802_v62 }
0x1262   : > { %v5817_v40 = vmul.f32 %v6797_v29, %v5810_v46 }
0x1264   : > { %v5824_v49 = vadd.f32 %v6798_v30, %v5817_v40 }
0x1266   : > { %v5825_v47 = vpack.c.bf16 %v5824_v49, %v5824_v49 }
0x1268   : > { %7435 = vmatmul.mubr.msk.bf16.vlgmr.msra.gmra.mxu0 %vm1796_vm6, %v5825_v47  ;;  %7443 = vmatmul.mubr.msk.bf16.vlgmr.msra.gmra.mxu1 %vm1796_vm6, %v5825_v47 }
0x1269   : > { %7450 = vmatprep.mubr.msk.bf16.mxu0 %vm8780_vm4, %v8779_v26  ;;  %7458 = vmatprep.mubr.msk.bf16.mxu1 %vm8780_vm4, %v8779_v26 }
0x126a   : > { %7447 = vmatpush3.bf16.msra.mxu0 %v7815_v11  ;;  %7455 = vmatpush3.bf16.msra.mxu1 %v7816_v51 }
0x126b   : > { %7448 = vmatprep.subr.bf16.mxu0 %v8779_v26  ;;  %7456 = vmatprep.subr.bf16.mxu1 %v8779_v26 }
0x126e   : > { %7449 = vmatpush3.bf16.msra.mxu0 %v7817_v57  ;;  %7457 = vmatpush3.bf16.msra.mxu1 %v7818_v27 }
0x1328   : > { %v5886_v2 = vpop.f32.mrf.mxu0  ;;  %v5949_v61 = vpop.f32.mrf.mxu1 }
0x1329   : > { %v5887_v38 = vadd.f32 %v6799_v17, %v5886_v2  ;;  %v5950_v37 = vadd.f32 %v5949_v61, %v5913_v35 }
0x132a   : > { %v7436_v23 = vpop.f32.mrf.mxu0  ;;  %v7444_v63 = vpop.f32.mrf.mxu1 }
0x132b   : > { %v5893_v0 = vmul.f32 %v5887_v38, %v5887_v38  ;;  %v5956_v43 = vmul.f32 %v5950_v37, %v5950_v37  ;;  %v5892_v6 = vmul.f32 0.5, %v5887_v38  ;;  %v5955_v55 = vmul.f32 0.5, %v5950_v37 }
0x132c   : > { %v5889_v15 = vpop.f32.mrf.mxu0  ;;  %v5952_v41 = vpop.f32.mrf.mxu1 }
0x132d   : > { %v5894_v59 = vmul.f32 %v5893_v0, %v5887_v38  ;;  %v5957_v21 = vmul.f32 %v5956_v43, %v5950_v37 }
0x132e   : > { %v7437_v42 = vpop.f32.mrf.mxu0  ;;  %v7445_v60 = vpop.f32.mrf.mxu1 }
0x132f   : > { %v5895_v26 = vmul.f32 0.044715, %v5894_v59  ;;  %v5958_v28 = vmul.f32 0.044715, %v5957_v21 }
0x1331   : > { %v5896_v10 = vadd.f32 %v5895_v26, %v5887_v38  ;;  %v5959_v52 = vadd.f32 %v5958_v28, %v5950_v37 }
0x1333   : > { %v5897_v34 = vmul.f32 0.7978846, %v5896_v10  ;;  %v5960_v8 = vmul.f32 0.7978846, %v5959_v52 }
0x1335   : > { %7983 = vtanh.f32 %v5897_v34 }
0x1336   : > { %7985 = vtanh.f32 %v5960_v8 }
0x1342   : > { %v7984_v19 = vpop.eup %7983 }
0x1343   : > { %v7986_v24 = vpop.eup %7985  ;;  %v5899_v48 = vadd.f32 1.0, %v7984_v19 }
0x1344   : > { %v5962_v54 = vadd.f32 1.0, %v7986_v24 }
0x1345   : > { %v5900_v50 = vmul.f32 %v5899_v48, %v5892_v6 }
0x1346   : > { %v5963_v31 = vmul.f32 %v5962_v54, %v5955_v55 }
0x1347   : > { %v5905_v16 = vpack.c.bf16 %v5900_v50, %v5900_v50 }
0x1348   : > { %v5968_v14 = vpack.c.bf16 %v5963_v31, %v5963_v31 }
0x1349   : > { %7459 = vmatmul.mubr.msk.bf16.vlgmr.msra.gmra.mxu1 %vm1796_vm6, %v5905_v16 }
0x134a   : > { %7451 = vmatmul.mubr.msk.bf16.vlgmr.msra.gmra.mxu0 %vm1796_vm6, %v5968_v14 }
0x1409   : > { %v6073_v33 = vpop.f32.mrf.mxu1 }
0x140a   : > { %v6018_v32 = vpop.f32.mrf.mxu0 }
0x140b   : > { %v6074_v53 = vadd.f32 %v6073_v33, %v6018_v32  ;;  %v7460_v39 = vpop.f32.mrf.mxu1 }
0x140c   : > { %v7452_v5 = vpop.f32.mrf.mxu0 }
0x140d   : > { %v6086_v7 = vadd.f32 %v6810_v9, %v6074_v53  ;;  %v6076_v45 = vpop.f32.mrf.mxu1 }
0x140e   : > { %v6021_v36 = vpop.f32.mrf.mxu0 }
0x140f   : > { %v7461_v25 = vpop.f32.mrf.mxu1  ;;  %v6087_v22 = vadd.f32 %v6086_v7, %v5824_v49 }
0x1410   : > { %v7453_v44 = vpop.f32.mrf.mxu0 }
0x1411   : > { %v6090_v1 = vsel %vm1796_vm6, %v6087_v22, 0.0 }
0x1412   : > { %6091 = vadd.xlane.f32.xlu0 %v6090_v1 }
0x149b   : > { %v6092_v62 = vpop.xlane.xlu0 %6091 }
0x149c   : > { %v6093_v13 = vmul.f32 0.03125, %v6092_v62 }
0x149e   : > { %v10781_v18 = vsub.f32 %v6087_v22, %v6093_v13 }
0x14a0   : > { %v6095_v17 = vmul.f32 %v10781_v18, %v10781_v18 }
0x14a2   : > { %v6096_v56 = vsel %vm1796_vm6, %v6095_v17, 0.0 }
0x14a3   : > { %6097 = vadd.xlane.f32.xlu1 %v6096_v56 }
0x14a4   : > { %8453 = shalt.err (!%p8450_p6)
}
0x14a5   : > { %s8454_s24 = scalar_lea.hbm %s10791_s29, 128  ;;  %s8458_s7 = scalar_lea.hbm %s11189_s20, 256 }
0x14a6   : > { %p8455_p11 = scmp.ne.s32.totalorder %s10791_s29, %s8454_s24  ;;  %p8459_p5 = scmp.lt.s32.totalorder %s10791_s29, %s11189_s20 }
0x14a7   : > { %p8460_p4 = scmp.lt.s32.totalorder %s8458_s7, %s8454_s24 }
0x14a8   : > { %p8456_p2 = pnand %p8455_p11, %p11190_p0 }
0x14a9   : > { %p8461_p10 = por %p8460_p4, %p8459_p5 }
0x14aa   : > { %p8457_p3 = pneg %p8456_p2 }
0x14ac   : > { %p8462_p8 = pnand %p8461_p10, %p8457_p3 }
0x14ae   : > { %8465 = shalt.err (!%p8462_p8)
}
0x14af   : > { %s8798_s5 = smov 64   ;;  %s11191_s21 = sld [smem:[#allocation83_spill]] }
0x14b0   : > { %7523 = dma.vmem_to_hbm [thread:$0]  (%p11190_p0), %s10794_s26, 128, %s10791_s29, %s11041_s4, %s8798_s5, %s8798_s5, %s11176_s27  }
0x14b1   : > { %s6199_s8 = sshll.u32 %s9420_s23, 4  ;;  %s6134_s24 = scalar_lea.sflag [#allocation38], %s9360_s25  ;;  %s10823_s8 = int_to_ptr.vmem [resolvable:$true] %s6199_s8 }
0x14b2   : > { %s8466_s7 = scalar_lea.vmem %s10823_s8, 128  ;;  %s8799_s20 = smov [#allocation37]  }
0x14b3   : > { %p8467_p1 = scmp.ne.s32.totalorder %s10823_s8, %s8466_s7  ;;  %s8470_s30 = sshll.u32 %s8799_s20, 4  ;;  %s8471_s30 = int_to_ptr.vmem [resolvable:$false] %s8470_s30 }
0x14b4   : > { %s8472_s11 = scalar_lea.vmem %s8471_s30, 256  ;;  %p8473_p7 = scmp.lt.s32.totalorder %s10823_s8, %s8471_s30 }
0x14b5   : > { %s10820_s13 = scalar_lea.hbm %s11191_s21, %s10787_s9  ;;  %p8468_p13 = pnand %p8467_p1, %p11190_p0 }
0x14b6   : > { %p8474_p12 = scmp.lt.s32.totalorder %s8472_s11, %s8466_s7 }
0x14b7   : > { %p8469_p9 = pneg %p8468_p13 }
0x14b8   : > { %p8475_p6 = por %p8474_p12, %p8473_p7 }
0x14ba   : > { %p8476_p11 = pnand %p8475_p6, %p8469_p9 }
0x14bc   : > { %8479 = shalt.err (!%p8476_p11)
}
0x14bd   : > { %s8480_s23 = scalar_lea.hbm %s10820_s13, 128  ;;  %s8484_s29 = scalar_lea.hbm %s11191_s21, 256 }
0x14be   : > { %p8481_p2 = scmp.ne.s32.totalorder %s10820_s13, %s8480_s23  ;;  %p8485_p4 = scmp.lt.s32.totalorder %s10820_s13, %s11191_s21 }
0x14bf   : > { %p8486_p10 = scmp.lt.s32.totalorder %s8484_s29, %s8480_s23 }
0x14c0   : > { %p8482_p3 = pnand %p8481_p2, %p11190_p0 }
0x14c1   : > { %p8487_p8 = por %p8486_p10, %p8485_p4 }
0x14c2   : > { %p8483_p5 = pneg %p8482_p3 }
0x14c4   : > { %p8488_p1 = pnand %p8487_p8, %p8483_p5 }
0x14c6   : > { %8491 = shalt.err (!%p8488_p1)
}
0x14c7   : > { %s11192_s11 = sld [smem:[#allocation82_spill]]  ;;  %s6183_s7 = sshll.u32 %s9418_s0, 4  ;;  %s10856_s7 = int_to_ptr.vmem [resolvable:$true] %s6183_s7 }
0x14c8   : > { %s11194_s20 = sld [smem:[#allocation84_spill]]  ;;  %s6215_s29 = sshll.u32 %s9422_s16, 4  ;;  %s6216_s29 = int_to_ptr.vmem [resolvable:$true] %s6215_s29 }
0x14c9   : > { %7525 = dma.vmem_to_hbm [thread:$0]  (%p11190_p0), %s10823_s8, 128, %s10820_s13, %s6134_s24, %s8798_s5, %s8798_s5, %s11176_s27  }
0x14ca   : > { %s8492_s4 = scalar_lea.vmem %s10856_s7, 128  ;;  %s8800_s21 = smov [#allocation36]  }
0x14cb   : > { %p8493_p13 = scmp.ne.s32.totalorder %s10856_s7, %s8492_s4  ;;  %s8496_s10 = sshll.u32 %s8800_s21, 4  ;;  %s8497_s10 = int_to_ptr.vmem [resolvable:$false] %s8496_s10 }
0x14cc   : > { %s8498_s13 = scalar_lea.vmem %s8497_s10, 256  ;;  %p8499_p12 = scmp.lt.s32.totalorder %s10856_s7, %s8497_s10 }
0x14cd   : > { %s11193_s30 = smov %s11192_s11  ;;  %s10849_s26 = scalar_lea.hbm %s11192_s11, %s10787_s9 }
0x14ce   : > { %s10854_s23 = scalar_lea.hbm %s11194_s20, %s10787_s9  ;;  %p8494_p9 = pnand %p8493_p13, %p11190_p0 }
0x14cf   : > { %p8500_p6 = scmp.lt.s32.totalorder %s8498_s13, %s8492_s4 }
0x14d0   : > { %p8495_p7 = pneg %p8494_p9 }
0x14d1   : > { %p8501_p11 = por %p8500_p6, %p8499_p12 }
0x14d3   : > { %p8502_p2 = pnand %p8501_p11, %p8495_p7 }
0x14d5   : > { %8505 = shalt.err (!%p8502_p2)
}
0x14d6   : > { %s8506_s0 = scalar_lea.hbm %s10849_s26, 128  ;;  %s8510_s9 = scalar_lea.hbm %s11193_s30, 256 }
0x14d7   : > { %p8507_p3 = scmp.ne.s32.totalorder %s10849_s26, %s8506_s0  ;;  %p8511_p10 = scmp.lt.s32.totalorder %s10849_s26, %s11193_s30 }
0x14d8   : > { %p8512_p8 = scmp.lt.s32.totalorder %s8510_s9, %s8506_s0 }
0x14d9   : > { %p8508_p5 = pnand %p8507_p3, %p11190_p0 }
0x14da   : > { %p8513_p1 = por %p8512_p8, %p8511_p10 }
0x14db   : > { %p8509_p4 = pneg %p8508_p5 }
0x14dd   : > { %p8514_p13 = pnand %p8513_p1, %p8509_p4 }
0x14df   : > { %8517 = shalt.err (!%p8514_p13)
}
0x14e0   : > { %s11195_s4 = scalar_lea.sflag [#allocation35], %s9360_s25  ;;  %s8518_s10 = scalar_lea.vmem %s6216_s29, 128 }
0x14e1   : > { %7524 = dma.vmem_to_hbm [thread:$0]  (%p11190_p0), %s10856_s7, 128, %s10849_s26, %s11195_s4, %s8798_s5, %s8798_s5, %s11176_s27  }
0x14e2   : > { %p8519_p9 = scmp.ne.s32.totalorder %s6216_s29, %s8518_s10  ;;  %s8801_s21 = smov [#allocation39]  }
0x14e3   : > { %s8522_s8 = sshll.u32 %s8801_s21, 4  ;;  %s8523_s8 = int_to_ptr.vmem [resolvable:$false] %s8522_s8 }
0x14e4   : > { %p8520_p7 = pnand %p8519_p9, %p11190_p0  ;;  %s8524_s11 = scalar_lea.vmem %s8523_s8, 256 }
0x14e5   : > { %p8525_p6 = scmp.lt.s32.totalorder %s6216_s29, %s8523_s8  ;;  %p8526_p11 = scmp.lt.s32.totalorder %s8524_s11, %s8518_s10 }
0x14e6   : > { %p8521_p12 = pneg %p8520_p7 }
0x14e7   : > { %p8527_p2 = por %p8526_p11, %p8525_p6 }
0x14e9   : > { %p8528_p3 = pnand %p8527_p2, %p8521_p12 }
0x14eb   : > { %8531 = shalt.err (!%p8528_p3)
}
0x14ec   : > { %s8532_s16 = scalar_lea.hbm %s10854_s23, 128  ;;  %s8536_s26 = scalar_lea.hbm %s11194_s20, 256 }
0x14ed   : > { %p8533_p5 = scmp.ne.s32.totalorder %s10854_s23, %s8532_s16  ;;  %p8537_p8 = scmp.lt.s32.totalorder %s10854_s23, %s11194_s20 }
0x14ee   : > { %p8538_p1 = scmp.lt.s32.totalorder %s8536_s26, %s8532_s16 }
0x14ef   : > { %p8534_p4 = pnand %p8533_p5, %p11190_p0 }
0x14f0   : > { %p8539_p13 = por %p8538_p1, %p8537_p8 }
0x14f1   : > { %p8535_p10 = pneg %p8534_p4 }
0x14f3   : > { %p8540_p9 = pnand %p8539_p13, %p8535_p10 }
0x14f5   : > { %8543 = shalt.err (!%p8540_p9)
}
0x14f6   : > { %s11196_s7 = sld [smem:[#allocation78_spill]]  ;;  %s6818_s17 = sshll.u32 %s11187_s2, 1 }
0x14f7   : > { %s11197_s13 = sld [smem:[#allocation79_spill]]  ;;  %s6150_s4 = sadd.s32 %s11168_s3, %s6818_s17 }
0x14f8   : > { %s11198_s0 = sld [smem:[#allocation80_spill]]  ;;  %s6819_s25 = sshll.u32 %s6150_s4, 7 }
0x14f9   : > { %7526 = dma.vmem_to_hbm [thread:$0]  (%p11190_p0), %s6216_s29, 128, %s10854_s23, %s6134_s24, %s8798_s5, %s8798_s5, %s11176_s27  }
0x14fa   : > { %s6154_s10 = sshll.u32 %s9414_s12, 4  ;;  %s6119_s27 = scalar_lea.sflag [#allocation8], %s9347_s18  ;;  %s6155_s10 = int_to_ptr.vmem [resolvable:$true] %s6154_s10 }
0x14fb   : > { %s8544_s5 = scalar_lea.vmem %s6155_s10, 128  ;;  %p11200_p7 = scmp.ne.s32.totalorder %s11119_s6, 0 }
0x14fc   : > { %v6811_v4 = vld [vmem:[%s11196_s7] ss:$0 sm:$0xff]  ;;  %p8545_p0 = scmp.ne.s32.totalorder %s6155_s10, %s8544_s5  ;;  %s8802_s3 = smov [#allocation33]  }
0x14fd   : > { %v6812_v46 = vld [vmem:[%s11197_s13] ss:$0 sm:$0xff]  ;;  %s8548_s2 = sshll.u32 %s8802_s3, 4  ;;  %s8549_s2 = int_to_ptr.vmem [resolvable:$false] %s8548_s2 }
0x14fe   : > { %s11199_s9 = smov %s11198_s0  ;;  %s6152_s21 = scalar_lea.hbm %s11198_s0, %s6819_s25 }
0x14ff   : > { %p8546_p12 = pnand %p8545_p0, %p11200_p7  ;;  %s8550_s24 = scalar_lea.vmem %s8549_s2, 256 }
0x1500   : > { %p8551_p11 = scmp.lt.s32.totalorder %s6155_s10, %s8549_s2  ;;  %p8552_p2 = scmp.lt.s32.totalorder %s8550_s24, %s8544_s5 }
0x1501   : > { %p8547_p6 = pneg %p8546_p12 }
0x1502   : > { %p8553_p3 = por %p8552_p2, %p8551_p11 }
0x1504   : > { %p8554_p5 = pnand %p8553_p3, %p8547_p6 }
0x152c   : > { %v6098_v12 = vpop.xlane.xlu1 %6097 }
0x152d   : > { %v6099_v3 = vmul.f32 0.03125, %v6098_v12 }
0x152f   : > { %v6100_v58 = vadd.f32 1e-05, %v6099_v3 }
0x1531   : > { %7987 = vrsqrt.f32 %v6100_v58 }
0x153e   : > { %v7988_v20 = vpop.eup %7987 }
0x153f   : > { %v6102_v29 = vmul.f32 %v7988_v20, %v10781_v18 }
0x1541   : > { %v6109_v30 = vmul.f32 %v6811_v4, %v6102_v29 }
0x1543   : > { %v6116_v40 = vadd.f32 %v6812_v46, %v6109_v30 }
0x1545   : > { %6117 = vst.msk [vmem:[%s9414_s12] sm:$0xff] %vm1796_vm6, %v6116_v40 }
0x1546   : > { %8557 = shalt.err (!%p8554_p5)
}
0x1547   : > { %s8558_s23 = scalar_lea.hbm %s6152_s21, 128  ;;  %s8562_s18 = scalar_lea.hbm %s11199_s9, 512 }
0x1548   : > { %p8559_p4 = scmp.ne.s32.totalorder %s6152_s21, %s8558_s23  ;;  %p8563_p1 = scmp.lt.s32.totalorder %s6152_s21, %s11199_s9 }
0x1549   : > { %p8564_p13 = scmp.lt.s32.totalorder %s8562_s18, %s8558_s23 }
0x154a   : > { %p8560_p10 = pnand %p8559_p4, %p11200_p7 }
0x154b   : > { %p8565_p9 = por %p8564_p13, %p8563_p1 }
0x154c   : > { %p8561_p8 = pneg %p8560_p10 }
0x154e   : > { %p8566_p0 = pnand %p8565_p9, %p8561_p8 }
0x1550   : > { %8569 = shalt.err (!%p8566_p0)
}
0x1551   : > { %7522 = dma.vmem_to_hbm [thread:$0]  (%p11200_p7), %s6155_s10, 128, %s6152_s21, %s6119_s27  }
0x1552 PF: > { %s11201_s12 = sld [smem:[#allocation87_spill]]  ;;  %p7628_p12 = scmp.ge.s32.totalorder %s8708_s15, 2 }
0x1553   : > { %p11202_p6 = scmp.ne.s32.totalorder %s11126_s14, 0 }
0x1555   : > { %p7586_p11 = pnand %p7628_p12, %p11202_p6 }
0x1557   : > { %p7587_p2 = pneg %p7586_p11 }
0x1558   : > { %s6230_s29 = sand.u32 1, %s11201_s12  }
0x1559   : > { %s6231_s8 = scalar_lea.sflag [#allocation8], %s6230_s29 }
0x155a   : > { %8655 = dma.done.wait (%p7587_p2), %s6231_s8, 128  }
0x155b   : > { %8657 = vsyncadd (%p7587_p2), %s6231_s8, 4294967168  ;;  %s11203_s11 = sadd.s32 4294967294, %s8708_s15   ;;  %p11204_p3 = scmp.ne.s32.totalorder %s11127_s19, 0 }
0x155c   : > { %s6239_s16 = sand.u32 1, %s11203_s11  }
0x155d   : > { %p7589_p5 = pnand %p7628_p12, %p11204_p3  ;;  %s6240_s6 = scalar_lea.sflag [#allocation35], %s6239_s16 }
0x155f   : > { %p7590_p4 = pneg %p7589_p5 }
0x1561   : > { %8659 = dma.done.wait (%p7590_p4), %s6240_s6, 256  }
0x1562   : > { %8661 = vsyncadd (%p7590_p4), %s6240_s6, 4294967040  ;;  %s6258_s26 = scalar_lea.sflag [#allocation38], %s6239_s16 }
0x1563   : > { %8663 = dma.done.wait (%p7590_p4), %s6258_s26, 256  }
0x1564   : > { %8665 = vsyncadd (%p7590_p4), %s6258_s26, 4294967040  ;;  %s98_s15 = sadd.s32 1, %s8708_s15   ;;  %s11205_s14 = sld [smem:[#allocation86_spill]] }
0x1565   : > { %p95_p7 = scmp.ge.s32.totalorder %s98_s15, 6   ;;  %s11206_s23 = sld [smem:[#allocation95_spill]] }
0x1566   : > { %s11207_s7 = sld [smem:[#allocation96_spill]]  ;;  %s11212_s0 = smov %s8672_s22 }
0x1567   : > { %s11208_s2 = sld [smem:[#allocation90_spill]]  ;;  %s11214_s26 = smov %s8684_s28 }
0x1568   : > { %s11209_s13 = sld [smem:[#allocation91_spill]]  ;;  %s11215_s28 = smov %s8688_s1 }
0x1569   : > { %s11210_s10 = sld [smem:[#allocation93_spill]] }
0x156a   : > { %s11211_s11 = sld [smem:[#allocation94_spill]]  ;;  %s11213_s22 = smov %s11205_s14 }
0x156b   :  { %97 = sbr.rel (!%p95_p7) target bundleno = 93 (0x5d), region = 392 }
0x156c   : > { %s11216_s1 = smov %s11207_s7 }
0x156e   : > { %s11217_s7 = smov %s11209_s13 }
0x1570   :  { %6272 = vsyncpa [#allocation7], 1 }
0x1571   :  { %6274 = vsyncpa [#allocation7 + $0x1], 1 }
0x1572   :  { %6275 = vsyncpa [#allocation10], 1 }
0x1573   :  { %6277 = vsyncpa [#allocation10 + $0x1], 1 }
0x1574   :  { %6278 = vsyncpa [#allocation13], 1 }
0x1575   :  { %6280 = vsyncpa [#allocation13 + $0x1], 1 }
0x1576   :  { %6281 = vsyncpa [#allocation16], 1 }
0x1577   :  { %6282 = vsyncpa [#allocation19], 1 }
0x1578   :  { %6283 = vsyncpa [#allocation22], 1 }
0x1579   :  { %6284 = vsyncpa [#allocation25], 1 }
0x157a   :  { %6285 = vsyncpa [#allocation28], 1 }
0x157b   :  { %6286 = vsyncpa [#allocation31], 1 }
0x157c   :  { %6287 = vsyncpa [#allocation8], 1 }
0x157d   :  { %6289 = vsyncpa [#allocation8 + $0x1], 1 }
0x157e   :  { %6290 = vsyncpa [#allocation35], 1 }
0x157f   :  { %6292 = vsyncpa [#allocation35 + $0x1], 1 }
0x1580   :  { %6293 = vsyncpa [#allocation38], 1 }
0x1581   :  { %6295 = vsyncpa [#allocation38 + $0x1], 1 }

</bundles_post_ra>
